<compile_context>
chip_gen: v5e
topology: v5e:2x2
jax: 0.10.0
libtpu: 0.0.40
codegen_flags: <defaults>
</compile_context>

<pallas_src>
import functools

import jax
import jax.numpy as jnp
from jax.experimental import pallas as pl
from jax.experimental.pallas import tpu as pltpu


def _vmem_limit_bytes():
    """~3/4 of physical VMEM (96 MiB on 128 MiB parts, 48 MiB on v7x)."""
    cap = None
    try:
        cap = pltpu.get_tpu_info().vmem_capacity_bytes
    except Exception:
        cap = None
    if not cap or cap <= 0:
        cap = 64 * 1024 * 1024          # conservative fallback (v7x size)
    return int(min(cap * 3 // 4, 112 * 1024 * 1024))


def _pick_batch_tile(n, hw, target_rows=512):
    """Largest divisor of n with tile*hw matmul rows <= target (fills MXU)."""
    best = 1
    for b in range(1, n + 1):
        if n % b == 0 and b * hw <= max(target_rows, hw):
            best = b
    return best


# ---------------------------------------------------------------------------
# Wrapper-side im2col for the stride-2 3x3 stem (layout plumbing only; the
# conv compute itself stays inside the kernel as an MXU matmul).
# ---------------------------------------------------------------------------

def _stem_im2col(x):
    """x: (N, H, W, Cin) f32.  k=3, stride=2, pad=1 -> (N, Ho*Wo, 9*Cin) bf16."""
    N, H, W, Cin = x.shape
    Ho, Wo = (H + 1) // 2, (W + 1) // 2
    xp = jnp.pad(x, ((0, 0), (1, 1), (1, 1), (0, 0)))
    cols = [xp[:, dy::2, dx::2, :][:, :Ho, :Wo, :]
            for dy in range(3) for dx in range(3)]
    patches = jnp.concatenate(cols, axis=-1)               # (N, Ho, Wo, 9*Cin)
    return patches.reshape(N, Ho * Wo, 9 * Cin).astype(jnp.bfloat16), Ho, Wo


# ---------------------------------------------------------------------------
# The fused kernel: stem matmul -> MBConv (expand / dw3x3 / SE / project /
# residual) -> head 1x1 + bn2 + SiLU -> GAP -> fc, for bt images per step.
# Everything stays in VMEM / vregs between sub-ops.
# ---------------------------------------------------------------------------

def _effnet_fused_kernel(x_ref,
                         stem_w_ref, stem_b_ref,
                         exp_w_ref, exp_b_ref,
                         dw_w_ref, dw_b_ref,
                         se_w1_ref, se_b1_ref, se_w2_ref, se_b2_ref,
                         proj_w_ref, proj_b_ref,
                         head_w_ref, head_b_ref,
                         fc_w_ref, fc_b_ref,
                         o_ref, hpad_ref, *, H, W):
    B, HW, Kp = x_ref.shape
    Ce = hpad_ref.shape[-1]

    def silu(v):
        return v * jax.nn.sigmoid(v)

    def mm(a_bf16, w_ref, b_ref):
        return jnp.dot(a_bf16, w_ref[...],
                       preferred_element_type=jnp.float32) + b_ref[...]

    # ---- stem 3x3/s2 conv (im2col'd in wrapper) + folded BN + SiLU --------
    s = silu(mm(x_ref[...].reshape(B * HW, Kp), stem_w_ref, stem_b_ref))   # (B*HW, Cs) f32

    # ---- MBConv expand 1x1 + folded BN + SiLU ------------------------------
    h = silu(mm(s.astype(jnp.bfloat16), exp_w_ref, exp_b_ref))             # (B*HW, Ce) f32

    # ---- stage expanded act into zero-padded bf16 VMEM scratch -------------
    # Zero only the 1-pixel halo every step (interior fully overwritten; the
    # border is never written elsewhere, and per-step zeroing is megacore-safe).
    hpad_ref[:, :, 0:1, :] = jnp.zeros((B, H + 2, 1, Ce), jnp.bfloat16)
    hpad_ref[:, :, W + 1:W + 2, :] = jnp.zeros((B, H + 2, 1, Ce), jnp.bfloat16)
    hpad_ref[:, 0:1, :, :] = jnp.zeros((B, 1, W + 2, Ce), jnp.bfloat16)
    hpad_ref[:, H + 1:H + 2, :, :] = jnp.zeros((B, 1, W + 2, Ce), jnp.bfloat16)
    hpad_ref[:, 1:H + 1, 1:W + 1, :] = h.astype(jnp.bfloat16).reshape(B, H, W, Ce)

    # ---- depthwise 3x3 + folded BN + SiLU: 9 shifted whole-slab FMAs -------
    acc = jnp.zeros((B, H, W, Ce), jnp.float32)
    for k in range(9):
        dy, dx = divmod(k, 3)
        acc = acc + (hpad_ref[:, dy:dy + H, dx:dx + W, :].astype(jnp.float32)
                     * dw_w_ref[k, :])
    acc = acc + dw_b_ref[0, :]
    d = silu(acc).reshape(B, HW, Ce)                                        # f32

    # ---- squeeze & excite: GAP -> fc(SiLU) -> fc(sigmoid) -> channel scale --
    se = jnp.mean(d, axis=1)                                                # (B, Ce) f32
    g = silu(mm(se.astype(jnp.bfloat16), se_w1_ref, se_b1_ref))
    g = jax.nn.sigmoid(mm(g.astype(jnp.bfloat16), se_w2_ref, se_b2_ref))    # (B, Ce)
    d = d * g[:, None, :]

    # ---- project 1x1 + folded BN (linear) + residual ------------------------
    y = mm(d.reshape(B * HW, Ce).astype(jnp.bfloat16), proj_w_ref, proj_b_ref)
    r = y + s                                                               # (B*HW, Cs) f32

    # ---- head 1x1 conv + bn2 + SiLU ------------------------------------------
    hh = silu(mm(r.astype(jnp.bfloat16), head_w_ref, head_b_ref))           # (B*HW, Ch) f32

    # ---- global average pool + final fc --------------------------------------
    Ch = hh.shape[-1]
    feat = jnp.mean(hh.reshape(B, HW, Ch), axis=1)                          # (B, Ch) f32
    logits = mm(feat.astype(jnp.bfloat16), fc_w_ref, fc_b_ref)              # (B, ncls) f32
    o_ref[...] = logits.reshape(B, 1, logits.shape[-1])


def effnet_fused(patches, H, W, stem_w, stem_b, exp_w, exp_b, dw_w, dw_b,
                 se_w1, se_b1, se_w2, se_b2, proj_w, proj_b,
                 head_w, head_b, fc_w, fc_b):
    """patches: (N, H*W, 9*Cin) bf16.  Returns (N, n_classes) f32 logits."""
    N, HW, Kp = patches.shape
    Ce = exp_w.shape[1]
    ncls = fc_w.shape[1]
    bt = _pick_batch_tile(N, HW)

    def bf(a):
        return a.astype(jnp.bfloat16)

    def row(a):
        return a.astype(jnp.float32).reshape(1, -1)

    w_args = [bf(stem_w), row(stem_b),
              bf(exp_w), row(exp_b),
              dw_w.astype(jnp.float32), row(dw_b),
              bf(se_w1), row(se_b1),
              bf(se_w2), row(se_b2),
              bf(proj_w), row(proj_b),
              bf(head_w), row(head_b),
              bf(fc_w), row(fc_b)]

    out = pl.pallas_call(
        functools.partial(_effnet_fused_kernel, H=H, W=W),
        out_shape=jax.ShapeDtypeStruct((N, 1, ncls), jnp.float32),
        grid=(N // bt,),
        in_specs=[pl.BlockSpec((bt, HW, Kp), lambda b: (b, 0, 0))]
                 + [pl.BlockSpec(a.shape, lambda b: (0, 0)) for a in w_args],
        out_specs=pl.BlockSpec((bt, 1, ncls), lambda b: (b, 0, 0)),
        scratch_shapes=[pltpu.VMEM((bt, H + 2, W + 2, Ce), jnp.bfloat16)],
        compiler_params=pltpu.CompilerParams(
            dimension_semantics=("parallel",),
            vmem_limit_bytes=_vmem_limit_bytes()),
    )(patches, *w_args)
    return out.reshape(N, ncls)


# ---------------------------------------------------------------------------
# Plain-JAX glue: BN folding, parameter init, forward
# ---------------------------------------------------------------------------

def fold_bn(w, gamma, beta, mean, var, eps=1e-5):
    """Fold inference-mode BatchNorm (over the output-channel axis of w)."""
    scale = gamma / jnp.sqrt(var + eps)
    return w * scale, beta - mean * scale


def init_params(key, c_in=3, stem_c=32, exp_c=128, se_c=8, head_c=128,
                n_classes=10):
    keys = iter(jax.random.split(key, 40))

    def w(shape, scale=0.1):
        return scale * jax.random.normal(next(keys), shape, dtype=jnp.float32)

    def bn(c):
        return (1.0 + 0.1 * jax.random.normal(next(keys), (c,), jnp.float32),
                0.1 * jax.random.normal(next(keys), (c,), jnp.float32),
                0.1 * jax.random.normal(next(keys), (c,), jnp.float32),
                1.0 + 0.1 * jnp.abs(jax.random.normal(next(keys), (c,), jnp.float32)))

    p = {}
    p["stem_w"] = w((3, 3, c_in, stem_c));  p["stem_bn"] = bn(stem_c)
    p["exp_w"] = w((stem_c, exp_c));        p["exp_bn"] = bn(exp_c)
    p["dw_w"] = w((3, 3, exp_c));           p["dw_bn"] = bn(exp_c)
    p["se_w1"] = w((exp_c, se_c));          p["se_b1"] = w((se_c,))
    p["se_w2"] = w((se_c, exp_c));          p["se_b2"] = w((exp_c,))
    p["proj_w"] = w((exp_c, stem_c));       p["proj_bn"] = bn(stem_c)
    p["head_w"] = w((stem_c, head_c));      p["head_bn2"] = bn(head_c)      # bn2
    p["fc_w"] = w((head_c, n_classes));     p["fc_b"] = w((n_classes,))
    return p


def efficientnet_forward(x_nchw, p):
    """Matches EfficientNet.forward: feature = backbone(x); logit = fc(feature)."""
    x = jnp.transpose(x_nchw, (0, 2, 3, 1)).astype(jnp.float32)   # NCHW -> NHWC
    N, H_in, W_in, Cin = x.shape
    assert H_in % 2 == 0 and W_in % 2 == 0, "stem assumes even spatial dims"

    # stride-2 3x3 stem patches (layout plumbing only; compute stays in-kernel)
    patches, Ho, Wo = _stem_im2col(x)
    # TODO(synk): generalize to spatial sizes whose stem output isn't 8-aligned.
    assert Wo % 8 == 0 and (Ho * Wo) % 8 == 0, "kernel assumes 8-aligned spatial tiles"

    sw, sb = fold_bn(p["stem_w"].reshape(9 * Cin, -1), *p["stem_bn"])
    ew, eb = fold_bn(p["exp_w"], *p["exp_bn"])
    dw, db = fold_bn(p["dw_w"].reshape(9, -1), *p["dw_bn"])
    pw, pb = fold_bn(p["proj_w"], *p["proj_bn"])
    hw_, hb = fold_bn(p["head_w"], *p["head_bn2"])

    return effnet_fused(patches, Ho, Wo, sw, sb, ew, eb, dw, db,
                        p["se_w1"], p["se_b1"], p["se_w2"], p["se_b2"],
                        pw, pb, hw_, hb, p["fc_w"], p["fc_b"])


if __name__ == "__main__":
    key = jax.random.PRNGKey(0)
    pkey, xkey = jax.random.split(key)
    params = init_params(pkey)
    # PyTorch-style NCHW image input at small shapes.
    x = jax.random.normal(xkey, (2, 3, 16, 16), dtype=jnp.float32)
    logits = jax.jit(efficientnet_forward)(x, params)
    jax.block_until_ready(logits)
    assert logits.shape == (2, 10) and logits.dtype == jnp.float32
    print("KERNEL_OK")
</pallas_src>

<mosaic_0001>
module attributes {stable_mosaic.version = 11 : i64} {
  func.func @_effnet_fused_kernel(%arg0: i32, %arg1: memref<2x64x27xbf16, #tpu.memory_space<vmem>>, %arg2: memref<27x32xbf16, #tpu.memory_space<vmem>>, %arg3: memref<1x32xf32, #tpu.memory_space<vmem>>, %arg4: memref<32x128xbf16, #tpu.memory_space<vmem>>, %arg5: memref<1x128xf32, #tpu.memory_space<vmem>>, %arg6: memref<9x128xf32, #tpu.memory_space<vmem>>, %arg7: memref<1x128xf32, #tpu.memory_space<vmem>>, %arg8: memref<128x8xbf16, #tpu.memory_space<vmem>>, %arg9: memref<1x8xf32, #tpu.memory_space<vmem>>, %arg10: memref<8x128xbf16, #tpu.memory_space<vmem>>, %arg11: memref<1x128xf32, #tpu.memory_space<vmem>>, %arg12: memref<128x32xbf16, #tpu.memory_space<vmem>>, %arg13: memref<1x32xf32, #tpu.memory_space<vmem>>, %arg14: memref<32x128xbf16, #tpu.memory_space<vmem>>, %arg15: memref<1x128xf32, #tpu.memory_space<vmem>>, %arg16: memref<128x10xbf16, #tpu.memory_space<vmem>>, %arg17: memref<1x10xf32, #tpu.memory_space<vmem>>, %arg18: memref<2x1x10xf32, #tpu.memory_space<vmem>>, %arg19: memref<2x10x10x128xbf16, #tpu.memory_space<vmem>>) attributes {dimension_semantics = [#tpu.dimension_semantics<parallel>], iteration_bounds = array<i64: 1>, scalar_prefetch = 0 : i64, scratch_operands = 1 : i64, tpu.core_type = #tpu.core_type<tc>, window_params = [{transform_indices = @transform_0, window_bounds = array<i64: 2, 64, 27>}, {pipeline_mode = #tpu.pipeline_mode<synchronous>, transform_indices = @transform_1, window_bounds = array<i64: 27, 32>}, {pipeline_mode = #tpu.pipeline_mode<synchronous>, transform_indices = @transform_2, window_bounds = array<i64: 1, 32>}, {pipeline_mode = #tpu.pipeline_mode<synchronous>, transform_indices = @transform_3, window_bounds = array<i64: 32, 128>}, {pipeline_mode = #tpu.pipeline_mode<synchronous>, transform_indices = @transform_4, window_bounds = array<i64: 1, 128>}, {pipeline_mode = #tpu.pipeline_mode<synchronous>, transform_indices = @transform_5, window_bounds = array<i64: 9, 128>}, {pipeline_mode = #tpu.pipeline_mode<synchronous>, transform_indices = @transform_6, window_bounds = array<i64: 1, 128>}, {pipeline_mode = #tpu.pipeline_mode<synchronous>, transform_indices = @transform_7, window_bounds = array<i64: 128, 8>}, {pipeline_mode = #tpu.pipeline_mode<synchronous>, transform_indices = @transform_8, window_bounds = array<i64: 1, 8>}, {pipeline_mode = #tpu.pipeline_mode<synchronous>, transform_indices = @transform_9, window_bounds = array<i64: 8, 128>}, {pipeline_mode = #tpu.pipeline_mode<synchronous>, transform_indices = @transform_10, window_bounds = array<i64: 1, 128>}, {pipeline_mode = #tpu.pipeline_mode<synchronous>, transform_indices = @transform_11, window_bounds = array<i64: 128, 32>}, {pipeline_mode = #tpu.pipeline_mode<synchronous>, transform_indices = @transform_12, window_bounds = array<i64: 1, 32>}, {pipeline_mode = #tpu.pipeline_mode<synchronous>, transform_indices = @transform_13, window_bounds = array<i64: 32, 128>}, {pipeline_mode = #tpu.pipeline_mode<synchronous>, transform_indices = @transform_14, window_bounds = array<i64: 1, 128>}, {pipeline_mode = #tpu.pipeline_mode<synchronous>, transform_indices = @transform_15, window_bounds = array<i64: 128, 10>}, {pipeline_mode = #tpu.pipeline_mode<synchronous>, transform_indices = @transform_16, window_bounds = array<i64: 1, 10>}, {transform_indices = @transform_17, window_bounds = array<i64: 2, 1, 10>}]} {
    %c0 = arith.constant 0 : index
    %c0_0 = arith.constant 0 : index
    %c0_1 = arith.constant 0 : index
    %0 = vector.load %arg1[%c0, %c0_0, %c0_1] : memref<2x64x27xbf16, #tpu.memory_space<vmem>>, vector<2x64x27xbf16>
    %1 = vector.shape_cast %0 : vector<2x64x27xbf16> to vector<128x27xbf16>
    %c0_2 = arith.constant 0 : index
    %c0_3 = arith.constant 0 : index
    %2 = vector.load %arg2[%c0_2, %c0_3] : memref<27x32xbf16, #tpu.memory_space<vmem>>, vector<27x32xbf16>
    %cst = arith.constant dense<0.000000e+00> : vector<128x32xf32>
    %3 = tpu.matmul %1, %2, %cst {dimension_numbers = #tpu.dot_dimension_numbers<[1], [0], [0], [1], [0, 0, 1, 1], [], []>} : vector<128x27xbf16>, vector<27x32xbf16>, vector<128x32xf32> -> vector<128x32xf32>
    %c0_4 = arith.constant 0 : index
    %c0_5 = arith.constant 0 : index
    %4 = vector.load %arg3[%c0_4, %c0_5] : memref<1x32xf32, #tpu.memory_space<vmem>>, vector<1x32xf32>
    %5 = vector.broadcast %4 : vector<1x32xf32> to vector<128x32xf32>
    %6 = arith.addf %3, %5 : vector<128x32xf32>
    %7 = arith.negf %6 : vector<128x32xf32>
    %8 = math.exp %7 : vector<128x32xf32>
    %cst_6 = arith.constant 1.000000e+00 : f32
    %9 = vector.broadcast %cst_6 : f32 to vector<128x32xf32>
    %10 = arith.addf %9, %8 : vector<128x32xf32>
    %11 = arith.divf %9, %10 : vector<128x32xf32>
    %12 = arith.mulf %6, %11 : vector<128x32xf32>
    %13 = arith.truncf %12 : vector<128x32xf32> to vector<128x32xbf16>
    %c0_7 = arith.constant 0 : index
    %c0_8 = arith.constant 0 : index
    %14 = vector.load %arg4[%c0_7, %c0_8] : memref<32x128xbf16, #tpu.memory_space<vmem>>, vector<32x128xbf16>
    %cst_9 = arith.constant dense<0.000000e+00> : vector<128x128xf32>
    %15 = tpu.matmul %13, %14, %cst_9 {dimension_numbers = #tpu.dot_dimension_numbers<[1], [0], [0], [1], [0, 0, 1, 1], [], []>} : vector<128x32xbf16>, vector<32x128xbf16>, vector<128x128xf32> -> vector<128x128xf32>
    %c0_10 = arith.constant 0 : index
    %c0_11 = arith.constant 0 : index
    %16 = vector.load %arg5[%c0_10, %c0_11] : memref<1x128xf32, #tpu.memory_space<vmem>>, vector<1x128xf32>
    %17 = vector.broadcast %16 : vector<1x128xf32> to vector<128x128xf32>
    %18 = arith.addf %15, %17 : vector<128x128xf32>
    %19 = arith.negf %18 : vector<128x128xf32>
    %20 = math.exp %19 : vector<128x128xf32>
    %cst_12 = arith.constant 1.000000e+00 : f32
    %21 = vector.broadcast %cst_12 : f32 to vector<128x128xf32>
    %22 = arith.addf %21, %20 : vector<128x128xf32>
    %23 = arith.divf %21, %22 : vector<128x128xf32>
    %24 = arith.mulf %18, %23 : vector<128x128xf32>
    %cst_13 = arith.constant 0.000000e+00 : bf16
    %25 = vector.broadcast %cst_13 : bf16 to vector<2x10x1x128xbf16>
    %c0_14 = arith.constant 0 : index
    %c0_15 = arith.constant 0 : index
    %c0_16 = arith.constant 0 : index
    %c0_17 = arith.constant 0 : index
    %26 = vector.load %arg19[%c0_14, %c0_15, %c0_16, %c0_17] : memref<2x10x10x128xbf16, #tpu.memory_space<vmem>>, vector<2x10x1x128xbf16>
    tpu.vector_store %arg19[%c0_14, %c0_15, %c0_16, %c0_17], %25 {strides = array<i32>} : memref<2x10x10x128xbf16, #tpu.memory_space<vmem>>, vector<2x10x1x128xbf16>,
    %cst_18 = arith.constant 0.000000e+00 : bf16
    %27 = vector.broadcast %cst_18 : bf16 to vector<2x10x1x128xbf16>
    %c0_19 = arith.constant 0 : index
    %c0_20 = arith.constant 0 : index
    %c9 = arith.constant 9 : index
    %c0_21 = arith.constant 0 : index
    %28 = vector.load %arg19[%c0_19, %c0_20, %c9, %c0_21] : memref<2x10x10x128xbf16, #tpu.memory_space<vmem>>, vector<2x10x1x128xbf16>
    tpu.vector_store %arg19[%c0_19, %c0_20, %c9, %c0_21], %27 {strides = array<i32>} : memref<2x10x10x128xbf16, #tpu.memory_space<vmem>>, vector<2x10x1x128xbf16>,
    %cst_22 = arith.constant 0.000000e+00 : bf16
    %29 = vector.broadcast %cst_22 : bf16 to vector<2x1x10x128xbf16>
    %c0_23 = arith.constant 0 : index
    %c0_24 = arith.constant 0 : index
    %c0_25 = arith.constant 0 : index
    %c0_26 = arith.constant 0 : index
    %30 = vector.load %arg19[%c0_23, %c0_24, %c0_25, %c0_26] : memref<2x10x10x128xbf16, #tpu.memory_space<vmem>>, vector<2x1x10x128xbf16>
    tpu.vector_store %arg19[%c0_23, %c0_24, %c0_25, %c0_26], %29 {strides = array<i32>} : memref<2x10x10x128xbf16, #tpu.memory_space<vmem>>, vector<2x1x10x128xbf16>,
    %cst_27 = arith.constant 0.000000e+00 : bf16
    %31 = vector.broadcast %cst_27 : bf16 to vector<2x1x10x128xbf16>
    %c0_28 = arith.constant 0 : index
    %c9_29 = arith.constant 9 : index
    %c0_30 = arith.constant 0 : index
    %c0_31 = arith.constant 0 : index
    %32 = vector.load %arg19[%c0_28, %c9_29, %c0_30, %c0_31] : memref<2x10x10x128xbf16, #tpu.memory_space<vmem>>, vector<2x1x10x128xbf16>
    tpu.vector_store %arg19[%c0_28, %c9_29, %c0_30, %c0_31], %31 {strides = array<i32>} : memref<2x10x10x128xbf16, #tpu.memory_space<vmem>>, vector<2x1x10x128xbf16>,
    %33 = arith.truncf %24 : vector<128x128xf32> to vector<128x128xbf16>
    %34 = vector.shape_cast %33 : vector<128x128xbf16> to vector<2x8x8x128xbf16>
    %c0_32 = arith.constant 0 : index
    %c1 = arith.constant 1 : index
    %c1_33 = arith.constant 1 : index
    %c0_34 = arith.constant 0 : index
    %35 = vector.load %arg19[%c0_32, %c1, %c1_33, %c0_34] : memref<2x10x10x128xbf16, #tpu.memory_space<vmem>>, vector<2x8x8x128xbf16>
    tpu.vector_store %arg19[%c0_32, %c1, %c1_33, %c0_34], %34 {strides = array<i32>} : memref<2x10x10x128xbf16, #tpu.memory_space<vmem>>, vector<2x8x8x128xbf16>,
    %cst_35 = arith.constant 0.000000e+00 : f32
    %36 = vector.broadcast %cst_35 : f32 to vector<2x8x8x128xf32>
    %c0_36 = arith.constant 0 : index
    %c0_37 = arith.constant 0 : index
    %c0_38 = arith.constant 0 : index
    %c0_39 = arith.constant 0 : index
    %37 = vector.load %arg19[%c0_36, %c0_37, %c0_38, %c0_39] : memref<2x10x10x128xbf16, #tpu.memory_space<vmem>>, vector<2x8x8x128xbf16>
    %38 = arith.extf %37 : vector<2x8x8x128xbf16> to vector<2x8x8x128xf32>
    %c0_40 = arith.constant 0 : index
    %c0_41 = arith.constant 0 : index
    %39 = vector.load %arg6[%c0_40, %c0_41] : memref<9x128xf32, #tpu.memory_space<vmem>>, vector<1x128xf32>
    %40 = vector.shape_cast %39 : vector<1x128xf32> to vector<128xf32>
    %41 = vector.shape_cast %40 : vector<128xf32> to vector<1x1x1x128xf32>
    %42 = vector.broadcast %41 : vector<1x1x1x128xf32> to vector<2x8x8x128xf32>
    %43 = arith.mulf %38, %42 : vector<2x8x8x128xf32>
    %44 = arith.addf %36, %43 : vector<2x8x8x128xf32>
    %c0_42 = arith.constant 0 : index
    %c0_43 = arith.constant 0 : index
    %c1_44 = arith.constant 1 : index
    %c0_45 = arith.constant 0 : index
    %45 = vector.load %arg19[%c0_42, %c0_43, %c1_44, %c0_45] : memref<2x10x10x128xbf16, #tpu.memory_space<vmem>>, vector<2x8x8x128xbf16>
    %46 = arith.extf %45 : vector<2x8x8x128xbf16> to vector<2x8x8x128xf32>
    %c1_46 = arith.constant 1 : index
    %c0_47 = arith.constant 0 : index
    %47 = vector.load %arg6[%c1_46, %c0_47] : memref<9x128xf32, #tpu.memory_space<vmem>>, vector<1x128xf32>
    %48 = vector.shape_cast %47 : vector<1x128xf32> to vector<128xf32>
    %49 = vector.shape_cast %48 : vector<128xf32> to vector<1x1x1x128xf32>
    %50 = vector.broadcast %49 : vector<1x1x1x128xf32> to vector<2x8x8x128xf32>
    %51 = arith.mulf %46, %50 : vector<2x8x8x128xf32>
    %52 = arith.addf %44, %51 : vector<2x8x8x128xf32>
    %c0_48 = arith.constant 0 : index
    %c0_49 = arith.constant 0 : index
    %c2 = arith.constant 2 : index
    %c0_50 = arith.constant 0 : index
    %53 = vector.load %arg19[%c0_48, %c0_49, %c2, %c0_50] : memref<2x10x10x128xbf16, #tpu.memory_space<vmem>>, vector<2x8x8x128xbf16>
    %54 = arith.extf %53 : vector<2x8x8x128xbf16> to vector<2x8x8x128xf32>
    %c2_51 = arith.constant 2 : index
    %c0_52 = arith.constant 0 : index
    %55 = vector.load %arg6[%c2_51, %c0_52] : memref<9x128xf32, #tpu.memory_space<vmem>>, vector<1x128xf32>
    %56 = vector.shape_cast %55 : vector<1x128xf32> to vector<128xf32>
    %57 = vector.shape_cast %56 : vector<128xf32> to vector<1x1x1x128xf32>
    %58 = vector.broadcast %57 : vector<1x1x1x128xf32> to vector<2x8x8x128xf32>
    %59 = arith.mulf %54, %58 : vector<2x8x8x128xf32>
    %60 = arith.addf %52, %59 : vector<2x8x8x128xf32>
    %c0_53 = arith.constant 0 : index
    %c1_54 = arith.constant 1 : index
    %c0_55 = arith.constant 0 : index
    %c0_56 = arith.constant 0 : index
    %61 = vector.load %arg19[%c0_53, %c1_54, %c0_55, %c0_56] : memref<2x10x10x128xbf16, #tpu.memory_space<vmem>>, vector<2x8x8x128xbf16>
    %62 = arith.extf %61 : vector<2x8x8x128xbf16> to vector<2x8x8x128xf32>
    %c3 = arith.constant 3 : index
    %c0_57 = arith.constant 0 : index
    %63 = vector.load %arg6[%c3, %c0_57] : memref<9x128xf32, #tpu.memory_space<vmem>>, vector<1x128xf32>
    %64 = vector.shape_cast %63 : vector<1x128xf32> to vector<128xf32>
    %65 = vector.shape_cast %64 : vector<128xf32> to vector<1x1x1x128xf32>
    %66 = vector.broadcast %65 : vector<1x1x1x128xf32> to vector<2x8x8x128xf32>
    %67 = arith.mulf %62, %66 : vector<2x8x8x128xf32>
    %68 = arith.addf %60, %67 : vector<2x8x8x128xf32>
    %c0_58 = arith.constant 0 : index
    %c1_59 = arith.constant 1 : index
    %c1_60 = arith.constant 1 : index
    %c0_61 = arith.constant 0 : index
    %69 = vector.load %arg19[%c0_58, %c1_59, %c1_60, %c0_61] : memref<2x10x10x128xbf16, #tpu.memory_space<vmem>>, vector<2x8x8x128xbf16>
    %70 = arith.extf %69 : vector<2x8x8x128xbf16> to vector<2x8x8x128xf32>
    %c4 = arith.constant 4 : index
    %c0_62 = arith.constant 0 : index
    %71 = vector.load %arg6[%c4, %c0_62] : memref<9x128xf32, #tpu.memory_space<vmem>>, vector<1x128xf32>
    %72 = vector.shape_cast %71 : vector<1x128xf32> to vector<128xf32>
    %73 = vector.shape_cast %72 : vector<128xf32> to vector<1x1x1x128xf32>
    %74 = vector.broadcast %73 : vector<1x1x1x128xf32> to vector<2x8x8x128xf32>
    %75 = arith.mulf %70, %74 : vector<2x8x8x128xf32>
    %76 = arith.addf %68, %75 : vector<2x8x8x128xf32>
    %c0_63 = arith.constant 0 : index
    %c1_64 = arith.constant 1 : index
    %c2_65 = arith.constant 2 : index
    %c0_66 = arith.constant 0 : index
    %77 = vector.load %arg19[%c0_63, %c1_64, %c2_65, %c0_66] : memref<2x10x10x128xbf16, #tpu.memory_space<vmem>>, vector<2x8x8x128xbf16>
    %78 = arith.extf %77 : vector<2x8x8x128xbf16> to vector<2x8x8x128xf32>
    %c5 = arith.constant 5 : index
    %c0_67 = arith.constant 0 : index
    %79 = vector.load %arg6[%c5, %c0_67] : memref<9x128xf32, #tpu.memory_space<vmem>>, vector<1x128xf32>
    %80 = vector.shape_cast %79 : vector<1x128xf32> to vector<128xf32>
    %81 = vector.shape_cast %80 : vector<128xf32> to vector<1x1x1x128xf32>
    %82 = vector.broadcast %81 : vector<1x1x1x128xf32> to vector<2x8x8x128xf32>
    %83 = arith.mulf %78, %82 : vector<2x8x8x128xf32>
    %84 = arith.addf %76, %83 : vector<2x8x8x128xf32>
    %c0_68 = arith.constant 0 : index
    %c2_69 = arith.constant 2 : index
    %c0_70 = arith.constant 0 : index
    %c0_71 = arith.constant 0 : index
    %85 = vector.load %arg19[%c0_68, %c2_69, %c0_70, %c0_71] : memref<2x10x10x128xbf16, #tpu.memory_space<vmem>>, vector<2x8x8x128xbf16>
    %86 = arith.extf %85 : vector<2x8x8x128xbf16> to vector<2x8x8x128xf32>
    %c6 = arith.constant 6 : index
    %c0_72 = arith.constant 0 : index
    %87 = vector.load %arg6[%c6, %c0_72] : memref<9x128xf32, #tpu.memory_space<vmem>>, vector<1x128xf32>
    %88 = vector.shape_cast %87 : vector<1x128xf32> to vector<128xf32>
    %89 = vector.shape_cast %88 : vector<128xf32> to vector<1x1x1x128xf32>
    %90 = vector.broadcast %89 : vector<1x1x1x128xf32> to vector<2x8x8x128xf32>
    %91 = arith.mulf %86, %90 : vector<2x8x8x128xf32>
    %92 = arith.addf %84, %91 : vector<2x8x8x128xf32>
    %c0_73 = arith.constant 0 : index
    %c2_74 = arith.constant 2 : index
    %c1_75 = arith.constant 1 : index
    %c0_76 = arith.constant 0 : index
    %93 = vector.load %arg19[%c0_73, %c2_74, %c1_75, %c0_76] : memref<2x10x10x128xbf16, #tpu.memory_space<vmem>>, vector<2x8x8x128xbf16>
    %94 = arith.extf %93 : vector<2x8x8x128xbf16> to vector<2x8x8x128xf32>
    %c7 = arith.constant 7 : index
    %c0_77 = arith.constant 0 : index
    %95 = vector.load %arg6[%c7, %c0_77] : memref<9x128xf32, #tpu.memory_space<vmem>>, vector<1x128xf32>
    %96 = vector.shape_cast %95 : vector<1x128xf32> to vector<128xf32>
    %97 = vector.shape_cast %96 : vector<128xf32> to vector<1x1x1x128xf32>
    %98 = vector.broadcast %97 : vector<1x1x1x128xf32> to vector<2x8x8x128xf32>
    %99 = arith.mulf %94, %98 : vector<2x8x8x128xf32>
    %100 = arith.addf %92, %99 : vector<2x8x8x128xf32>
    %c0_78 = arith.constant 0 : index
    %c2_79 = arith.constant 2 : index
    %c2_80 = arith.constant 2 : index
    %c0_81 = arith.constant 0 : index
    %101 = vector.load %arg19[%c0_78, %c2_79, %c2_80, %c0_81] : memref<2x10x10x128xbf16, #tpu.memory_space<vmem>>, vector<2x8x8x128xbf16>
    %102 = arith.extf %101 : vector<2x8x8x128xbf16> to vector<2x8x8x128xf32>
    %c8 = arith.constant 8 : index
    %c0_82 = arith.constant 0 : index
    %103 = vector.load %arg6[%c8, %c0_82] : memref<9x128xf32, #tpu.memory_space<vmem>>, vector<1x128xf32>
    %104 = vector.shape_cast %103 : vector<1x128xf32> to vector<128xf32>
    %105 = vector.shape_cast %104 : vector<128xf32> to vector<1x1x1x128xf32>
    %106 = vector.broadcast %105 : vector<1x1x1x128xf32> to vector<2x8x8x128xf32>
    %107 = arith.mulf %102, %106 : vector<2x8x8x128xf32>
    %108 = arith.addf %100, %107 : vector<2x8x8x128xf32>
    %c0_83 = arith.constant 0 : index
    %c0_84 = arith.constant 0 : index
    %109 = vector.load %arg7[%c0_83, %c0_84] : memref<1x128xf32, #tpu.memory_space<vmem>>, vector<1x128xf32>
    %110 = vector.shape_cast %109 : vector<1x128xf32> to vector<128xf32>
    %111 = vector.shape_cast %110 : vector<128xf32> to vector<1x1x1x128xf32>
    %112 = vector.broadcast %111 : vector<1x1x1x128xf32> to vector<2x8x8x128xf32>
    %113 = arith.addf %108, %112 : vector<2x8x8x128xf32>
    %114 = arith.negf %113 : vector<2x8x8x128xf32>
    %115 = math.exp %114 : vector<2x8x8x128xf32>
    %cst_85 = arith.constant 1.000000e+00 : f32
    %116 = vector.broadcast %cst_85 : f32 to vector<2x8x8x128xf32>
    %117 = arith.addf %116, %115 : vector<2x8x8x128xf32>
    %118 = arith.divf %116, %117 : vector<2x8x8x128xf32>
    %119 = arith.mulf %113, %118 : vector<2x8x8x128xf32>
    %120 = vector.shape_cast %119 : vector<2x8x8x128xf32> to vector<2x64x128xf32>
    %cst_86 = arith.constant dense<0.000000e+00> : vector<2x128xf32>
    %121 = vector.multi_reduction <add>, %120, %cst_86 [1] : vector<2x64x128xf32> to vector<2x128xf32>
    %cst_87 = arith.constant 6.400000e+01 : f32
    %122 = vector.broadcast %cst_87 : f32 to vector<2x128xf32>
    %123 = arith.divf %121, %122 : vector<2x128xf32>
    %124 = arith.truncf %123 : vector<2x128xf32> to vector<2x128xbf16>
    %c0_88 = arith.constant 0 : index
    %c0_89 = arith.constant 0 : index
    %125 = vector.load %arg8[%c0_88, %c0_89] : memref<128x8xbf16, #tpu.memory_space<vmem>>, vector<128x8xbf16>
    %cst_90 = arith.constant dense<0.000000e+00> : vector<2x8xf32>
    %126 = tpu.matmul %124, %125, %cst_90 {dimension_numbers = #tpu.dot_dimension_numbers<[1], [0], [0], [1], [0, 0, 1, 1], [], []>} : vector<2x128xbf16>, vector<128x8xbf16>, vector<2x8xf32> -> vector<2x8xf32>
    %c0_91 = arith.constant 0 : index
    %c0_92 = arith.constant 0 : index
    %127 = vector.load %arg9[%c0_91, %c0_92] : memref<1x8xf32, #tpu.memory_space<vmem>>, vector<1x8xf32>
    %128 = vector.broadcast %127 : vector<1x8xf32> to vector<2x8xf32>
    %129 = arith.addf %126, %128 : vector<2x8xf32>
    %130 = arith.negf %129 : vector<2x8xf32>
    %131 = math.exp %130 : vector<2x8xf32>
    %cst_93 = arith.constant 1.000000e+00 : f32
    %132 = vector.broadcast %cst_93 : f32 to vector<2x8xf32>
    %133 = arith.addf %132, %131 : vector<2x8xf32>
    %134 = arith.divf %132, %133 : vector<2x8xf32>
    %135 = arith.mulf %129, %134 : vector<2x8xf32>
    %136 = arith.truncf %135 : vector<2x8xf32> to vector<2x8xbf16>
    %c0_94 = arith.constant 0 : index
    %c0_95 = arith.constant 0 : index
    %137 = vector.load %arg10[%c0_94, %c0_95] : memref<8x128xbf16, #tpu.memory_space<vmem>>, vector<8x128xbf16>
    %cst_96 = arith.constant dense<0.000000e+00> : vector<2x128xf32>
    %138 = tpu.matmul %136, %137, %cst_96 {dimension_numbers = #tpu.dot_dimension_numbers<[1], [0], [0], [1], [0, 0, 1, 1], [], []>} : vector<2x8xbf16>, vector<8x128xbf16>, vector<2x128xf32> -> vector<2x128xf32>
    %c0_97 = arith.constant 0 : index
    %c0_98 = arith.constant 0 : index
    %139 = vector.load %arg11[%c0_97, %c0_98] : memref<1x128xf32, #tpu.memory_space<vmem>>, vector<1x128xf32>
    %140 = vector.broadcast %139 : vector<1x128xf32> to vector<2x128xf32>
    %141 = arith.addf %138, %140 : vector<2x128xf32>
    %142 = arith.negf %141 : vector<2x128xf32>
    %143 = math.exp %142 : vector<2x128xf32>
    %cst_99 = arith.constant 1.000000e+00 : f32
    %144 = vector.broadcast %cst_99 : f32 to vector<2x128xf32>
    %145 = arith.addf %144, %143 : vector<2x128xf32>
    %146 = arith.divf %144, %145 : vector<2x128xf32>
    %147 = vector.shape_cast %146 : vector<2x128xf32> to vector<2x1x128xf32>
    %148 = vector.broadcast %147 : vector<2x1x128xf32> to vector<2x64x128xf32>
    %149 = arith.mulf %120, %148 : vector<2x64x128xf32>
    %150 = vector.shape_cast %149 : vector<2x64x128xf32> to vector<128x128xf32>
    %151 = arith.truncf %150 : vector<128x128xf32> to vector<128x128xbf16>
    %c0_100 = arith.constant 0 : index
    %c0_101 = arith.constant 0 : index
    %152 = vector.load %arg12[%c0_100, %c0_101] : memref<128x32xbf16, #tpu.memory_space<vmem>>, vector<128x32xbf16>
    %cst_102 = arith.constant dense<0.000000e+00> : vector<128x32xf32>
    %153 = tpu.matmul %151, %152, %cst_102 {dimension_numbers = #tpu.dot_dimension_numbers<[1], [0], [0], [1], [0, 0, 1, 1], [], []>} : vector<128x128xbf16>, vector<128x32xbf16>, vector<128x32xf32> -> vector<128x32xf32>
    %c0_103 = arith.constant 0 : index
    %c0_104 = arith.constant 0 : index
    %154 = vector.load %arg13[%c0_103, %c0_104] : memref<1x32xf32, #tpu.memory_space<vmem>>, vector<1x32xf32>
    %155 = vector.broadcast %154 : vector<1x32xf32> to vector<128x32xf32>
    %156 = arith.addf %153, %155 : vector<128x32xf32>
    %157 = arith.addf %156, %12 : vector<128x32xf32>
    %158 = arith.truncf %157 : vector<128x32xf32> to vector<128x32xbf16>
    %c0_105 = arith.constant 0 : index
    %c0_106 = arith.constant 0 : index
    %159 = vector.load %arg14[%c0_105, %c0_106] : memref<32x128xbf16, #tpu.memory_space<vmem>>, vector<32x128xbf16>
    %cst_107 = arith.constant dense<0.000000e+00> : vector<128x128xf32>
    %160 = tpu.matmul %158, %159, %cst_107 {dimension_numbers = #tpu.dot_dimension_numbers<[1], [0], [0], [1], [0, 0, 1, 1], [], []>} : vector<128x32xbf16>, vector<32x128xbf16>, vector<128x128xf32> -> vector<128x128xf32>
    %c0_108 = arith.constant 0 : index
    %c0_109 = arith.constant 0 : index
    %161 = vector.load %arg15[%c0_108, %c0_109] : memref<1x128xf32, #tpu.memory_space<vmem>>, vector<1x128xf32>
    %162 = vector.broadcast %161 : vector<1x128xf32> to vector<128x128xf32>
    %163 = arith.addf %160, %162 : vector<128x128xf32>
    %164 = arith.negf %163 : vector<128x128xf32>
    %165 = math.exp %164 : vector<128x128xf32>
    %cst_110 = arith.constant 1.000000e+00 : f32
    %166 = vector.broadcast %cst_110 : f32 to vector<128x128xf32>
    %167 = arith.addf %166, %165 : vector<128x128xf32>
    %168 = arith.divf %166, %167 : vector<128x128xf32>
    %169 = arith.mulf %163, %168 : vector<128x128xf32>
    %170 = vector.shape_cast %169 : vector<128x128xf32> to vector<2x64x128xf32>
    %cst_111 = arith.constant dense<0.000000e+00> : vector<2x128xf32>
    %171 = vector.multi_reduction <add>, %170, %cst_111 [1] : vector<2x64x128xf32> to vector<2x128xf32>
    %cst_112 = arith.constant 6.400000e+01 : f32
    %172 = vector.broadcast %cst_112 : f32 to vector<2x128xf32>
    %173 = arith.divf %171, %172 : vector<2x128xf32>
    %174 = arith.truncf %173 : vector<2x128xf32> to vector<2x128xbf16>
    %c0_113 = arith.constant 0 : index
    %c0_114 = arith.constant 0 : index
    %175 = vector.load %arg16[%c0_113, %c0_114] : memref<128x10xbf16, #tpu.memory_space<vmem>>, vector<128x10xbf16>
    %cst_115 = arith.constant dense<0.000000e+00> : vector<2x10xf32>
    %176 = tpu.matmul %174, %175, %cst_115 {dimension_numbers = #tpu.dot_dimension_numbers<[1], [0], [0], [1], [0, 0, 1, 1], [], []>} : vector<2x128xbf16>, vector<128x10xbf16>, vector<2x10xf32> -> vector<2x10xf32>
    %c0_116 = arith.constant 0 : index
    %c0_117 = arith.constant 0 : index
    %177 = vector.load %arg17[%c0_116, %c0_117] : memref<1x10xf32, #tpu.memory_space<vmem>>, vector<1x10xf32>
    %178 = vector.broadcast %177 : vector<1x10xf32> to vector<2x10xf32>
    %179 = arith.addf %176, %178 : vector<2x10xf32>
    %180 = vector.shape_cast %179 : vector<2x10xf32> to vector<2x1x10xf32>
    %c0_118 = arith.constant 0 : index
    %c0_119 = arith.constant 0 : index
    %c0_120 = arith.constant 0 : index
    %181 = vector.load %arg18[%c0_118, %c0_119, %c0_120] : memref<2x1x10xf32, #tpu.memory_space<vmem>>, vector<2x1x10xf32>
    tpu.vector_store %arg18[%c0_118, %c0_119, %c0_120], %180 {strides = array<i32>} : memref<2x1x10xf32, #tpu.memory_space<vmem>>, vector<2x1x10xf32>,
    return
  }
  func.func @transform_0(%arg0: i32) -> (i32, i32, i32) {
    %c0_i32 = arith.constant 0 : i32
    %c0_i32_0 = arith.constant 0 : i32
    %c0_i32_1 = arith.constant 0 : i32
    return %arg0, %c0_i32, %c0_i32_0 : i32, i32, i32
  }
  func.func @transform_1(%arg0: i32) -> (i32, i32) {
    %c0_i32 = arith.constant 0 : i32
    %c0_i32_0 = arith.constant 0 : i32
    %c0_i32_1 = arith.constant 0 : i32
    return %c0_i32, %c0_i32_0 : i32, i32
  }
  func.func @transform_2(%arg0: i32) -> (i32, i32) {
    %c0_i32 = arith.constant 0 : i32
    %c0_i32_0 = arith.constant 0 : i32
    %c0_i32_1 = arith.constant 0 : i32
    return %c0_i32, %c0_i32_0 : i32, i32
  }
  func.func @transform_3(%arg0: i32) -> (i32, i32) {
    %c0_i32 = arith.constant 0 : i32
    %c0_i32_0 = arith.constant 0 : i32
    %c0_i32_1 = arith.constant 0 : i32
    return %c0_i32, %c0_i32_0 : i32, i32
  }
  func.func @transform_4(%arg0: i32) -> (i32, i32) {
    %c0_i32 = arith.constant 0 : i32
    %c0_i32_0 = arith.constant 0 : i32
    %c0_i32_1 = arith.constant 0 : i32
    return %c0_i32, %c0_i32_0 : i32, i32
  }
  func.func @transform_5(%arg0: i32) -> (i32, i32) {
    %c0_i32 = arith.constant 0 : i32
    %c0_i32_0 = arith.constant 0 : i32
    %c0_i32_1 = arith.constant 0 : i32
    return %c0_i32, %c0_i32_0 : i32, i32
  }
  func.func @transform_6(%arg0: i32) -> (i32, i32) {
    %c0_i32 = arith.constant 0 : i32
    %c0_i32_0 = arith.constant 0 : i32
    %c0_i32_1 = arith.constant 0 : i32
    return %c0_i32, %c0_i32_0 : i32, i32
  }
  func.func @transform_7(%arg0: i32) -> (i32, i32) {
    %c0_i32 = arith.constant 0 : i32
    %c0_i32_0 = arith.constant 0 : i32
    %c0_i32_1 = arith.constant 0 : i32
    return %c0_i32, %c0_i32_0 : i32, i32
  }
  func.func @transform_8(%arg0: i32) -> (i32, i32) {
    %c0_i32 = arith.constant 0 : i32
    %c0_i32_0 = arith.constant 0 : i32
    %c0_i32_1 = arith.constant 0 : i32
    return %c0_i32, %c0_i32_0 : i32, i32
  }
  func.func @transform_9(%arg0: i32) -> (i32, i32) {
    %c0_i32 = arith.constant 0 : i32
    %c0_i32_0 = arith.constant 0 : i32
    %c0_i32_1 = arith.constant 0 : i32
    return %c0_i32, %c0_i32_0 : i32, i32
  }
  func.func @transform_10(%arg0: i32) -> (i32, i32) {
    %c0_i32 = arith.constant 0 : i32
    %c0_i32_0 = arith.constant 0 : i32
    %c0_i32_1 = arith.constant 0 : i32
    return %c0_i32, %c0_i32_0 : i32, i32
  }
  func.func @transform_11(%arg0: i32) -> (i32, i32) {
    %c0_i32 = arith.constant 0 : i32
    %c0_i32_0 = arith.constant 0 : i32
    %c0_i32_1 = arith.constant 0 : i32
    return %c0_i32, %c0_i32_0 : i32, i32
  }
  func.func @transform_12(%arg0: i32) -> (i32, i32) {
    %c0_i32 = arith.constant 0 : i32
    %c0_i32_0 = arith.constant 0 : i32
    %c0_i32_1 = arith.constant 0 : i32
    return %c0_i32, %c0_i32_0 : i32, i32
  }
  func.func @transform_13(%arg0: i32) -> (i32, i32) {
    %c0_i32 = arith.constant 0 : i32
    %c0_i32_0 = arith.constant 0 : i32
    %c0_i32_1 = arith.constant 0 : i32
    return %c0_i32, %c0_i32_0 : i32, i32
  }
  func.func @transform_14(%arg0: i32) -> (i32, i32) {
    %c0_i32 = arith.constant 0 : i32
    %c0_i32_0 = arith.constant 0 : i32
    %c0_i32_1 = arith.constant 0 : i32
    return %c0_i32, %c0_i32_0 : i32, i32
  }
  func.func @transform_15(%arg0: i32) -> (i32, i32) {
    %c0_i32 = arith.constant 0 : i32
    %c0_i32_0 = arith.constant 0 : i32
    %c0_i32_1 = arith.constant 0 : i32
    return %c0_i32, %c0_i32_0 : i32, i32
  }
  func.func @transform_16(%arg0: i32) -> (i32, i32) {
    %c0_i32 = arith.constant 0 : i32
    %c0_i32_0 = arith.constant 0 : i32
    %c0_i32_1 = arith.constant 0 : i32
    return %c0_i32, %c0_i32_0 : i32, i32
  }
  func.func @transform_17(%arg0: i32) -> (i32, i32, i32) {
    %c0_i32 = arith.constant 0 : i32
    %c0_i32_0 = arith.constant 0 : i32
    %c0_i32_1 = arith.constant 0 : i32
    return %arg0, %c0_i32, %c0_i32_0 : i32, i32, i32
  }
}

</mosaic_0001>

<bundles_post_ra>
// kernel: efficientnet_forward.1
= control target key start
LH: loop header
LB: loop body
LE: loop exit
PB: predicated region body
PF: predicated region fallthrough
CT: control target
= control target key end

     0   :  { %s7793_s0 = inlined_call_operand.vmem [shape: bf16[2,64,27], index: 0, kind: input, shape index: {}]   ;;  %s7794_s1 = inlined_call_operand.vmem [shape: bf16[27,32], index: 1, kind: input, shape index: {}]   ;;  %s7795_s2 = inlined_call_operand.vmem [shape: f32[1,32], index: 2, kind: input, shape index: {}]   ;;  %s7796_s3 = inlined_call_operand.vmem [shape: bf16[32,128], index: 3, kind: input, shape index: {}]   ;;  %s7797_s4 = inlined_call_operand.vmem [shape: f32[1,128], index: 4, kind: input, shape index: {}]   ;;  %s7798_s5 = inlined_call_operand.vmem [shape: f32[9,128], index: 5, kind: input, shape index: {}]   ;;  %s7799_s6 = inlined_call_operand.vmem [shape: f32[1,128], index: 6, kind: input, shape index: {}]   ;;  %s7800_s7 = inlined_call_operand.vmem [shape: bf16[128,8], index: 7, kind: input, shape index: {}]   ;;  %s7801_s8 = inlined_call_operand.vmem [shape: f32[1,8], index: 8, kind: input, shape index: {}]   ;;  %s7802_s9 = inlined_call_operand.vmem [shape: bf16[8,128], index: 9, kind: input, shape index: {}]   ;;  %s7803_s10 = inlined_call_operand.vmem [shape: f32[1,128], index: 10, kind: input, shape index: {}]   ;;  %s7804_s11 = inlined_call_operand.vmem [shape: bf16[128,32], index: 11, kind: input, shape index: {}]   ;;  %s7805_s12 = inlined_call_operand.vmem [shape: f32[1,32], index: 12, kind: input, shape index: {}]   ;;  %s7806_s13 = inlined_call_operand.vmem [shape: bf16[32,128], index: 13, kind: input, shape index: {}]   ;;  %s7807_s14 = inlined_call_operand.vmem [shape: f32[1,128], index: 14, kind: input, shape index: {}]   ;;  %s7808_s15 = inlined_call_operand.vmem [shape: bf16[128,10], index: 15, kind: input, shape index: {}]   ;;  %s7809_s16 = inlined_call_operand.vmem [shape: f32[1,10], index: 16, kind: input, shape index: {}]   ;;  %s7810_s17 = inlined_call_operand.hbm [shape: f32[2,1,10], index: 17, kind: output, shape index: {}]  }
   0x1   :  { %7927 = sst [smem:[#allocation51_spill]] %s7793_s0 }
   0x2   :  { %7928 = sst [smem:[#allocation52_spill]] %s7794_s1 }
   0x3   :  { %s7929_s26 = sld [smem:[#allocation52_spill]]  ;;  %vm158_vm0 = vcmask 1044480   ;;  %vm159_vm1 = vcmask 1045504   ;;  %v4491_v3 = vmov 65535  }
   0x4   :  { %v160_v4 = vsel %vm158_vm0, 4294967295, %v4491_v3 }
   0x5   :  { %v161_v5 = vsel %vm159_vm1, %v160_v4, 0 }
   0x9   :  { %v3929_v0 = vld [vmem:[%s7929_s26 + $0x8] sm:$0xf]  ;;  %v4143_v1 = vld [vmem:[%s7929_s26 + $0x8] sm:$0x30]  ;;  %v4142_v7 = vld [vmem:[%s7929_s26] sm:$0xff] }
   0xa   :  { %v3930_v2 = vor.u32 %v4143_v1, %v3929_v0 }
   0xc   :  { %v163_v6 = vand.u32 %v3930_v2, %v161_v5 }
   0xe   :  { %171 = vmatpush.bf16.msra.mxu0 %v163_v6 }
   0xf   :  { %22 = vsyncpa [#allocation4], 0  ;;  %s7930_s19 = sld [smem:[#allocation51_spill]]  ;;  %vm133_vm2 = vcmask 220160   ;;  %v4624_v16 = vld [vmem:[%s7795_s2] ss:$0 sm:$0xff] }
  0x10   :  { %v4145_v20 = vld [vmem:[%s7796_s3 + $0x8] sm:$0xff]  ;;  %v4144_v21 = vld [vmem:[%s7796_s3] sm:$0xff]  ;;  %vm7925_vm11 = vcmask 261120   ;;  %s4494_s26 = smov [#allocation3]   ;;  %s4495_s29 = smov 16  }
  0x11   :  { %593 = vmatpush.bf16.msra.mxu1 %v4145_v20  ;;  %s3877_s27 = sshll.u32 %s4494_s26, 4  ;;  %s3878_s27 = int_to_ptr.vmem [resolvable:$true] %s3877_s27 }
  0x12   :  { %172 = vmatpush.bf16.msra.mxu0 %v4142_v7 }
  0x15   :  { %v4134_v8 = vld [vmem:[%s7930_s19] sm:$0xff]  ;;  %v4135_v9 = vld [vmem:[%s7930_s19 + $0x8] sm:$0xff]  ;;  %v4136_v10 = vld [vmem:[%s7930_s19 + $0x10] sm:$0xff]  ;;  %594 = vmatpush.bf16.msra.mxu1 %v4144_v21 }
  0x16   :  { %3931 = vmatmul.msk.bf16.vlgmr.msra.gmra.mxu0 %vm133_vm2, %v4134_v8  ;;  %v4137_v11 = vld [vmem:[%s7930_s19 + $0x18] sm:$0xff]  ;;  %v4138_v12 = vld [vmem:[%s7930_s19 + $0x20] sm:$0xff]  ;;  %v4139_v13 = vld [vmem:[%s7930_s19 + $0x28] sm:$0xff] }
  0x17   :  { %v4140_v14 = vld [vmem:[%s7930_s19 + $0x30] sm:$0xff]  ;;  %v4141_v15 = vld [vmem:[%s7930_s19 + $0x38] sm:$0xff] }
  0x26   :  { %3932 = vmatmul.msk.bf16.gmra.mxu0 %vm133_vm2, %v4135_v9 }
  0x36   :  { %3933 = vmatmul.msk.bf16.gmra.mxu0 %vm133_vm2, %v4136_v10 }
  0x46   :  { %3934 = vmatmul.msk.bf16.gmra.mxu0 %vm133_vm2, %v4137_v11 }
  0x56   :  { %3935 = vmatmul.msk.bf16.gmra.mxu0 %vm133_vm2, %v4138_v12 }
  0x66   :  { %3936 = vmatmul.msk.bf16.gmra.mxu0 %vm133_vm2, %v4139_v13 }
  0x76   :  { %3937 = vmatmul.msk.bf16.gmra.mxu0 %vm133_vm2, %v4140_v14 }
  0x86   :  { %3938 = vmatmul.msk.bf16.gmra.mxu0 %vm133_vm2, %v4141_v15 }
  0x93   :  { %v174_v17 = vpop.f32.mrf.mxu0 }
  0x94   :  { %v4627_v18 = vadd.f32 %v4624_v16, %v174_v17 }
  0x96   :  { %v3939_v19 = vmul.f32 -1.442695, %v4627_v18 }
  0x98   :  { %4195 = vpow2.f32 %v3939_v19 }
  0x9b   :  { %v176_v22 = vpop.f32.mrf.mxu0 }
  0x9c   :  { %v177_v23 = vadd.f32 %v4624_v16, %v176_v22 }
  0x9e   :  { %v4196_v24 = vpop.eup %4195  ;;  %v3940_v25 = vmul.f32 -1.442695, %v177_v23 }
  0x9f   :  { %v262_v26 = vadd.f32 1.0, %v4196_v24 }
  0xa0   :  { %4197 = vpow2.f32 %v3940_v25 }
  0xa1   :  { %4199 = vrcp.f32 %v262_v26  ;;  %v289_v44 = vand.u32 2147483648, %v262_v26  ;;  %vm283_vm4 = vweird.f32 %v262_v26  ;;  %v287_v45 = vand.u32 2147483647, %v262_v26 }
  0xa3   :  { %v179_v27 = vpop.f32.mrf.mxu0  ;;  %v290_v54 = vor.u32 1.1754944e-38, %v289_v44  ;;  %vm288_vm7 = vcmp.eq.f32.partialorder %v287_v45, 8.507059e+37 }
  0xa4   :  { %v4638_v28 = vadd.f32 %v4624_v16, %v179_v27 }
  0xa6   :  { %v4198_v29 = vpop.eup %4197  ;;  %v3941_v30 = vmul.f32 -1.442695, %v4638_v28 }
  0xa7   :  { %v4200_v31 = vpop.eup %4199  ;;  %v263_v32 = vadd.f32 1.0, %v4198_v29 }
  0xa8   :  { %v279_v33 = vmul.f32 %v4200_v31, %v262_v26  ;;  %4201 = vpow2.f32 %v3941_v30  ;;  %vm284_vm3 = vweird.f32 %v4200_v31 }
  0xa9   :  { %4203 = vrcp.f32 %v263_v32  ;;  %vm4648_vm5 = vmor %vm283_vm4, %vm284_vm3  ;;  %v302_v48 = vand.u32 2147483647, %v263_v32  ;;  %v304_v49 = vand.u32 2147483648, %v263_v32  ;;  %vm298_vm8 = vweird.f32 %v263_v32 }
  0xaa   :  { %v280_v34 = vsub.f32 1.0, %v279_v33 }
  0xab   :  { %v181_v35 = vpop.f32.mrf.mxu0  ;;  %v305_v60 = vor.u32 1.1754944e-38, %v304_v49  ;;  %vm303_vm10 = vcmp.eq.f32.partialorder %v302_v48, 8.507059e+37 }
  0xac   :  { %v281_v36 = vmul.f32 %v4200_v31, %v280_v34  ;;  %v4642_v37 = vadd.f32 %v4624_v16, %v181_v35 }
  0xae   :  { %v4202_v38 = vpop.eup %4201  ;;  %v3942_v39 = vmul.f32 -1.442695, %v4642_v37  ;;  %v282_v42 = vadd.f32 %v4200_v31, %v281_v36 }
  0xaf   :  { %v4204_v40 = vpop.eup %4203  ;;  %v4645_v41 = vadd.f32 1.0, %v4202_v38 }
  0xb0   :  { %v294_v43 = vmul.f32 %v4204_v40, %v263_v32  ;;  %4205 = vpow2.f32 %v3942_v39  ;;  %v286_v51 = vsel %vm4648_vm5, %v4200_v31, %v282_v42  ;;  %vm299_vm6 = vweird.f32 %v4204_v40 }
  0xb1   :  { %4207 = vrcp.f32 %v4645_v41  ;;  %v291_v59 = vsel %vm288_vm7, %v290_v54, %v286_v51  ;;  %vm300_vm9 = vmor %vm298_vm8, %vm299_vm6  ;;  %v319_v14 = vand.u32 2147483648, %v4645_v41  ;;  %vm313_vm13 = vweird.f32 %v4645_v41 }
  0xb2   :  { %v295_v46 = vsub.f32 1.0, %v294_v43  ;;  %v4660_v1 = vmul.f32 %v291_v59, %v4627_v18  ;;  %v317_v15 = vand.u32 2147483647, %v4645_v41 }
  0xb3   :  { %v184_v50 = vpop.f32.mrf.mxu0  ;;  %v320_v25 = vor.u32 1.1754944e-38, %v319_v14 }
  0xb4   :  { %v296_v52 = vmul.f32 %v4204_v40, %v295_v46  ;;  %v4655_v53 = vadd.f32 %v4624_v16, %v184_v50  ;;  %7933 = vst [vmem:[#allocation6_spill] sm:$0xff] %v4660_v1  ;;  %vm318_vm0 = vcmp.eq.f32.partialorder %v317_v15, 8.507059e+37 }
  0xb6   :  { %v4206_v55 = vpop.eup %4205  ;;  %v297_v56 = vadd.f32 %v4204_v40, %v296_v52  ;;  %v3943_v57 = vmul.f32 -1.442695, %v4655_v53 }
  0xb7   :  { %v4208_v58 = vpop.eup %4207  ;;  %v265_v61 = vadd.f32 1.0, %v4206_v55 }
  0xb8   :  { %v301_v62 = vsel %vm300_vm9, %v4204_v40, %v297_v56  ;;  %v309_v63 = vmul.f32 %v4208_v58, %v4645_v41  ;;  %4209 = vpow2.f32 %v3943_v57  ;;  %vm314_vm12 = vweird.f32 %v4208_v58 }
  0xb9   :  { %v306_v0 = vsel %vm303_vm10, %v305_v60, %v301_v62  ;;  %4211 = vrcp.f32 %v265_v61  ;;  %vm4677_vm14 = vmor %vm313_vm13, %vm314_vm12  ;;  %v332_v19 = vand.u32 2147483647, %v265_v61  ;;  %v334_v20 = vand.u32 2147483648, %v265_v61 }
  0xba   :  { %v4662_v2 = vmul.f32 %v306_v0, %v177_v23  ;;  %v310_v3 = vsub.f32 1.0, %v309_v63  ;;  %vm328_vm2 = vweird.f32 %v265_v61 }
  0xbb   :  { %v186_v4 = vpop.f32.mrf.mxu0  ;;  %v335_v32 = vor.u32 1.1754944e-38, %v334_v20  ;;  %vm333_vm4 = vcmp.eq.f32.partialorder %v332_v19, 8.507059e+37 }
  0xbc   :  { %7934 = vst [vmem:[#allocation7_spill] sm:$0xff] %v4662_v2  ;;  %v311_v5 = vmul.f32 %v4208_v58, %v310_v3  ;;  %v4665_v6 = vadd.f32 %v4624_v16, %v186_v4  ;;  %v534_v7 = vpack.c.bf16 %v4662_v2, %v4660_v1 }
  0xbe   :  { %v4210_v8 = vpop.eup %4209  ;;  %v3944_v9 = vmul.f32 -1.442695, %v4665_v6  ;;  %3963 = vmatmul.msk.bf16.vlgmr.msra.gmra.mxu1 %vm7925_vm11, %v534_v7  ;;  %v312_v12 = vadd.f32 %v4208_v58, %v311_v5 }
  0xbf   :  { %v4212_v10 = vpop.eup %4211  ;;  %v4671_v11 = vadd.f32 1.0, %v4210_v8 }
  0xc0   :  { %v324_v13 = vmul.f32 %v4212_v10, %v265_v61  ;;  %4213 = vpow2.f32 %v3944_v9  ;;  %v316_v22 = vsel %vm4677_vm14, %v4208_v58, %v312_v12  ;;  %vm329_vm15 = vweird.f32 %v4212_v10 }
  0xc1   :  { %4215 = vrcp.f32 %v4671_v11  ;;  %v321_v31 = vsel %vm318_vm0, %v320_v25, %v316_v22  ;;  %vm330_vm3 = vmor %vm328_vm2, %vm329_vm15  ;;  %v349_v49 = vand.u32 2147483648, %v4671_v11  ;;  %vm343_vm6 = vweird.f32 %v4671_v11 }
  0xc2   :  { %v325_v17 = vsub.f32 1.0, %v324_v13  ;;  %v4689_v38 = vmul.f32 %v321_v31, %v4638_v28  ;;  %v347_v50 = vand.u32 2147483647, %v4671_v11 }
  0xc3   :  { %v189_v21 = vpop.f32.mrf.mxu0  ;;  %v350_v60 = vor.u32 1.1754944e-38, %v349_v49 }
  0xc4   :  { %v326_v23 = vmul.f32 %v4212_v10, %v325_v17  ;;  %v4684_v24 = vadd.f32 %v4624_v16, %v189_v21  ;;  %7937 = vst [vmem:[#allocation8_spill] sm:$0xff] %v4689_v38  ;;  %vm348_vm9 = vcmp.eq.f32.partialorder %v347_v50, 8.507059e+37 }
  0xc6   :  { %v4214_v26 = vpop.eup %4213  ;;  %v327_v27 = vadd.f32 %v4212_v10, %v326_v23  ;;  %v3945_v29 = vmul.f32 -1.442695, %v4684_v24 }
  0xc7   :  { %v4216_v30 = vpop.eup %4215  ;;  %v267_v33 = vadd.f32 1.0, %v4214_v26 }
  0xc8   :  { %v331_v34 = vsel %vm330_vm3, %v4212_v10, %v327_v27  ;;  %v339_v35 = vmul.f32 %v4216_v30, %v4671_v11  ;;  %4217 = vpow2.f32 %v3945_v29  ;;  %vm344_vm5 = vweird.f32 %v4216_v30 }
  0xc9   :  { %v336_v36 = vsel %vm333_vm4, %v335_v32, %v331_v34  ;;  %4219 = vrcp.f32 %v267_v33  ;;  %vm4707_vm7 = vmor %vm343_vm6, %vm344_vm5  ;;  %v362_v54 = vand.u32 2147483647, %v267_v33  ;;  %v364_v55 = vand.u32 2147483648, %v267_v33 }
  0xca   :  { %v4692_v39 = vmul.f32 %v336_v36, %v4642_v37  ;;  %v340_v40 = vsub.f32 1.0, %v339_v35  ;;  %vm358_vm10 = vweird.f32 %v267_v33 }
  0xcb   :  { %v191_v41 = vpop.f32.mrf.mxu0  ;;  %v365_v4 = vor.u32 1.1754944e-38, %v364_v55  ;;  %vm363_vm13 = vcmp.eq.f32.partialorder %v362_v54, 8.507059e+37 }
  0xcc   :  { %7938 = vst [vmem:[#allocation9_spill] sm:$0xff] %v4692_v39  ;;  %v341_v42 = vmul.f32 %v4216_v30, %v340_v40  ;;  %v4695_v43 = vadd.f32 %v4624_v16, %v191_v41  ;;  %v535_v44 = vpack.c.bf16 %v4692_v39, %v4689_v38 }
  0xce   :  { %v4218_v45 = vpop.eup %4217  ;;  %v3946_v46 = vmul.f32 -1.442695, %v4695_v43  ;;  %3964 = vmatmul.msk.bf16.gmra.mxu1 %vm7925_vm11, %v535_v44  ;;  %v342_v48 = vadd.f32 %v4216_v30, %v341_v42 }
  0xcf   :  { %v4220_v47 = vpop.eup %4219  ;;  %v4701_v28 = vadd.f32 1.0, %v4218_v45 }
  0xd0   :  { %v354_v37 = vmul.f32 %v4220_v47, %v267_v33  ;;  %4221 = vpow2.f32 %v3946_v46  ;;  %v346_v57 = vsel %vm4707_vm7, %v4216_v30, %v342_v48  ;;  %vm359_vm8 = vweird.f32 %v4220_v47 }
  0xd1   :  { %4223 = vrcp.f32 %v4701_v28  ;;  %v351_v3 = vsel %vm348_vm9, %v350_v60, %v346_v57  ;;  %vm360_vm12 = vmor %vm358_vm10, %vm359_vm8  ;;  %v379_v22 = vand.u32 2147483648, %v4701_v28  ;;  %vm373_vm15 = vweird.f32 %v4701_v28 }
  0xd2   :  { %v355_v51 = vsub.f32 1.0, %v354_v37  ;;  %v4719_v10 = vmul.f32 %v351_v3, %v4655_v53  ;;  %v377_v23 = vand.u32 2147483647, %v4701_v28 }
  0xd3   :  { %v194_v56 = vpop.f32.mrf.mxu0  ;;  %v380_v34 = vor.u32 1.1754944e-38, %v379_v22 }
  0xd4   :  { %v356_v58 = vmul.f32 %v4220_v47, %v355_v51  ;;  %v4714_v59 = vadd.f32 %v4624_v16, %v194_v56  ;;  %7941 = vst [vmem:[#allocation10_spill] sm:$0xff] %v4719_v10  ;;  %vm378_vm3 = vcmp.eq.f32.partialorder %v377_v23, 8.507059e+37 }
  0xd6   :  { %v4222_v61 = vpop.eup %4221  ;;  %v357_v62 = vadd.f32 %v4220_v47, %v356_v58  ;;  %v3947_v63 = vmul.f32 -1.442695, %v4714_v59 }
  0xd7   :  { %v4224_v0 = vpop.eup %4223  ;;  %v269_v5 = vadd.f32 1.0, %v4222_v61 }
  0xd8   :  { %v361_v7 = vsel %vm360_vm12, %v4220_v47, %v357_v62  ;;  %v369_v8 = vmul.f32 %v4224_v0, %v4701_v28  ;;  %4225 = vpow2.f32 %v3947_v63  ;;  %vm374_vm14 = vweird.f32 %v4224_v0 }
  0xd9   :  { %v366_v9 = vsel %vm363_vm13, %v365_v4, %v361_v7  ;;  %4227 = vrcp.f32 %v269_v5  ;;  %vm4737_vm0 = vmor %vm373_vm15, %vm374_vm14  ;;  %v392_v27 = vand.u32 2147483647, %v269_v5  ;;  %v394_v29 = vand.u32 2147483648, %v269_v5 }
  0xda   :  { %v4722_v11 = vmul.f32 %v366_v9, %v4665_v6  ;;  %v370_v12 = vsub.f32 1.0, %v369_v8  ;;  %vm388_vm4 = vweird.f32 %v269_v5 }
  0xdb   :  { %v196_v13 = vpop.f32.mrf.mxu0  ;;  %v395_v44 = vor.u32 1.1754944e-38, %v394_v29  ;;  %vm393_vm6 = vcmp.eq.f32.partialorder %v392_v27, 8.507059e+37 }
  0xdc   :  { %7942 = vst [vmem:[#allocation11_spill] sm:$0xff] %v4722_v11  ;;  %v371_v14 = vmul.f32 %v4224_v0, %v370_v12  ;;  %v4725_v15 = vadd.f32 %v4624_v16, %v196_v13  ;;  %v536_v17 = vpack.c.bf16 %v4722_v11, %v4719_v10 }
  0xde   :  { %v4226_v18 = vpop.eup %4225  ;;  %v3948_v19 = vmul.f32 -1.442695, %v4725_v15  ;;  %3965 = vmatmul.msk.bf16.gmra.mxu1 %vm7925_vm11, %v536_v17  ;;  %v372_v21 = vadd.f32 %v4224_v0, %v371_v14 }
  0xdf   :  { %v4228_v20 = vpop.eup %4227  ;;  %v4731_v53 = vadd.f32 1.0, %v4226_v18 }
  0xe0   :  { %v384_v6 = vmul.f32 %v4228_v20, %v269_v5  ;;  %4229 = vpow2.f32 %v3948_v19  ;;  %v376_v31 = vsel %vm4737_vm0, %v4224_v0, %v372_v21  ;;  %vm389_vm2 = vweird.f32 %v4228_v20 }
  0xe1   :  { %4231 = vrcp.f32 %v4731_v53  ;;  %v381_v42 = vsel %vm378_vm3, %v380_v34, %v376_v31  ;;  %vm390_vm5 = vmor %vm388_vm4, %vm389_vm2  ;;  %v409_v60 = vand.u32 2147483648, %v4731_v53  ;;  %vm403_vm8 = vweird.f32 %v4731_v53 }
  0xe2   :  { %v385_v25 = vsub.f32 1.0, %v384_v6  ;;  %v4749_v48 = vmul.f32 %v381_v42, %v4684_v24  ;;  %v407_v61 = vand.u32 2147483647, %v4731_v53 }
  0xe3   :  { %v199_v30 = vpop.f32.mrf.mxu0  ;;  %v410_v9 = vor.u32 1.1754944e-38, %v409_v60 }
  0xe4   :  { %v386_v32 = vmul.f32 %v4228_v20, %v385_v25  ;;  %v4744_v33 = vadd.f32 %v4624_v16, %v199_v30  ;;  %7945 = vst [vmem:[#allocation12_spill] sm:$0xff] %v4749_v48  ;;  %vm408_vm12 = vcmp.eq.f32.partialorder %v407_v61, 8.507059e+37 }
  0xe6   :  { %v4230_v35 = vpop.eup %4229  ;;  %v387_v36 = vadd.f32 %v4228_v20, %v386_v32  ;;  %v3949_v40 = vmul.f32 -1.442695, %v4744_v33 }
  0xe7   :  { %v4232_v41 = vpop.eup %4231  ;;  %v271_v45 = vadd.f32 1.0, %v4230_v35 }
  0xe8   :  { %v391_v46 = vsel %vm390_vm5, %v4228_v20, %v387_v36  ;;  %v399_v47 = vmul.f32 %v4232_v41, %v4731_v53  ;;  %4233 = vpow2.f32 %v3949_v40  ;;  %vm404_vm7 = vweird.f32 %v4232_v41 }
  0xe9   :  { %v396_v28 = vsel %vm393_vm6, %v395_v44, %v391_v46  ;;  %4235 = vrcp.f32 %v271_v45  ;;  %vm4767_vm9 = vmor %vm403_vm8, %vm404_vm7  ;;  %v422_v0 = vand.u32 2147483647, %v271_v45  ;;  %v424_v3 = vand.u32 2147483648, %v271_v45 }
  0xea   :  { %v4752_v37 = vmul.f32 %v396_v28, %v4695_v43  ;;  %v400_v49 = vsub.f32 1.0, %v399_v47  ;;  %vm418_vm13 = vweird.f32 %v271_v45 }
  0xeb   :  { %v201_v50 = vpop.f32.mrf.mxu0  ;;  %v425_v19 = vor.u32 1.1754944e-38, %v424_v3  ;;  %vm423_vm15 = vcmp.eq.f32.partialorder %v422_v0, 8.507059e+37 }
  0xec   :  { %7946 = vst [vmem:[#allocation13_spill] sm:$0xff] %v4752_v37  ;;  %v401_v51 = vmul.f32 %v4232_v41, %v400_v49  ;;  %v4755_v52 = vadd.f32 %v4624_v16, %v201_v50  ;;  %v537_v54 = vpack.c.bf16 %v4752_v37, %v4749_v48  ;;  %v989_v48 = vld [vmem:[#allocation2 + $0x50] sm:$0x1] }
  0xee   :  { %v4234_v55 = vpop.eup %4233  ;;  %v3950_v56 = vmul.f32 -1.442695, %v4755_v52  ;;  %3966 = vmatmul.msk.bf16.gmra.mxu1 %vm7925_vm11, %v537_v54  ;;  %v402_v58 = vadd.f32 %v4232_v41, %v401_v51 }
  0xef   :  { %v4236_v57 = vpop.eup %4235  ;;  %v4761_v24 = vadd.f32 1.0, %v4234_v55 }
  0xf0   :  { %v414_v43 = vmul.f32 %v4236_v57, %v271_v45  ;;  %4237 = vpow2.f32 %v3950_v56  ;;  %v406_v5 = vsel %vm4767_vm9, %v4232_v41, %v402_v58  ;;  %vm419_vm10 = vweird.f32 %v4236_v57 }
  0xf1   :  { %4239 = vrcp.f32 %v4761_v24  ;;  %v411_v18 = vsel %vm408_vm12, %v410_v9, %v406_v5  ;;  %vm420_vm14 = vmor %vm418_vm13, %vm419_vm10  ;;  %v439_v36 = vand.u32 2147483648, %v4761_v24  ;;  %vm433_vm2 = vweird.f32 %v4761_v24 }
  0xf2   :  { %v415_v62 = vsub.f32 1.0, %v414_v43  ;;  %v4779_v22 = vmul.f32 %v411_v18, %v4714_v59  ;;  %v437_v40 = vand.u32 2147483647, %v4761_v24 }
  0xf3   :  { %v204_v4 = vpop.f32.mrf.mxu0  ;;  %v440_v50 = vor.u32 1.1754944e-38, %v439_v36 }
  0xf4   :  { %v416_v7 = vmul.f32 %v4236_v57, %v415_v62  ;;  %v4774_v8 = vadd.f32 %v4624_v16, %v204_v4  ;;  %7949 = vst [vmem:[#allocation14_spill] sm:$0xff] %v4779_v22  ;;  %vm438_vm5 = vcmp.eq.f32.partialorder %v437_v40, 8.507059e+37 }
  0xf6   :  { %v4238_v12 = vpop.eup %4237  ;;  %v417_v13 = vadd.f32 %v4236_v57, %v416_v7  ;;  %v3951_v14 = vmul.f32 -1.442695, %v4774_v8 }
  0xf7   :  { %v4240_v17 = vpop.eup %4239  ;;  %v273_v20 = vadd.f32 1.0, %v4238_v12 }
  0xf8   :  { %v421_v53 = vsel %vm420_vm14, %v4236_v57, %v417_v13  ;;  %v429_v21 = vmul.f32 %v4240_v17, %v4761_v24  ;;  %4241 = vpow2.f32 %v3951_v14  ;;  %vm434_vm0 = vweird.f32 %v4240_v17 }
  0xf9   :  { %v426_v6 = vsel %vm423_vm15, %v425_v19, %v421_v53  ;;  %4243 = vrcp.f32 %v273_v20  ;;  %vm4797_vm3 = vmor %vm433_vm2, %vm434_vm0  ;;  %v452_v44 = vand.u32 2147483647, %v273_v20  ;;  %v454_v45 = vand.u32 2147483648, %v273_v20 }
  0xfa   :  { %v4782_v23 = vmul.f32 %v426_v6, %v4725_v15  ;;  %v430_v25 = vsub.f32 1.0, %v429_v21  ;;  %vm448_vm6 = vweird.f32 %v273_v20 }
  0xfb   :  { %v206_v26 = vpop.f32.mrf.mxu0  ;;  %v455_v24 = vor.u32 1.1754944e-38, %v454_v45  ;;  %vm453_vm8 = vcmp.eq.f32.partialorder %v452_v44, 8.507059e+37 }
  0xfc   :  { %7950 = vst [vmem:[#allocation15_spill] sm:$0xff] %v4782_v23  ;;  %v431_v27 = vmul.f32 %v4240_v17, %v430_v25  ;;  %v4785_v29 = vadd.f32 %v4624_v16, %v206_v26  ;;  %v538_v30 = vpack.c.bf16 %v4782_v23, %v4779_v22  ;;  %v1057_v23 = vld [vmem:[#allocation2 + $0x64] sm:$0x1] }
  0xfe   :  { %v4242_v31 = vpop.eup %4241  ;;  %v3952_v32 = vmul.f32 -1.442695, %v4785_v29  ;;  %3967 = vmatmul.msk.bf16.gmra.mxu1 %vm7925_vm11, %v538_v30  ;;  %v432_v35 = vadd.f32 %v4240_v17, %v431_v27 }
  0xff   :  { %v4244_v34 = vpop.eup %4243  ;;  %v4791_v59 = vadd.f32 1.0, %v4242_v31 }
 0x100   :  { %v444_v15 = vmul.f32 %v4244_v34, %v273_v20  ;;  %4245 = vpow2.f32 %v3952_v32  ;;  %v436_v47 = vsel %vm4797_vm3, %v4240_v17, %v432_v35  ;;  %vm449_vm4 = vweird.f32 %v4244_v34 }
 0x101   :  { %4247 = vrcp.f32 %v4791_v59  ;;  %v441_v57 = vsel %vm438_vm5, %v440_v50, %v436_v47  ;;  %vm450_vm7 = vmor %vm448_vm6, %vm449_vm4  ;;  %v469_v17 = vand.u32 2147483648, %v4791_v59  ;;  %vm463_vm10 = vweird.f32 %v4791_v59 }
 0x102   :  { %v445_v41 = vsub.f32 1.0, %v444_v15  ;;  %v4809_v62 = vmul.f32 %v441_v57, %v4744_v33 }
 0x103   :  { %v209_v46 = vpop.f32.mrf.mxu0  ;;  %v470_v6 = vor.u32 1.1754944e-38, %v469_v17  ;;  %v965_v17 = vld [vmem:[#allocation2 + $0x10] sm:$0x1] }
 0x104   :  { %v446_v28 = vmul.f32 %v4244_v34, %v445_v41  ;;  %v4804_v49 = vadd.f32 %v4624_v16, %v209_v46  ;;  %7953 = vst [vmem:[#allocation16_spill] sm:$0xff] %v4809_v62 }
 0x106   :  { %v4246_v51 = vpop.eup %4245  ;;  %v447_v54 = vadd.f32 %v4244_v34, %v446_v28  ;;  %v3953_v55 = vmul.f32 -1.442695, %v4804_v49 }
 0x107   :  { %v4248_v56 = vpop.eup %4247  ;;  %v275_v58 = vadd.f32 1.0, %v4246_v51 }
 0x108   :  { %v451_v43 = vsel %vm450_vm7, %v4244_v34, %v447_v54  ;;  %v459_v60 = vmul.f32 %v4248_v56, %v4791_v59  ;;  %4249 = vpow2.f32 %v3953_v55  ;;  %vm464_vm9 = vweird.f32 %v4248_v56 }
 0x109   :  { %v456_v61 = vsel %vm453_vm8, %v455_v24, %v451_v43  ;;  %4251 = vrcp.f32 %v275_v58  ;;  %vm465_vm12 = vmor %vm463_vm10, %vm464_vm9  ;;  %v484_v19 = vand.u32 2147483648, %v275_v58  ;;  %v482_v21 = vand.u32 2147483647, %v275_v58 }
 0x10a   :  { %v4812_v63 = vmul.f32 %v456_v61, %v4755_v52  ;;  %v460_v0 = vsub.f32 1.0, %v459_v60  ;;  %vm478_vm15 = vweird.f32 %v275_v58 }
 0x10b   :  { %v211_v3 = vpop.f32.mrf.mxu0  ;;  %v485_v31 = vor.u32 1.1754944e-38, %v484_v19  ;;  %vm483_vm2 = vcmp.eq.f32.partialorder %v482_v21, 8.507059e+37 }
 0x10c   :  { %7954 = vst [vmem:[#allocation17_spill] sm:$0xff] %v4812_v63  ;;  %v461_v4 = vmul.f32 %v4248_v56, %v460_v0  ;;  %v4815_v5 = vadd.f32 %v4624_v16, %v211_v3  ;;  %v539_v7 = vpack.c.bf16 %v4812_v63, %v4809_v62  ;;  %v467_v16 = vand.u32 2147483647, %v4791_v59  ;;  %v4845_v3 = vld [vmem:[%s7797_s4] ss:$0 sm:$0xff] }
 0x10e   :  { %v4250_v9 = vpop.eup %4249  ;;  %v3954_v12 = vmul.f32 -1.442695, %v4815_v5  ;;  %3968 = vmatmul.msk.bf16.gmra.mxu1 %vm7925_vm11, %v539_v7  ;;  %v462_v14 = vadd.f32 %v4248_v56, %v461_v4  ;;  %vm468_vm14 = vcmp.eq.f32.partialorder %v467_v16, 8.507059e+37  ;;  %v962_v4 = vld [vmem:[#allocation2 + $0x8] sm:$0x1] }
 0x10f   :  { %v4252_v13 = vpop.eup %4251  ;;  %v276_v33 = vadd.f32 1.0, %v4250_v9  ;;  %v1027_v16 = vld [vmem:[#allocation2 + $0x14] sm:$0x1] }
 0x110   :  { %v474_v52 = vmul.f32 %v4252_v13, %v275_v58  ;;  %4253 = vpow2.f32 %v3954_v12  ;;  %v466_v20 = vsel %vm465_vm12, %v4248_v56, %v462_v14  ;;  %vm479_vm13 = vweird.f32 %v4252_v13 }
 0x111   :  { %4255 = vrcp.f32 %v276_v33  ;;  %v471_v30 = vsel %vm468_vm14, %v470_v6, %v466_v20  ;;  %vm480_vm0 = vmor %vm478_vm15, %vm479_vm13  ;;  %v499_v47 = vand.u32 2147483648, %v276_v33  ;;  %vm493_vm4 = vweird.f32 %v276_v33 }
 0x112   :  { %v475_v18 = vsub.f32 1.0, %v474_v52  ;;  %v4825_v15 = vmul.f32 %v471_v30, %v4774_v8  ;;  %v497_v28 = vand.u32 2147483647, %v276_v33  ;;  %vm956_vm12 = vcmask 1040384   ;;  %v1030_v30 = vld [vmem:[#allocation2 + $0x1c] sm:$0x1] }
 0x113   :  { %v500_v55 = vor.u32 1.1754944e-38, %v499_v47  ;;  %vm957_vm13 = vsmask.f32 256  ;;  %vm1019_vm15 = vsmask.f32 7938 }
 0x114   :  { %v476_v53 = vmul.f32 %v4252_v13, %v475_v18  ;;  %7955 = vst [vmem:[#allocation18_spill] sm:$0xff] %v4825_v15  ;;  %vm498_vm7 = vcmp.eq.f32.partialorder %v497_v28, 8.507059e+37  ;;  %vm4847_vm14 = vmand %vm956_vm12, %vm957_vm13 }
 0x115   :  { %v963_v12 = vsel %vm4847_vm14, 0, %v962_v4  ;;  %v966_v19 = vsel %vm4847_vm14, 0, %v965_v17 }
 0x116   :  { %v4254_v25 = vpop.eup %4253  ;;  %v477_v26 = vadd.f32 %v4252_v13, %v476_v53  ;;  %964 = vst [vmem:[#allocation2 + $0x8] sm:$0x1] %v963_v12 }
 0x117   :  { %v4256_v27 = vpop.eup %4255  ;;  %v277_v32 = vadd.f32 1.0, %v4254_v25  ;;  %967 = vst [vmem:[#allocation2 + $0x10] sm:$0x1] %v966_v19 }
 0x118   :  { %v481_v34 = vsel %vm480_vm0, %v4252_v13, %v477_v26  ;;  %v489_v59 = vmul.f32 %v4256_v27, %v276_v33  ;;  %vm494_vm3 = vweird.f32 %v4256_v27  ;;  %vm4857_vm0 = vmand %vm956_vm12, %vm1019_vm15 }
 0x119   :  { %v486_v35 = vsel %vm483_vm2, %v485_v31, %v481_v34  ;;  %4257 = vrcp.f32 %v277_v32  ;;  %vm495_vm5 = vmor %vm493_vm4, %vm494_vm3  ;;  %v514_v8 = vand.u32 2147483648, %v277_v32  ;;  %v512_v54 = vand.u32 2147483647, %v277_v32 }
 0x11a   :  { %v4828_v36 = vmul.f32 %v486_v35, %v4785_v29  ;;  %v490_v40 = vsub.f32 1.0, %v489_v59  ;;  %vm508_vm8 = vweird.f32 %v277_v32  ;;  %v1028_v20 = vsel %vm4857_vm0, 0, %v1027_v16 }
 0x11b   :  { %v515_v24 = vor.u32 1.1754944e-38, %v514_v8  ;;  %vm513_vm10 = vcmp.eq.f32.partialorder %v512_v54, 8.507059e+37  ;;  %1029 = vst [vmem:[#allocation2 + $0x14] sm:$0x1] %v1028_v20  ;;  %v1033_v8 = vld [vmem:[#allocation2 + $0x24] sm:$0x1] }
 0x11c   :  { %7956 = vst [vmem:[#allocation19_spill] sm:$0xff] %v4828_v36  ;;  %v491_v41 = vmul.f32 %v4256_v27, %v490_v40  ;;  %v540_v42 = vpack.c.bf16 %v4828_v36, %v4825_v15 }
 0x11e   :  { %3969 = vmatmul.msk.bf16.gmra.mxu1 %vm7925_vm11, %v540_v42  ;;  %v492_v45 = vadd.f32 %v4256_v27, %v491_v41 }
 0x11f   :  { %v4258_v44 = vpop.eup %4257 }
 0x120   :  { %v504_v46 = vmul.f32 %v4258_v44, %v277_v32  ;;  %v496_v51 = vsel %vm495_vm5, %v4256_v27, %v492_v45  ;;  %vm509_vm6 = vweird.f32 %v4258_v44  ;;  %v968_v27 = vld [vmem:[#allocation2 + $0x18] sm:$0x1]  ;;  %v1031_v32 = vsel %vm4857_vm0, 0, %v1030_v30 }
 0x121   :  { %v501_v57 = vsel %vm498_vm7, %v500_v55, %v496_v51  ;;  %vm510_vm9 = vmor %vm508_vm8, %vm509_vm6  ;;  %v969_v31 = vsel %vm4847_vm14, 0, %v968_v27  ;;  %1032 = vst [vmem:[#allocation2 + $0x1c] sm:$0x1] %v1031_v32  ;;  %vm7926_vm7 = vcmask 1043456  }
 0x122   :  { %v505_v50 = vsub.f32 1.0, %v504_v46  ;;  %v4834_v60 = vmul.f32 %v501_v57, %v4804_v49  ;;  %970 = vst [vmem:[#allocation2 + $0x18] sm:$0x1] %v969_v31  ;;  %vm4907_vm12 = vmand %vm7926_vm7, %vm1019_vm15 }
 0x124   :  { %v506_v29 = vmul.f32 %v4258_v44, %v505_v50  ;;  %7957 = vst [vmem:[#allocation20_spill] sm:$0xff] %v4834_v60  ;;  %v971_v50 = vld [vmem:[#allocation2 + $0x20] sm:$0x1] }
 0x125   :  { %v972_v55 = vsel %vm4847_vm14, 0, %v971_v50 }
 0x126   :  { %v507_v56 = vadd.f32 %v4258_v44, %v506_v29  ;;  %973 = vst [vmem:[#allocation2 + $0x20] sm:$0x1] %v972_v55 }
 0x128   :  { %v511_v58 = vsel %vm510_vm9, %v4258_v44, %v507_v56  ;;  %v1034_v56 = vsel %vm4857_vm0, 0, %v1033_v8 }
 0x129   :  { %v516_v43 = vsel %vm513_vm10, %v515_v24, %v511_v58  ;;  %1035 = vst [vmem:[#allocation2 + $0x24] sm:$0x1] %v1034_v56 }
 0x12a   :  { %v4837_v61 = vmul.f32 %v516_v43, %v4815_v5  ;;  %v1024_v5 = vld [vmem:[#allocation2 + $0xc] sm:$0x1]  ;;  %v959_v43 = vld [vmem:[#allocation2] sm:$0x1] }
 0x12b   :  { %v1025_v33 = vsel %vm4857_vm0, 0, %v1024_v5 }
 0x12c   :  { %7958 = vst [vmem:[#allocation21_spill] sm:$0xff] %v4837_v61  ;;  %v541_v0 = vpack.c.bf16 %v4837_v61, %v4834_v60 }
 0x12d   :  { %1026 = vst [vmem:[#allocation2 + $0xc] sm:$0x1] %v1025_v33 }
 0x12e   :  { %3970 = vmatmul.msk.bf16.gmra.mxu1 %vm7925_vm11, %v541_v0 }
 0x13b   :  { %v596_v7 = vpop.f32.mrf.mxu1 }
 0x13c   :  { %v4852_v9 = vadd.f32 %v4845_v3, %v596_v7  ;;  %v1021_v7 = vld [vmem:[#allocation2 + $0x4] sm:$0x1] }
 0x13d   :  { %v1022_v19 = vsel %vm4857_vm0, 0, %v1021_v7 }
 0x13e   :  { %v3971_v14 = vmul.f32 -1.442695, %v4852_v9  ;;  %1023 = vst [vmem:[#allocation2 + $0x4] sm:$0x1] %v1022_v19 }
 0x140   :  { %4259 = vpow2.f32 %v3971_v14 }
 0x143   :  { %v598_v52 = vpop.f32.mrf.mxu1 }
 0x144   :  { %v4865_v18 = vadd.f32 %v4845_v3, %v598_v52  ;;  %v960_v52 = vsel %vm4847_vm14, 0, %v959_v43 }
 0x145   :  { %961 = vst [vmem:[#allocation2] sm:$0x1] %v960_v52 }
 0x146   :  { %v4260_v53 = vpop.eup %4259  ;;  %v3972_v21 = vmul.f32 -1.442695, %v4865_v18 }
 0x147   :  { %v684_v6 = vadd.f32 1.0, %v4260_v53 }
 0x148   :  { %4261 = vpow2.f32 %v3972_v21 }
 0x149   :  { %4263 = vrcp.f32 %v684_v6  ;;  %v711_v44 = vand.u32 2147483648, %v684_v6  ;;  %v709_v47 = vand.u32 2147483647, %v684_v6  ;;  %vm705_vm3 = vweird.f32 %v684_v6 }
 0x14b   :  { %v601_v25 = vpop.f32.mrf.mxu1  ;;  %v712_v24 = vor.u32 1.1754944e-38, %v711_v44  ;;  %vm710_vm5 = vcmp.eq.f32.partialorder %v709_v47, 8.507059e+37 }
 0x14c   :  { %v4873_v26 = vadd.f32 %v4845_v3, %v601_v25 }
 0x14e   :  { %v4262_v34 = vpop.eup %4261  ;;  %v3973_v59 = vmul.f32 -1.442695, %v4873_v26 }
 0x14f   :  { %v4264_v35 = vpop.eup %4263  ;;  %v685_v40 = vadd.f32 1.0, %v4262_v34 }
 0x150   :  { %v701_v41 = vmul.f32 %v4264_v35, %v684_v6  ;;  %4265 = vpow2.f32 %v3973_v59  ;;  %vm706_vm2 = vweird.f32 %v4264_v35 }
 0x151   :  { %4267 = vrcp.f32 %v685_v40  ;;  %vm707_vm4 = vmor %vm705_vm3, %vm706_vm2  ;;  %v724_v14 = vand.u32 2147483647, %v685_v40  ;;  %v726_v17 = vand.u32 2147483648, %v685_v40  ;;  %vm720_vm8 = vweird.f32 %v685_v40 }
 0x152   :  { %v702_v42 = vsub.f32 1.0, %v701_v41  ;;  %v1269_v41 = vld [vmem:[#allocation2 + $0x8] sm:$0xf] }
 0x153   :  { %v603_v45 = vpop.f32.mrf.mxu1  ;;  %vm725_vm9 = vcmp.eq.f32.partialorder %v724_v14, 8.507059e+37  ;;  %v727_v31 = vor.u32 1.1754944e-38, %v726_v17 }
 0x154   :  { %v703_v46 = vmul.f32 %v4264_v35, %v702_v42  ;;  %v4881_v28 = vadd.f32 %v4845_v3, %v603_v45  ;;  %v1272_v45 = vld [vmem:[#allocation2 + $0xc] sm:$0x1] }
 0x156   :  { %v4266_v51 = vpop.eup %4265  ;;  %v704_v29 = vadd.f32 %v4264_v35, %v703_v46  ;;  %v3974_v54 = vmul.f32 -1.442695, %v4881_v28 }
 0x157   :  { %v4268_v57 = vpop.eup %4267  ;;  %v4888_v58 = vadd.f32 1.0, %v4266_v51 }
 0x158   :  { %v708_v0 = vsel %vm707_vm4, %v4264_v35, %v704_v29  ;;  %v716_v4 = vmul.f32 %v4268_v57, %v685_v40  ;;  %4269 = vpow2.f32 %v3974_v54  ;;  %vm721_vm6 = vweird.f32 %v4268_v57 }
 0x159   :  { %v713_v5 = vsel %vm710_vm5, %v712_v24, %v708_v0  ;;  %4271 = vrcp.f32 %v4888_v58  ;;  %vm722_vm10 = vmor %vm720_vm8, %vm721_vm6  ;;  %v739_v47 = vand.u32 2147483647, %v4888_v58  ;;  %v741_v50 = vand.u32 2147483648, %v4888_v58 }
 0x15a   :  { %v940_v12 = vmul.f32 %v713_v5, %v4852_v9  ;;  %v717_v33 = vsub.f32 1.0, %v716_v4  ;;  %v7814_v9 = vmov 0   ;;  %vm735_vm15 = vweird.f32 %v4888_v58 }
 0x15b   :  { %v606_v16 = vpop.f32.mrf.mxu1  ;;  %1081 = vst [vmem:[#allocation2] sm:$0xf] %v7814_v9  ;;  %vm740_vm2 = vcmp.eq.f32.partialorder %v739_v47, 8.507059e+37  ;;  %v742_v7 = vor.u32 1.1754944e-38, %v741_v50 }
 0x15c   :  { %v1090_v20 = vpack.c.bf16 %v940_v12, %v940_v12  ;;  %v718_v53 = vmul.f32 %v4268_v57, %v717_v33  ;;  %v4897_v21 = vadd.f32 %v4845_v3, %v606_v16  ;;  %1082 = vst [vmem:[#allocation2 + $0x4] sm:$0x1] %v7814_v9  ;;  %v974_v12 = vld [vmem:[#allocation2 + $0x28] sm:$0x1]  ;;  %v1036_v33 = vld [vmem:[#allocation2 + $0x2c] sm:$0x1] }
 0x15e   :  { %v4270_v6 = vpop.eup %4269  ;;  %v1107_v25 = vshrl.u32 %v1090_v20, 16  ;;  %v719_v27 = vadd.f32 %v4268_v57, %v718_v53  ;;  %v3975_v34 = vmul.f32 -1.442695, %v4897_v21  ;;  %v1110_v35 = vshll.u32 %v1090_v20, 16  ;;  %v1275_v20 = vld [vmem:[#allocation2 + $0x10] sm:$0xf] }
 0x15f   :  { %v4272_v30 = vpop.eup %4271  ;;  %v4900_v32 = vadd.f32 1.0, %v4270_v6  ;;  %v1278_v53 = vld [vmem:[#allocation2 + $0x14] sm:$0x1] }
 0x160   :  { %v1109_v59 = vrot.slane %v1107_v25, 7  ;;  %v723_v42 = vsel %vm722_vm10, %v4268_v57, %v719_v27  ;;  %v731_v44 = vmul.f32 %v4272_v30, %v4888_v58  ;;  %vm736_vm13 = vweird.f32 %v4272_v30 }
 0x161   :  { %v728_v46 = vsel %vm725_vm9, %v727_v31, %v723_v42  ;;  %4273 = vrcp.f32 %v4900_v32  ;;  %vm737_vm3 = vmor %vm735_vm15, %vm736_vm13  ;;  %v975_v25 = vsel %vm4847_vm14, 0, %v974_v12  ;;  %v1037_v27 = vsel %vm4857_vm0, 0, %v1036_v33 }
 0x162   :  { %v1112_v8 = vor.u32 %v1110_v35, %v1109_v59  ;;  %v1113_v51 = vrot.slane %v1109_v59, 4  ;;  %v941_v29 = vmul.f32 %v728_v46, %v4865_v18  ;;  %v732_v54 = vsub.f32 1.0, %v731_v44  ;;  %976 = vst [vmem:[#allocation2 + $0x28] sm:$0x1] %v975_v25 }
 0x163   :  { %4275 = vpow2.f32 %v3975_v34  ;;  %v608_v55 = vpop.f32.mrf.mxu1  ;;  %1038 = vst [vmem:[#allocation2 + $0x2c] sm:$0x1] %v1037_v27  ;;  %vm750_vm5 = vweird.f32 %v4900_v32  ;;  %v4972_v25 = vld [vmem:[#allocation2 + $0x4] sm:$0x1] }
 0x164   :  { %v1270_v56 = vsel %vm4907_vm12, %v1112_v8, %v1269_v41  ;;  %v1273_v57 = vsel %vm4847_vm14, %v1113_v51, %v1272_v45  ;;  %v1091_v24 = vpack.c.bf16 %v941_v29, %v941_v29  ;;  %v733_v43 = vmul.f32 %v4272_v30, %v732_v54  ;;  %7965 = vst [vmem:[#allocation22_spill] sm:$0xff] %v4972_v25 }
 0x165   :  { %1271 = vst [vmem:[#allocation2 + $0x8] sm:$0xf] %v1270_v56  ;;  %v4921_v0 = vadd.f32 %v4845_v3, %v608_v55  ;;  %v754_v8 = vand.u32 2147483647, %v4900_v32  ;;  %v1281_v56 = vld [vmem:[#allocation2 + $0x18] sm:$0xf] }
 0x166   :  { %1274 = vst [vmem:[#allocation2 + $0xc] sm:$0x1] %v1273_v57  ;;  %v1115_v18 = vshrl.u32 %v1091_v24, 16  ;;  %v734_v4 = vadd.f32 %v4272_v30, %v733_v43  ;;  %v1118_v17 = vshll.u32 %v1091_v24, 16  ;;  %v1284_v43 = vld [vmem:[#allocation2 + $0x1c] sm:$0x1] }
 0x167   :  { %v4274_v5 = vpop.eup %4273  ;;  %v3976_v14 = vmul.f32 -1.442695, %v4921_v0  ;;  %vm755_vm8 = vcmp.eq.f32.partialorder %v754_v8, 8.507059e+37 }
 0x168   :  { %v1117_v52 = vrot.slane %v1115_v18, 7  ;;  %v738_v16 = vsel %vm737_vm3, %v4272_v30, %v734_v4  ;;  %v746_v58 = vmul.f32 %v4274_v5, %v4900_v32  ;;  %vm751_vm4 = vweird.f32 %v4274_v5 }
 0x169   :  { %v4276_v19 = vpop.eup %4275  ;;  %v743_v6 = vsel %vm740_vm2, %v742_v7, %v738_v16  ;;  %4277 = vpow2.f32 %v3976_v14  ;;  %vm752_vm6 = vmor %vm750_vm5, %vm751_vm4  ;;  %v4949_v14 = vld [vmem:[#allocation2] sm:$0xf] }
 0x16a   :  { %v1120_v31 = vor.u32 %v1118_v17, %v1117_v52  ;;  %v1121_v34 = vrot.slane %v1117_v52, 4  ;;  %v942_v59 = vmul.f32 %v743_v6, %v4873_v26  ;;  %v747_v35 = vsub.f32 1.0, %v746_v58 }
 0x16b   :  { %v4931_v30 = vadd.f32 1.0, %v4276_v19  ;;  %v4933_v41 = vpop.f32.mrf.mxu1  ;;  %v756_v26 = vand.u32 2147483648, %v4900_v32  ;;  %v4955_v32 = vld [vmem:[%s7798_s5] ss:$0 sm:$0xff]  ;;  %v8045_v40 = vld [vmem:[#allocation22_spill] sm:$0xff] }
 0x16c   :  { %v1276_v42 = vsel %vm4907_vm12, %v1120_v31, %v1275_v20  ;;  %v1279_v44 = vsel %vm4847_vm14, %v1121_v34, %v1278_v53  ;;  %v1092_v45 = vpack.c.bf16 %v942_v59, %v942_v59  ;;  %v748_v46 = vmul.f32 %v4274_v5, %v747_v35  ;;  %v4942_v55 = vld [vmem:[#allocation2 + $0x8] sm:$0xf]  ;;  %v4966_v20 = vld [vmem:[%s7798_s5 + $0x1] ss:$0 sm:$0xff] }
 0x16d   :  { %4279 = vrcp.f32 %v4931_v30  ;;  %1277 = vst [vmem:[#allocation2 + $0x10] sm:$0xf] %v1276_v42  ;;  %v757_v18 = vor.u32 1.1754944e-38, %v756_v26  ;;  %v1382_v52 = vunpack.c.l.bf16 %v4942_v55  ;;  %v4957_v17 = vld [vmem:[#allocation2 + $0xc] sm:$0x1]  ;;  %v7813_v59 = vunpack.c.l.bf16 %v4949_v14 }
 0x16e   :  { %v1123_v47 = vshrl.u32 %v1092_v45, 16  ;;  %1280 = vst [vmem:[#allocation2 + $0x14] sm:$0x1] %v1279_v44  ;;  %v1126_v29 = vshll.u32 %v1092_v45, 16  ;;  %v749_v54 = vadd.f32 %v4274_v5, %v748_v46  ;;  %v1611_v16 = vld [vmem:[#allocation2 + $0x8] sm:$0xe]  ;;  %v1448_v35 = vunpack.c.l.bf16 %v4957_v17 }
 0x16f   :  { %v4278_v50 = vpop.eup %4277  ;;  %v4974_v27 = vld [vmem:[#allocation2 + $0x8] sm:$0xf]  ;;  %v4976_v31 = vld [vmem:[#allocation2 + $0xc] sm:$0x1]  ;;  %v1627_v42 = vunpack.c.l.bf16 %v1611_v16  ;;  %v4990_v46 = vmul.f32 %v4955_v32, %v7813_v59  ;;  %v4996_v26 = vld [vmem:[%s7798_s5 + $0x2] ss:$0 sm:$0xff]  ;;  %vm765_vm10 = vweird.f32 %v4931_v30 }
 0x170   :  { %v1125_v51 = vrot.slane %v1123_v47, 7  ;;  %v753_v7 = vsel %vm752_vm6, %v4274_v5, %v749_v54  ;;  %v4947_v12 = vadd.f32 1.0, %v4278_v50  ;;  %7966 = vst [vmem:[#allocation23_spill] sm:$0xff] %v4974_v27  ;;  %v4978_v34 = vld [vmem:[#allocation2 + $0x8] sm:$0xe] }
 0x171   :  { %v758_v5 = vsel %vm755_vm8, %v757_v18, %v753_v7  ;;  %7967 = vst [vmem:[#allocation24_spill] sm:$0xff] %v4976_v31  ;;  %v5008_v18 = vmul.f32 %v4966_v20, %v1448_v35  ;;  %v5011_v7 = vmul.f32 %v4996_v26, %v1627_v42 }
 0x172   :  { %v1128_v57 = vor.u32 %v1126_v29, %v1125_v51  ;;  %v1129_v24 = vrot.slane %v1125_v51, 4  ;;  %v943_v6 = vmul.f32 %v758_v5, %v4881_v28  ;;  %4281 = vrcp.f32 %v4947_v12  ;;  %7968 = vst [vmem:[#allocation25_spill] sm:$0xff] %v4978_v34  ;;  %v986_v34 = vld [vmem:[#allocation2 + $0x48] sm:$0x1] }
 0x173   :  { %v4945_v4 = vpop.eup %4279  ;;  %v613_v33 = vpop.f32.mrf.mxu1  ;;  %v4985_v28 = vmul.f32 %v4966_v20, %v1382_v52  ;;  %7969 = vst [vmem:[#allocation26_spill] sm:$0xff] %v5011_v7  ;;  %vm780_vm3 = vweird.f32 %v4947_v12 }
 0x174   :  { %v1282_v58 = vsel %vm4907_vm12, %v1128_v57, %v1281_v56  ;;  %v761_v19 = vmul.f32 %v4945_v4, %v4931_v30  ;;  %v1285_v53 = vsel %vm4847_vm14, %v1129_v24, %v1284_v43  ;;  %v1093_v44 = vpack.c.bf16 %v943_v6, %v943_v6  ;;  %v977_v24 = vld [vmem:[#allocation2 + $0x30] sm:$0x1] }
 0x175   :  { %1283 = vst [vmem:[#allocation2 + $0x18] sm:$0xf] %v1282_v58  ;;  %vm766_vm9 = vweird.f32 %v4945_v4  ;;  %v769_v56 = vand.u32 2147483647, %v4931_v30  ;;  %v771_v57 = vand.u32 2147483648, %v4931_v30  ;;  %v5034_v50 = vadd.f32 %v4845_v3, %v613_v33 }
 0x176   :  { %1286 = vst [vmem:[#allocation2 + $0x1c] sm:$0x1] %v1285_v53  ;;  %v762_v45 = vsub.f32 1.0, %v761_v19  ;;  %v1131_v29 = vshrl.u32 %v1093_v44, 16  ;;  %v1134_v16 = vshll.u32 %v1093_v44, 16  ;;  %vm5020_vm13 = vmor %vm765_vm10, %vm766_vm9  ;;  %v978_v44 = vsel %vm4847_vm14, 0, %v977_v24 }
 0x177   :  { %v1287_v19 = vld [vmem:[#allocation2 + $0x20] sm:$0xf]  ;;  %v1290_v53 = vld [vmem:[#allocation2 + $0x24] sm:$0x1]  ;;  %vm770_vm15 = vcmp.eq.f32.partialorder %v769_v56, 8.507059e+37 }
 0x178   :  { %v763_v54 = vmul.f32 %v4945_v4, %v762_v45  ;;  %v5005_v43 = vpop.eup %4281  ;;  %v1133_v17 = vrot.slane %v1131_v29, 7  ;;  %v1039_v29 = vld [vmem:[#allocation2 + $0x34] sm:$0x1]  ;;  %v5036_v5 = vld [vmem:[#allocation2 + $0x10] sm:$0xf] }
 0x179   :  { %v776_v45 = vmul.f32 %v5005_v43, %v4947_v12  ;;  %979 = vst [vmem:[#allocation2 + $0x30] sm:$0x1] %v978_v44  ;;  %v1612_v56 = vld [vmem:[#allocation2 + $0x10] sm:$0xe]  ;;  %vm781_vm2 = vweird.f32 %v5005_v43  ;;  %v3978_v44 = vmul.f32 -1.442695, %v5034_v50  ;;  %v7980_v36 = vunpack.c.l.bf16 %v5036_v5 }
 0x17a   :  { %v764_v6 = vadd.f32 %v4945_v4, %v763_v54  ;;  %v1136_v51 = vor.u32 %v1134_v16, %v1133_v17  ;;  %v1137_v8 = vrot.slane %v1133_v17, 4  ;;  %v5028_v54 = vadd.f32 %v4845_v3, %v4933_v41  ;;  %v980_v16 = vld [vmem:[#allocation2 + $0x38] sm:$0x1]  ;;  %vm782_vm4 = vmor %vm780_vm3, %vm781_vm2  ;;  %v5080_v59 = vld [vmem:[#allocation2 + $0x14] sm:$0x1] }
 0x17b   :  { %v616_v58 = vpop.f32.mrf.mxu1  ;;  %v772_v17 = vor.u32 1.1754944e-38, %v771_v57  ;;  %v784_v41 = vand.u32 2147483647, %v4947_v12  ;;  %v777_v57 = vsub.f32 1.0, %v776_v45  ;;  %7974 = vst [vmem:[#allocation29_spill] sm:$0xff] %v5080_v59 }
 0x17c   :  { %v768_v30 = vsel %vm5020_vm13, %v4945_v4, %v764_v6  ;;  %v1288_v24 = vsel %vm4907_vm12, %v1136_v51, %v1287_v19  ;;  %v1291_v47 = vsel %vm4847_vm14, %v1137_v8, %v1290_v53  ;;  %v5044_v42 = vadd.f32 %v4845_v3, %v616_v58  ;;  %v1042_v51 = vld [vmem:[#allocation2 + $0x3c] sm:$0x1] }
 0x17d   :  { %v5047_v4 = vmul.f32 %v4996_v26, %v1448_v35  ;;  %1289 = vst [vmem:[#allocation2 + $0x20] sm:$0xf] %v1288_v24  ;;  %v773_v33 = vsel %vm770_vm15, %v772_v17, %v768_v30  ;;  %v1040_v6 = vsel %vm4857_vm0, 0, %v1039_v29  ;;  %v786_v19 = vand.u32 2147483648, %v4947_v12  ;;  %v1433_v24 = vld [vmem:[#allocation2 + $0x14] sm:$0x1] }
 0x17e   :  { %1292 = vst [vmem:[#allocation2 + $0x24] sm:$0x1] %v1291_v47  ;;  %v944_v8 = vmul.f32 %v773_v33, %v4897_v21  ;;  %v3977_v53 = vmul.f32 -1.442695, %v5028_v54  ;;  %v981_v58 = vsel %vm4847_vm14, 0, %v980_v16  ;;  %v778_v35 = vmul.f32 %v5005_v43, %v777_v57 }
 0x17f   :  { %7972 = vst [vmem:[#allocation27_spill] sm:$0xff] %v5047_v4  ;;  %v1043_v45 = vsel %vm4857_vm0, 0, %v1042_v51  ;;  %v3979_v29 = vmul.f32 -1.442695, %v5044_v42  ;;  %v7816_v17 = vunpack.c.l.bf16 %v5036_v5  ;;  %v1628_v33 = vunpack.c.l.bf16 %v1612_v56  ;;  %v1045_v56 = vld [vmem:[#allocation2 + $0x44] sm:$0x1] }
 0x180   :  { %1041 = vst [vmem:[#allocation2 + $0x34] sm:$0x1] %v1040_v6  ;;  %v1094_v21 = vpack.c.bf16 %v944_v8, %v944_v8  ;;  %4283 = vpow2.f32 %v3977_v53  ;;  %v779_v16 = vadd.f32 %v5005_v43, %v778_v35  ;;  %v787_v6 = vor.u32 1.1754944e-38, %v786_v19  ;;  %v1293_v53 = vld [vmem:[#allocation2 + $0x28] sm:$0xf] }
 0x181   :  { %982 = vst [vmem:[#allocation2 + $0x38] sm:$0x1] %v981_v58  ;;  %4285 = vpow2.f32 %v3978_v44  ;;  %v5071_v51 = vmul.f32 %v4955_v32, %v1382_v52  ;;  %v1296_v58 = vld [vmem:[#allocation2 + $0x2c] sm:$0x1]  ;;  %vm785_vm5 = vcmp.eq.f32.partialorder %v784_v41, 8.507059e+37 }
 0x182   :  { %1044 = vst [vmem:[#allocation2 + $0x3c] sm:$0x1] %v1043_v45  ;;  %v1139_v57 = vshrl.u32 %v1094_v21, 16  ;;  %4287 = vpow2.f32 %v3979_v29  ;;  %v783_v12 = vsel %vm782_vm4, %v5005_v43, %v779_v16  ;;  %v983_v35 = vld [vmem:[#allocation2 + $0x40] sm:$0x1]  ;;  %v1142_v47 = vshll.u32 %v1094_v21, 16 }
 0x183   :  { %v618_v30 = vpop.f32.mrf.mxu1  ;;  %v5075_v45 = vld [vmem:[#allocation2 + $0x10] sm:$0xf]  ;;  %v788_v19 = vsel %vm785_vm5, %v787_v6, %v783_v12  ;;  %v984_v55 = vsel %vm4847_vm14, 0, %v983_v35  ;;  %v1449_v29 = vunpack.c.l.bf16 %v1433_v24  ;;  %v1046_v43 = vsel %vm4857_vm0, 0, %v1045_v56  ;;  %v5096_v35 = vld [vmem:[#allocation2 + $0x18] sm:$0xf] }
 0x184   :  { %7973 = vst [vmem:[#allocation28_spill] sm:$0xff] %v5075_v45  ;;  %v1141_v44 = vrot.slane %v1139_v57, 7  ;;  %v945_v8 = vmul.f32 %v788_v19, %v4921_v0  ;;  %v5088_v21 = vmul.f32 %v4966_v20, %v7816_v17  ;;  %v5091_v16 = vmul.f32 %v4996_v26, %v1628_v33  ;;  %v5094_v0 = vld [vmem:[#allocation2 + $0x10] sm:$0xe]  ;;  %v5104_v9 = vld [vmem:[#allocation2 + $0x1c] sm:$0x1] }
 0x185   :  { %985 = vst [vmem:[#allocation2 + $0x40] sm:$0x1] %v984_v55  ;;  %v5101_v55 = vadd.f32 %v4845_v3, %v618_v30  ;;  %v992_v12 = vld [vmem:[#allocation2 + $0x58] sm:$0x1]  ;;  %v5116_v30 = vmul.f32 %v4996_v26, %v1449_v29  ;;  %v1054_v17 = vld [vmem:[#allocation2 + $0x5c] sm:$0x1] }
 0x186   :  { %v4284_v41 = vpop.eup %4283  ;;  %7975 = vst [vmem:[#allocation30_spill] sm:$0xff] %v5091_v16  ;;  %v1144_v57 = vor.u32 %v1142_v47, %v1141_v44  ;;  %v1145_v6 = vrot.slane %v1141_v44, 4  ;;  %v1095_v56 = vpack.c.bf16 %v945_v8, %v945_v8 }
 0x187   :  { %1047 = vst [vmem:[#allocation2 + $0x44] sm:$0x1] %v1046_v43  ;;  %v4286_v24 = vpop.eup %4285  ;;  %v5098_v19 = vadd.f32 1.0, %v4284_v41  ;;  %v5113_v41 = vmul.f32 %v4966_v20, %v1449_v29  ;;  %v1302_v15 = vld [vmem:[#allocation2 + $0x34] sm:$0x1] }
 0x188   :  { %7976 = vst [vmem:[#allocation31_spill] sm:$0xff] %v5094_v0  ;;  %v4288_v52 = vpop.eup %4287  ;;  %v1294_v47 = vsel %vm4907_vm12, %v1144_v57, %v1293_v53  ;;  %v1297_v44 = vsel %vm4847_vm14, %v1145_v6, %v1296_v58  ;;  %v5110_v43 = vadd.f32 1.0, %v4286_v24  ;;  %v1147_v33 = vshrl.u32 %v1095_v56, 16  ;;  %v5122_v6 = vld [vmem:[#allocation2 + $0x18] sm:$0xe] }
 0x189   :  { %7977 = vst [vmem:[#allocation32_spill] sm:$0xff] %v5104_v9  ;;  %4289 = vrcp.f32 %v5098_v19  ;;  %v1150_v61 = vshll.u32 %v1095_v56, 16  ;;  %v5125_v29 = vadd.f32 1.0, %v4288_v52  ;;  %v1299_v53 = vld [vmem:[#allocation2 + $0x30] sm:$0xf]  ;;  %v993_v58 = vsel %vm4847_vm14, 0, %v992_v12 }
 0x18a   :  { %7978 = vst [vmem:[#allocation33_spill] sm:$0xff] %v5116_v30  ;;  %4291 = vrcp.f32 %v5110_v43  ;;  %v1149_v24 = vrot.slane %v1147_v33, 7  ;;  %v799_v60 = vand.u32 2147483647, %v5098_v19  ;;  %v5142_v12 = vmul.f32 %v4955_v32, %v7980_v36  ;;  %v995_v57 = vld [vmem:[#allocation2 + $0x60] sm:$0x1] }
 0x18b   :  { %v621_v8 = vpop.f32.mrf.mxu1  ;;  %1295 = vst [vmem:[#allocation2 + $0x28] sm:$0xf] %v1294_v47  ;;  %v3980_v47 = vmul.f32 -1.442695, %v5101_v55  ;;  %4293 = vrcp.f32 %v5125_v29  ;;  %v7982_v36 = vunpack.c.l.bf16 %v5104_v9  ;;  %vm795_vm6 = vweird.f32 %v5098_v19 }
 0x18c   :  { %7979 = vst [vmem:[#allocation34_spill] sm:$0xff] %v5122_v6  ;;  %v1152_v52 = vor.u32 %v1150_v61, %v1149_v24  ;;  %v1153_v33 = vrot.slane %v1149_v24, 4  ;;  %v5149_v24 = vadd.f32 %v4845_v3, %v621_v8  ;;  %v801_v8 = vand.u32 2147483648, %v5098_v19 }
 0x18d   :  { %1298 = vst [vmem:[#allocation2 + $0x2c] sm:$0x1] %v1297_v44  ;;  %v1055_v44 = vsel %vm4857_vm0, 0, %v1054_v17  ;;  %4295 = vpow2.f32 %v3980_v47  ;;  %v5159_v63 = vmul.f32 %v4966_v20, %v7982_v36  ;;  %vm810_vm8 = vweird.f32 %v5110_v43 }
 0x18e   :  { %994 = vst [vmem:[#allocation2 + $0x58] sm:$0x1] %v993_v58  ;;  %v1300_v17 = vsel %vm4907_vm12, %v1152_v52, %v1299_v53  ;;  %v1303_v61 = vsel %vm4847_vm14, %v1153_v33, %v1302_v15  ;;  %v7981_v58 = vunpack.c.l.bf16 %v5096_v35  ;;  %vm5172_vm10 = vcmp.eq.f32.partialorder %v799_v60, 8.507059e+37 }
 0x18f   :  { %v4290_v62 = vpop.eup %4289  ;;  %1056 = vst [vmem:[#allocation2 + $0x5c] sm:$0x1] %v1055_v44  ;;  %v3981_v44 = vmul.f32 -1.442695, %v5149_v24  ;;  %v829_v2 = vand.u32 2147483647, %v5125_v29  ;;  %vm825_vm5 = vweird.f32 %v5125_v29 }
 0x190   :  { %v4292_v56 = vpop.eup %4291  ;;  %v5154_v5 = vmul.f32 %v4966_v20, %v7981_v58  ;;  %1301 = vst [vmem:[#allocation2 + $0x30] sm:$0xf] %v1300_v17  ;;  %v791_v53 = vmul.f32 %v4290_v62, %v5098_v19  ;;  %v814_v17 = vand.u32 2147483647, %v5110_v43  ;;  %v816_v58 = vand.u32 2147483648, %v5110_v43 }
 0x191   :  { %1304 = vst [vmem:[#allocation2 + $0x34] sm:$0x1] %v1303_v61  ;;  %v806_v47 = vmul.f32 %v4292_v56, %v5110_v43  ;;  %vm796_vm9 = vweird.f32 %v4290_v62  ;;  %4297 = vpow2.f32 %v3981_v44  ;;  %v4294_v22 = vpop.eup %4293  ;;  %vm811_vm13 = vweird.f32 %v4292_v56 }
 0x192   :  { %v792_v33 = vsub.f32 1.0, %v791_v53  ;;  %v996_v53 = vsel %vm4847_vm14, 0, %v995_v57  ;;  %v821_v60 = vmul.f32 %v4294_v22, %v5125_v29  ;;  %v990_v44 = vsel %vm4847_vm14, 0, %v989_v48  ;;  %vm797_vm2 = vmor %vm795_vm6, %vm796_vm9 }
 0x193   :  { %v623_v15 = vpop.f32.mrf.mxu1  ;;  %v807_v61 = vsub.f32 1.0, %v806_v47  ;;  %v4296_v11 = vpop.eup %4295  ;;  %997 = vst [vmem:[#allocation2 + $0x60] sm:$0x1] %v996_v53  ;;  %vm5184_vm15 = vcmp.eq.f32.partialorder %v814_v17, 8.507059e+37  ;;  %vm812_vm3 = vmor %vm810_vm8, %vm811_vm13  ;;  %vm826_vm4 = vweird.f32 %v4294_v22  ;;  %vm830_vm8 = vcmp.eq.f32.partialorder %v829_v2, 8.507059e+37 }
 0x194   :  { %v5167_v52 = vadd.f32 %v4845_v3, %v623_v15  ;;  %v793_v37 = vmul.f32 %v4290_v62, %v792_v33  ;;  %v1058_v15 = vsel %vm4857_vm0, 0, %v1057_v23  ;;  %v802_v33 = vor.u32 1.1754944e-38, %v801_v8  ;;  %991 = vst [vmem:[#allocation2 + $0x50] sm:$0x1] %v990_v44  ;;  %vm827_vm6 = vmor %vm825_vm5, %vm826_vm4 }
 0x195   :  { %v808_v10 = vmul.f32 %v4292_v56, %v807_v61  ;;  %v5188_v57 = vadd.f32 1.0, %v4296_v11  ;;  %1059 = vst [vmem:[#allocation2 + $0x64] sm:$0x1] %v1058_v15  ;;  %v817_v61 = vor.u32 1.1754944e-38, %v816_v58  ;;  %v822_v53 = vsub.f32 1.0, %v821_v60 }
 0x196   :  { %v3982_v47 = vmul.f32 -1.442695, %v5167_v52  ;;  %v794_v39 = vadd.f32 %v4290_v62, %v793_v37  ;;  %v831_v11 = vand.u32 2147483648, %v5125_v29  ;;  %v7987_v8 = vmov 0   ;;  %v1314_v29 = vld [vmem:[#allocation2 + $0x44] sm:$0x1] }
 0x197   :  { %v809_v23 = vadd.f32 %v4292_v56, %v808_v10  ;;  %4299 = vrcp.f32 %v5188_v57  ;;  %1083 = vst [vmem:[#allocation2 + $0x50] sm:$0xf] %v7987_v8  ;;  %v4298_v19 = vpop.eup %4297  ;;  %v823_v58 = vmul.f32 %v4294_v22, %v822_v53  ;;  %v846_v36 = vand.u32 2147483648, %v5188_v57 }
 0x198   :  { %v798_v48 = vsel %vm797_vm2, %v4290_v62, %v794_v39  ;;  %4301 = vpow2.f32 %v3982_v47  ;;  %v5206_v15 = vadd.f32 1.0, %v4298_v19  ;;  %v832_v47 = vor.u32 1.1754944e-38, %v831_v11 }
 0x199   :  { %v803_v10 = vsel %vm5172_vm10, %v802_v33, %v798_v48  ;;  %v813_v17 = vsel %vm812_vm3, %v4292_v56, %v809_v23  ;;  %v824_v44 = vadd.f32 %v4294_v22, %v823_v58  ;;  %v998_v33 = vld [vmem:[#allocation2 + $0x68] sm:$0x1]  ;;  %v844_v23 = vand.u32 2147483647, %v5188_v57 }
 0x19a   :  { %v946_v62 = vmul.f32 %v803_v10, %v5028_v54  ;;  %v818_v43 = vsel %vm5184_vm15, %v817_v61, %v813_v17  ;;  %4303 = vrcp.f32 %v5206_v15  ;;  %v1060_v61 = vld [vmem:[#allocation2 + $0x6c] sm:$0x1]  ;;  %vm840_vm9 = vweird.f32 %v5188_v57  ;;  %v1305_v10 = vld [vmem:[#allocation2 + $0x38] sm:$0xf] }
 0x19b   :  { %v626_v37 = vpop.f32.mrf.mxu1  ;;  %v947_v60 = vmul.f32 %v818_v43, %v5034_v50  ;;  %v828_v54 = vsel %vm827_vm6, %v4294_v22, %v824_v44  ;;  %v999_v50 = vsel %vm4847_vm14, 0, %v998_v33  ;;  %v847_v22 = vor.u32 1.1754944e-38, %v846_v36 }
 0x19c   :  { %v1096_v56 = vpack.c.bf16 %v946_v62, %v946_v62  ;;  %v833_v19 = vsel %vm830_vm8, %v832_v47, %v828_v54  ;;  %1000 = vst [vmem:[#allocation2 + $0x68] sm:$0x1] %v999_v50  ;;  %vm5223_vm10 = vcmp.eq.f32.partialorder %v844_v23, 8.507059e+37  ;;  %v1061_v33 = vsel %vm4857_vm0, 0, %v1060_v61  ;;  %v1311_v23 = vld [vmem:[#allocation2 + $0x40] sm:$0xf] }
 0x19d   :  { %v1097_v38 = vpack.c.bf16 %v947_v60, %v947_v60  ;;  %v5216_v53 = vpop.eup %4299  ;;  %v948_v58 = vmul.f32 %v833_v19, %v5044_v42  ;;  %v1308_v60 = vld [vmem:[#allocation2 + $0x3c] sm:$0x1]  ;;  %v5230_v47 = vadd.f32 %v4845_v3, %v626_v37  ;;  %1062 = vst [vmem:[#allocation2 + $0x6c] sm:$0x1] %v1061_v33  ;;  %vm855_vm13 = vweird.f32 %v5206_v15 }
 0x19e   :  { %v1155_v48 = vshrl.u32 %v1096_v56, 16  ;;  %v4302_v11 = vpop.eup %4301  ;;  %v836_v2 = vmul.f32 %v5216_v53, %v5188_v57  ;;  %v1158_v43 = vshll.u32 %v1096_v56, 16  ;;  %vm841_vm15 = vweird.f32 %v5216_v53 }
 0x19f   :  { %v1163_v17 = vshrl.u32 %v1097_v38, 16  ;;  %v1166_v42 = vshll.u32 %v1097_v38, 16  ;;  %v1098_v19 = vpack.c.bf16 %v948_v58, %v948_v58  ;;  %v5235_v1 = vadd.f32 1.0, %v4302_v11  ;;  %v1317_v58 = vld [vmem:[#allocation2 + $0x58] sm:$0xf]  ;;  %vm842_vm2 = vmor %vm840_vm9, %vm841_vm15 }
 0x1a0   :  { %v1157_v62 = vrot.slane %v1155_v48, 7  ;;  %v837_v39 = vsub.f32 1.0, %v836_v2  ;;  %v5232_v36 = vpop.eup %4303  ;;  %v1320_v2 = vld [vmem:[#allocation2 + $0x5c] sm:$0x1]  ;;  %v987_v44 = vsel %vm4847_vm14, 0, %v986_v34 }
 0x1a1   :  { %v1165_v50 = vrot.slane %v1163_v17, 7  ;;  %v1171_v37 = vshrl.u32 %v1098_v19, 16  ;;  %4305 = vrcp.f32 %v5235_v1  ;;  %vm856_vm3 = vweird.f32 %v5232_v36  ;;  %988 = vst [vmem:[#allocation2 + $0x48] sm:$0x1] %v987_v44 }
 0x1a2   :  { %v1160_v56 = vor.u32 %v1158_v43, %v1157_v62  ;;  %v1161_v48 = vrot.slane %v1157_v62, 4  ;;  %v838_v62 = vmul.f32 %v5216_v53, %v837_v39  ;;  %v851_v43 = vmul.f32 %v5232_v36, %v5206_v15  ;;  %v1063_v39 = vld [vmem:[#allocation2 + $0x74] sm:$0x1]  ;;  %vm857_vm4 = vmor %vm855_vm13, %vm856_vm3  ;;  %1086 = vst [vmem:[#allocation2 + $0x48] sm:$0xf] %v7987_v8 }
 0x1a3   :  { %v628_v54 = vpop.f32.mrf.mxu1  ;;  %v1168_v61 = vor.u32 %v1166_v42, %v1165_v50  ;;  %v1169_v0 = vrot.slane %v1165_v50, 4  ;;  %v1173_v50 = vrot.slane %v1171_v37, 7  ;;  %v1174_v42 = vshll.u32 %v1098_v19, 16 }
 0x1a4   :  { %v1306_v38 = vsel %vm4907_vm12, %v1160_v56, %v1305_v10  ;;  %v1309_v17 = vsel %vm4847_vm14, %v1161_v48, %v1308_v60  ;;  %v1001_v10 = vld [vmem:[#allocation2 + $0x70] sm:$0x1]  ;;  %v839_v60 = vadd.f32 %v5216_v53, %v838_v62  ;;  %v852_v56 = vsub.f32 1.0, %v851_v43  ;;  %v5265_v62 = vld [vmem:[#allocation2 + $0x20] sm:$0xf] }
 0x1a5   :  { %1307 = vst [vmem:[#allocation2 + $0x38] sm:$0xf] %v1306_v38  ;;  %v1312_v11 = vsel %vm4907_vm12, %v1168_v61, %v1311_v23  ;;  %v1315_v33 = vsel %vm4847_vm14, %v1169_v0, %v1314_v29  ;;  %v861_v48 = vand.u32 2147483648, %v5206_v15  ;;  %v1176_v38 = vor.u32 %v1174_v42, %v1173_v50 }
 0x1a6   :  { %1310 = vst [vmem:[#allocation2 + $0x3c] sm:$0x1] %v1309_v17  ;;  %v1177_v59 = vrot.slane %v1173_v50, 4  ;;  %v859_v0 = vand.u32 2147483647, %v5206_v15  ;;  %v5258_v29 = vadd.f32 %v4845_v3, %v628_v54  ;;  %v843_v19 = vsel %vm842_vm2, %v5216_v53, %v839_v60 }
 0x1a7   :  { %1313 = vst [vmem:[#allocation2 + $0x40] sm:$0xf] %v1312_v11  ;;  %v853_v23 = vmul.f32 %v5232_v36, %v852_v56  ;;  %v1002_v61 = vsel %vm4847_vm14, 0, %v1001_v10  ;;  %v1048_v17 = vld [vmem:[#allocation2 + $0x4c] sm:$0x1]  ;;  %v1318_v57 = vsel %vm4907_vm12, %v1176_v38, %v1317_v58  ;;  %v848_v53 = vsel %vm5223_vm10, %v847_v22, %v843_v19 }
 0x1a8   :  { %1316 = vst [vmem:[#allocation2 + $0x44] sm:$0x1] %v1315_v33  ;;  %v1321_v3 = vsel %vm4847_vm14, %v1177_v59, %v1320_v2  ;;  %v1064_v54 = vsel %vm4857_vm0, 0, %v1063_v39  ;;  %v949_v43 = vmul.f32 %v848_v53, %v5101_v55  ;;  %v862_v33 = vor.u32 1.1754944e-38, %v861_v48  ;;  %v5286_v22 = vld [vmem:[%s7797_s4] ss:$0 sm:$0xff]  ;;  %v5295_v2 = vpop.eup %4305 }
 0x1a9   :  { %1003 = vst [vmem:[#allocation2 + $0x70] sm:$0x1] %v1002_v61  ;;  %v854_v11 = vadd.f32 %v5232_v36, %v853_v23  ;;  %v3983_v50 = vmul.f32 -1.442695, %v5230_v47  ;;  %v3984_v59 = vmul.f32 -1.442695, %v5258_v29  ;;  %v7991_v60 = vunpack.c.l.bf16 %v5096_v35 }
 0x1aa   :  { %1319 = vst [vmem:[#allocation2 + $0x58] sm:$0xf] %v1318_v57  ;;  %v1049_v58 = vsel %vm4857_vm0, 0, %v1048_v17  ;;  %v5297_v15 = vld [vmem:[#allocation2 + $0x20] sm:$0xe]  ;;  %v1099_v42 = vpack.c.bf16 %v949_v43, %v949_v43  ;;  %vm860_vm5 = vcmp.eq.f32.partialorder %v859_v0, 8.507059e+37  ;;  %v866_v39 = vmul.f32 %v5295_v2, %v5235_v1 }
 0x1ab   :  { %v631_v37 = vpop.f32.mrf.mxu1  ;;  %1322 = vst [vmem:[#allocation2 + $0x5c] sm:$0x1] %v1321_v3  ;;  %v858_v10 = vsel %vm857_vm4, %v5232_v36, %v854_v11  ;;  %v5303_v56 = vmul.f32 %v4955_v32, %v7991_v60  ;;  %v5305_v48 = vld [vmem:[#allocation2 + $0x24] sm:$0x1]  ;;  %v1385_v38 = vunpack.c.l.bf16 %v5265_v62  ;;  %v7993_v19 = vunpack.c.l.bf16 %v4949_v14  ;;  %v5317_v61 = vld [vmem:[#allocation2 + $0x28] sm:$0xf] }
 0x1ac   :  { %v5289_v55 = vadd.f32 %v5286_v22, %v631_v37  ;;  %7990 = vst [vmem:[#allocation35_spill] sm:$0xff] %v5297_v15  ;;  %v863_v34 = vsel %vm860_vm5, %v862_v33, %v858_v10  ;;  %v1179_v0 = vshrl.u32 %v1099_v42, 16  ;;  %4307 = vpow2.f32 %v3983_v50  ;;  %v1004_v57 = vld [vmem:[#allocation2 + $0x78] sm:$0x1]  ;;  %v1066_v3 = vld [vmem:[#allocation2 + $0x7c] sm:$0x1] }
 0x1ad   :  { %1065 = vst [vmem:[#allocation2 + $0x74] sm:$0x1] %v1064_v54  ;;  %v5313_v36 = vmul.f32 %v4966_v20, %v7993_v19  ;;  %v950_v35 = vmul.f32 %v863_v34, %v5149_v24  ;;  %v867_v17 = vsub.f32 1.0, %v866_v39  ;;  %4309 = vpow2.f32 %v3984_v59  ;;  %v5328_v11 = vld [vmem:[#allocation2 + $0x2c] sm:$0x1] }
 0x1ae   :  { %7992 = vst [vmem:[#allocation36_spill] sm:$0xff] %v5305_v48  ;;  %v3985_v23 = vmul.f32 -1.442695, %v5289_v55  ;;  %v7994_v14 = vunpack.c.l.bf16 %v4972_v25  ;;  %v7837_v53 = vunpack.c.l.bf16 %v5305_v48  ;;  %v1181_v24 = vrot.slane %v1179_v0, 7  ;;  %v1323_v33 = vld [vmem:[#allocation2 + $0x60] sm:$0xf] }
 0x1af   :  { %1050 = vst [vmem:[#allocation2 + $0x4c] sm:$0x1] %v1049_v58  ;;  %v1182_v54 = vshll.u32 %v1099_v42, 16  ;;  %v1005_v43 = vsel %vm4847_vm14, 0, %v1004_v57  ;;  %v1100_v50 = vpack.c.bf16 %v950_v35, %v950_v35  ;;  %v1067_v44 = vsel %vm4857_vm0, 0, %v1066_v3 }
 0x1b0   :  { %v5323_v62 = vmul.f32 %v4966_v20, %v7994_v14  ;;  %7995 = vst [vmem:[#allocation37_spill] sm:$0xff] %v5328_v11  ;;  %4311 = vpow2.f32 %v3985_v23  ;;  %v1051_v59 = vld [vmem:[#allocation2 + $0x54] sm:$0x1]  ;;  %v5333_v58 = vmul.f32 %v4955_v32, %v1385_v38  ;;  %v1326_v60 = vld [vmem:[#allocation2 + $0x64] sm:$0x1]  ;;  %v868_v34 = vmul.f32 %v5295_v2, %v867_v17 }
 0x1b1   :  { %v1184_v10 = vor.u32 %v1182_v54, %v1181_v24  ;;  %v874_v42 = vand.u32 2147483647, %v5235_v1  ;;  %v876_v39 = vand.u32 2147483648, %v5235_v1  ;;  %v5338_v19 = vld [vmem:[#allocation2 + $0x58] sm:$0xf]  ;;  %v1185_v0 = vrot.slane %v1181_v24, 4 }
 0x1b2   :  { %1006 = vst [vmem:[#allocation2 + $0x78] sm:$0x1] %v1005_v43  ;;  %v1386_v35 = vunpack.c.l.bf16 %v5317_v61  ;;  %v5342_v23 = vmul.f32 %v4966_v20, %v1385_v38  ;;  %v4308_v3 = vpop.eup %4307  ;;  %v1619_v14 = vld [vmem:[#allocation2 + $0x58] sm:$0xe]  ;;  %vm871_vm6 = vweird.f32 %v5295_v2  ;;  %v1052_v54 = vsel %vm4857_vm0, 0, %v1051_v59 }
 0x1b3   :  { %v1324_v17 = vsel %vm4907_vm12, %v1184_v10, %v1323_v33  ;;  %1068 = vst [vmem:[#allocation2 + $0x7c] sm:$0x1] %v1067_v44  ;;  %v5353_v61 = vmul.f32 %v4966_v20, %v7837_v53  ;;  %v4310_v38 = vpop.eup %4309  ;;  %v1440_v24 = vld [vmem:[#allocation2 + $0x5c] sm:$0x1]  ;;  %v1327_v43 = vsel %vm4847_vm14, %v1185_v0, %v1326_v60  ;;  %v1187_v37 = vshrl.u32 %v1100_v50, 16 }
 0x1b4   :  { %1325 = vst [vmem:[#allocation2 + $0x60] sm:$0xf] %v1324_v17  ;;  %vm870_vm8 = vweird.f32 %v5235_v1  ;;  %v1390_v44 = vunpack.c.l.bf16 %v5338_v19  ;;  %v869_v59 = vadd.f32 %v5295_v2, %v868_v34  ;;  %vm5361_vm9 = vcmp.eq.f32.partialorder %v874_v42, 8.507059e+37  ;;  %v5365_v57 = vld [vmem:[#allocation2 + $0x30] sm:$0xf] }
 0x1b5   :  { %1328 = vst [vmem:[#allocation2 + $0x64] sm:$0x1] %v1327_v43  ;;  %v877_v53 = vor.u32 1.1754944e-38, %v876_v39  ;;  %v1635_v31 = vunpack.c.l.bf16 %v1619_v14  ;;  %v1189_v60 = vrot.slane %v1187_v37, 7  ;;  %v1190_v0 = vshll.u32 %v1100_v50, 16  ;;  %vm872_vm10 = vmor %vm870_vm8, %vm871_vm6 }
 0x1b6   :  { %v4312_v17 = vpop.eup %4311  ;;  %v5369_v1 = vadd.f32 1.0, %v4308_v3  ;;  %1053 = vst [vmem:[#allocation2 + $0x54] sm:$0x1] %v1052_v54  ;;  %v1456_v19 = vunpack.c.l.bf16 %v1440_v24  ;;  %v1329_v43 = vld [vmem:[#allocation2 + $0x68] sm:$0xf]  ;;  %v873_v34 = vsel %vm872_vm10, %v5295_v2, %v869_v59  ;;  %v5372_v42 = vadd.f32 1.0, %v4310_v38  ;;  %v633_v59 = vpop.f32.mrf.mxu1 }
 0x1b7   :  { %v5374_v33 = vadd.f32 1.0, %v4312_v17  ;;  %v5376_v39 = vld [vmem:[#allocation2 + $0x38] sm:$0xf]  ;;  %v1192_v45 = vor.u32 %v1190_v0, %v1189_v60  ;;  %v1193_v14 = vrot.slane %v1189_v60, 4  ;;  %v1332_v37 = vld [vmem:[#allocation2 + $0x6c] sm:$0x1]  ;;  %v878_v50 = vsel %vm5361_vm9, %v877_v53, %v873_v34 }
 0x1b8   :  { %4313 = vrcp.f32 %v5369_v1  ;;  %1084 = vst [vmem:[#allocation2 + $0x54] sm:$0x1] %v7987_v8  ;;  %v951_v3 = vmul.f32 %v878_v50, %v5167_v52  ;;  %v5385_v54 = vmul.f32 %v4955_v32, %v1386_v35  ;;  %v5392_v53 = vld [vmem:[#allocation2 + $0x50] sm:$0xf]  ;;  %v5396_v52 = vmul.f32 %v4966_v20, %v1386_v35  ;;  %v5398_v17 = vld [vmem:[#allocation2 + $0x58] sm:$0xf] }
 0x1b9   :  { %v1330_v24 = vsel %vm4907_vm12, %v1192_v45, %v1329_v43  ;;  %4315 = vrcp.f32 %v5372_v42  ;;  %7998 = vst [vmem:[#allocation38_spill] sm:$0xff] %v5398_v17  ;;  %v5400_v60 = vld [vmem:[#allocation2 + $0x5c] sm:$0x1]  ;;  %v5402_v0 = vld [vmem:[#allocation2 + $0x58] sm:$0xe]  ;;  %v1333_v45 = vsel %vm4847_vm14, %v1193_v14, %v1332_v37  ;;  %v8001_v34 = vunpack.c.l.bf16 %v5328_v11 }
 0x1ba   :  { %7999 = vst [vmem:[#allocation39_spill] sm:$0xff] %v5400_v60  ;;  %v1101_v43 = vpack.c.bf16 %v951_v3, %v951_v3  ;;  %4317 = vrcp.f32 %v5374_v33  ;;  %v5413_v35 = vmul.f32 %v4966_v20, %v1390_v44  ;;  %v5416_v38 = vmul.f32 %v4966_v20, %v1456_v19  ;;  %v4153_v37 = vld [vmem:[%s7800_s7 + $0x38] sm:$0xff]  ;;  %v1335_v7 = vld [vmem:[#allocation2 + $0x70] sm:$0xf]  ;;  %v5460_v60 = vld [vmem:[#allocation2 + $0x34] sm:$0x1] }
 0x1bb   :  { %8000 = vst [vmem:[#allocation40_spill] sm:$0xff] %v5402_v0  ;;  %v5410_v50 = vmul.f32 %v4966_v20, %v8001_v34  ;;  %v5419_v10 = vmul.f32 %v4996_v26, %v1635_v31  ;;  %v5422_v2 = vmul.f32 %v4996_v26, %v1456_v19  ;;  %v5428_v3 = vadd.f32 %v5286_v22, %v633_v59  ;;  %v1338_v0 = vld [vmem:[#allocation2 + $0x74] sm:$0x1]  ;;  %v1007_v48 = vld [vmem:[#allocation2 + $0x80] sm:$0x1] }
 0x1bc   :  { %1331 = vst [vmem:[#allocation2 + $0x68] sm:$0xf] %v1330_v24  ;;  %v1195_v14 = vshrl.u32 %v1101_v43, 16  ;;  %v8004_v27 = vunpack.c.l.bf16 %v5365_v57  ;;  %v8005_v22 = vunpack.c.l.bf16 %v5376_v39  ;;  %v5447_v34 = vmul.f32 %v4955_v32, %v1390_v44  ;;  %3086 = vmatpush.bf16.msrb.mxu1 %v4153_v37  ;;  %v5471_v24 = vld [vmem:[#allocation2 + $0x64] sm:$0x1] }
 0x1bd   :  { %8002 = vst [vmem:[#allocation41_spill] sm:$0xff] %v5419_v10  ;;  %v1198_v11 = vshll.u32 %v1101_v43, 16  ;;  %v889_v37 = vand.u32 2147483647, %v5369_v1  ;;  %v8006_v15 = vunpack.c.l.bf16 %v5392_v53  ;;  %v1620_v44 = vld [vmem:[#allocation2 + $0x60] sm:$0xe]  ;;  %vm885_vm13 = vweird.f32 %v5369_v1 }
 0x1be   :  { %8003 = vst [vmem:[#allocation42_spill] sm:$0xff] %v5422_v2  ;;  %v5434_v16 = vmul.f32 %v4955_v32, %v8004_v27  ;;  %v5436_v31 = vpop.eup %4313  ;;  %v5444_v59 = vmul.f32 %v4955_v32, %v8005_v22  ;;  %v5449_v27 = vld [vmem:[#allocation2 + $0x60] sm:$0xf]  ;;  %v1197_v4 = vrot.slane %v1195_v14, 7  ;;  %vm900_vm15 = vweird.f32 %v5372_v42  ;;  %v1069_v22 = vld [vmem:[#allocation2 + $0x84] sm:$0x1] }
 0x1bf   :  { %1334 = vst [vmem:[#allocation2 + $0x6c] sm:$0x1] %v1333_v45  ;;  %v881_v19 = vmul.f32 %v5436_v31, %v5369_v1  ;;  %v5454_v45 = vpop.eup %4315  ;;  %v5468_v30 = vmul.f32 %v4955_v32, %v8006_v15  ;;  %v891_v32 = vand.u32 2147483648, %v5369_v1  ;;  %vm886_vm2 = vweird.f32 %v5436_v31 }
 0x1c0   :  { %1087 = vst [vmem:[#allocation2 + $0x4c] sm:$0x1] %v7987_v8  ;;  %v5462_v43 = vpop.eup %4317  ;;  %v1200_v14 = vor.u32 %v1198_v11, %v1197_v4  ;;  %v1201_v17 = vrot.slane %v1197_v4, 4  ;;  %v896_v11 = vmul.f32 %v5454_v45, %v5372_v42  ;;  %vm915_vm3 = vweird.f32 %v5374_v33  ;;  %vm887_vm4 = vmor %vm885_vm13, %vm886_vm2 }
 0x1c1   :  { %8007 = vst [vmem:[#allocation43_spill] sm:$0xff] %v5468_v30  ;;  %v882_v10 = vsub.f32 1.0, %v881_v19  ;;  %v1008_v19 = vsel %vm4847_vm14, 0, %v1007_v48  ;;  %v911_v9 = vmul.f32 %v5462_v43, %v5374_v33  ;;  %v904_v25 = vand.u32 2147483647, %v5372_v42 }
 0x1c2   :  { %v1336_v4 = vsel %vm4907_vm12, %v1200_v14, %v1335_v7  ;;  %v1339_v2 = vsel %vm4847_vm14, %v1201_v17, %v1338_v0  ;;  %v1457_v7 = vunpack.c.l.bf16 %v5471_v24  ;;  %v1636_v14 = vunpack.c.l.bf16 %v1620_v44  ;;  %v1010_v30 = vld [vmem:[#allocation2 + $0x88] sm:$0x1]  ;;  %1009 = vst [vmem:[#allocation2 + $0x80] sm:$0x1] %v1008_v19 }
 0x1c3   :  { %v883_v15 = vmul.f32 %v5436_v31, %v882_v10  ;;  %1337 = vst [vmem:[#allocation2 + $0x70] sm:$0xf] %v1336_v4  ;;  %v8008_v0 = vunpack.c.l.bf16 %v5449_v27  ;;  %v897_v6 = vsub.f32 1.0, %v896_v11  ;;  %v892_v24 = vor.u32 1.1754944e-38, %v891_v32 }
 0x1c4   :  { %1340 = vst [vmem:[#allocation2 + $0x74] sm:$0x1] %v1339_v2  ;;  %v906_v44 = vand.u32 2147483648, %v5372_v42  ;;  %v912_v4 = vsub.f32 1.0, %v911_v9  ;;  %vm890_vm5 = vcmp.eq.f32.partialorder %v889_v37, 8.507059e+37  ;;  %vm901_vm6 = vweird.f32 %v5454_v45 }
 0x1c5   :  { %v5494_v10 = vmul.f32 %v4966_v20, %v8008_v0  ;;  %v884_v48 = vadd.f32 %v5436_v31, %v883_v15  ;;  %v1070_v20 = vsel %vm4857_vm0, 0, %v1069_v22  ;;  %v898_v11 = vmul.f32 %v5454_v45, %v897_v6  ;;  %v1072_v15 = vld [vmem:[#allocation2 + $0x8c] sm:$0x1]  ;;  %vm5520_vm10 = vmor %vm900_vm15, %vm901_vm6 }
 0x1c6   :  { %1071 = vst [vmem:[#allocation2 + $0x84] sm:$0x1] %v1070_v20  ;;  %v913_v1 = vmul.f32 %v5462_v43, %v912_v4  ;;  %vm916_vm8 = vweird.f32 %v5462_v43  ;;  %v921_v32 = vand.u32 2147483648, %v5374_v33  ;;  %vm5513_vm9 = vcmp.eq.f32.partialorder %v904_v25, 8.507059e+37 }
 0x1c7   :  { %v888_v2 = vsel %vm887_vm4, %v5436_v31, %v884_v48  ;;  %v899_v9 = vadd.f32 %v5454_v45, %v898_v11  ;;  %v919_v6 = vand.u32 2147483647, %v5374_v33  ;;  %v907_v37 = vor.u32 1.1754944e-38, %v906_v44  ;;  %vm5547_vm13 = vmor %vm915_vm3, %vm916_vm8  ;;  %v1075_v11 = vld [vmem:[#allocation2 + $0x94] sm:$0x1] }
 0x1c8   :  { %v893_v0 = vsel %vm890_vm5, %v892_v24, %v888_v2  ;;  %v914_v48 = vadd.f32 %v5462_v43, %v913_v1  ;;  %v1073_v25 = vsel %vm4857_vm0, 0, %v1072_v15  ;;  %v5532_v24 = vld [vmem:[%s7798_s5 + $0x1] ss:$0 sm:$0xff]  ;;  %v5538_v20 = vmul.f32 %v4996_v26, %v1636_v14  ;;  %v1013_v2 = vld [vmem:[#allocation2 + $0x90] sm:$0x1] }
 0x1c9   :  { %v952_v19 = vmul.f32 %v893_v0, %v5230_v47  ;;  %v1011_v47 = vsel %vm4847_vm14, 0, %v1010_v30  ;;  %v5535_v42 = vmul.f32 %v5532_v24, %v1457_v7  ;;  %v903_v4 = vsel %vm5520_vm10, %v5454_v45, %v899_v9  ;;  %v5551_v15 = vld [vmem:[#allocation2 + $0x3c] sm:$0x1]  ;;  %1074 = vst [vmem:[#allocation2 + $0x8c] sm:$0x1] %v1073_v25 }
 0x1ca   :  { %8013 = vst [vmem:[#allocation44_spill] sm:$0xff] %v5538_v20  ;;  %v908_v26 = vsel %vm5513_vm9, %v907_v37, %v903_v4  ;;  %v918_v45 = vsel %vm5547_vm13, %v5462_v43, %v914_v48  ;;  %v922_v14 = vor.u32 1.1754944e-38, %v921_v32  ;;  %v3986_v33 = vmul.f32 -1.442695, %v5428_v3  ;;  %v5562_v0 = vld [vmem:[%s7798_s5 + $0x2] ss:$0 sm:$0xff] }
 0x1cb   :  { %v1102_v44 = vpack.c.bf16 %v952_v19, %v952_v19  ;;  %1012 = vst [vmem:[#allocation2 + $0x88] sm:$0x1] %v1011_v47  ;;  %v5565_v1 = vmul.f32 %v5562_v0, %v1457_v7  ;;  %v5567_v19 = vld [vmem:[#allocation2 + $0x60] sm:$0xf]  ;;  %v5569_v9 = vld [vmem:[#allocation2 + $0x68] sm:$0xf]  ;;  %v953_v22 = vmul.f32 %v908_v26, %v5258_v29 }
 0x1cc   :  { %8017 = vst [vmem:[#allocation46_spill] sm:$0xff] %v5567_v19  ;;  %vm920_vm15 = vcmp.eq.f32.partialorder %v919_v6, 8.507059e+37  ;;  %v5572_v43 = vld [vmem:[#allocation2 + $0x6c] sm:$0x1]  ;;  %4319 = vpow2.f32 %v3986_v33  ;;  %v1014_v37 = vsel %vm4847_vm14, 0, %v1013_v2  ;;  %v1076_v48 = vsel %vm4857_vm0, 0, %v1075_v11 }
 0x1cd   :  { %8016 = vst [vmem:[#allocation45_spill] sm:$0xff] %v5565_v1  ;;  %v1203_v31 = vshrl.u32 %v1102_v44, 16  ;;  %v923_v32 = vsel %vm920_vm15, %v922_v14, %v918_v45  ;;  %v1206_v47 = vshll.u32 %v1102_v44, 16  ;;  %v1341_v25 = vld [vmem:[#allocation2 + $0x78] sm:$0xf]  ;;  %v1103_v4 = vpack.c.bf16 %v953_v22, %v953_v22  ;;  %v4151_v20 = vld [vmem:[%s7800_s7 + $0x28] sm:$0xff] }
 0x1ce   :  { %8018 = vst [vmem:[#allocation47_spill] sm:$0xff] %v5572_v43  ;;  %v954_v30 = vmul.f32 %v923_v32, %v5289_v55  ;;  %v1392_v26 = vunpack.c.l.bf16 %v5569_v9  ;;  %v1344_v45 = vld [vmem:[#allocation2 + $0x7c] sm:$0x1]  ;;  %v5583_v14 = vld [vmem:[#allocation2 + $0x64] sm:$0x1]  ;;  %vm1529_vm2 = vcmask 1046528  }
 0x1cf   :  { %v1205_v7 = vrot.slane %v1203_v31, 7  ;;  %1015 = vst [vmem:[#allocation2 + $0x90] sm:$0x1] %v1014_v37  ;;  %v5585_v11 = vld [vmem:[#allocation2 + $0x60] sm:$0xe]  ;;  %v1211_v55 = vshrl.u32 %v1103_v4, 16 }
 0x1d0   :  { %1077 = vst [vmem:[#allocation2 + $0x94] sm:$0x1] %v1076_v48  ;;  %v1104_v37 = vpack.c.bf16 %v954_v30, %v954_v30  ;;  %v5591_v48 = vld [vmem:[#allocation2 + $0x54] sm:$0x1]  ;;  %v5593_v6 = vld [vmem:[#allocation2 + $0x68] sm:$0xe]  ;;  %v5602_v30 = vmul.f32 %v5532_v24, %v1392_v26 }
 0x1d1   :  { %8019 = vst [vmem:[#allocation48_spill] sm:$0xff] %v5583_v14  ;;  %v1208_v33 = vor.u32 %v1206_v47, %v1205_v7  ;;  %v1209_v31 = vrot.slane %v1205_v7, 4  ;;  %v1213_v7 = vrot.slane %v1211_v55, 7  ;;  %v1214_v2 = vshll.u32 %v1103_v4, 16  ;;  %v1347_v17 = vld [vmem:[#allocation2 + $0x80] sm:$0xf] }
 0x1d2   :  { %8020 = vst [vmem:[#allocation49_spill] sm:$0xff] %v5585_v11  ;;  %v4320_v44 = vpop.eup %4319  ;;  %v1350_v9 = vld [vmem:[#allocation2 + $0x84] sm:$0x1]  ;;  %v1219_v19 = vshrl.u32 %v1104_v37, 16  ;;  %v1222_v14 = vshll.u32 %v1104_v37, 16  ;;  %v1563_v1 = vrot.slane %v5602_v30, 1  ;;  %v8029_v13 = vunpack.c.l.bf16 %v5591_v48 }
 0x1d3   :  { %8021 = vst [vmem:[#allocation50_spill] sm:$0xff] %v5593_v6  ;;  %v1342_v29 = vsel %vm4907_vm12, %v1208_v33, %v1341_v25  ;;  %v1345_v47 = vsel %vm4847_vm14, %v1209_v31, %v1344_v45  ;;  %v4152_v25 = vld [vmem:[%s7800_s7 + $0x30] sm:$0xff]  ;;  %v8022_v45 = vunpack.c.l.bf16 %v5572_v43  ;;  %v1216_v31 = vor.u32 %v1214_v2, %v1213_v7  ;;  %v1353_v37 = vld [vmem:[#allocation2 + $0x88] sm:$0xf] }
 0x1d4   :  { %1343 = vst [vmem:[#allocation2 + $0x78] sm:$0xf] %v1342_v29  ;;  %v1377_v33 = vld [vmem:[#allocation2 + $0x70] sm:$0xf]  ;;  %v1217_v55 = vrot.slane %v1213_v7, 4  ;;  %v5612_v32 = vadd.f32 1.0, %v4320_v44  ;;  %3087 = vmatpush.bf16.msrb.mxu1 %v4152_v25  ;;  %v8023_v2 = vunpack.c.l.bf16 %v5449_v27 }
 0x1d5   :  { %v5610_v4 = vmul.f32 %v5532_v24, %v8022_v45  ;;  %1346 = vst [vmem:[#allocation2 + $0x7c] sm:$0x1] %v1345_v47  ;;  %v5615_v29 = vld [vmem:[#allocation2 + $0x74] sm:$0x1]  ;;  %v1221_v11 = vrot.slane %v1219_v19, 7  ;;  %v1348_v47 = vsel %vm4907_vm12, %v1216_v31, %v1347_v17 }
 0x1d6   :  { %v5623_v45 = vld [vmem:[%s7798_s5] ss:$0 sm:$0xff]  ;;  %v1351_v19 = vsel %vm4847_vm14, %v1217_v55, %v1350_v9  ;;  %v1356_v7 = vld [vmem:[#allocation2 + $0x8c] sm:$0x1]  ;;  %4321 = vrcp.f32 %v5612_v32  ;;  %v1016_v25 = vld [vmem:[#allocation2 + $0x98] sm:$0x1]  ;;  %v8024_v55 = vunpack.c.l.bf16 %v5365_v57  ;;  %v7870_v30 = vunpack.c.l.bf16 %v5615_v29 }
 0x1d7   :  { %v5628_v44 = vmul.f32 %v5623_v45, %v8023_v2  ;;  %1349 = vst [vmem:[#allocation2 + $0x80] sm:$0xf] %v1348_v47  ;;  %v1224_v27 = vor.u32 %v1222_v14, %v1221_v11  ;;  %v1225_v43 = vrot.slane %v1221_v11, 4  ;;  %v1393_v2 = vunpack.c.l.bf16 %v1377_v33  ;;  %v1078_v9 = vld [vmem:[#allocation2 + $0x9c] sm:$0x1] }
 0x1d8   :  { %v1564_v6 = vrot.slane %v5610_v4, 1  ;;  %1352 = vst [vmem:[#allocation2 + $0x84] sm:$0x1] %v1351_v19  ;;  %v1017_v17 = vsel %vm4847_vm14, 0, %v1016_v25  ;;  %v5641_v31 = vmul.f32 %v5623_v45, %v1392_v26  ;;  %v5646_v22 = vmul.f32 %v5532_v24, %v8024_v55  ;;  %3088 = vmatpush.bf16.msrb.mxu1 %v4151_v20  ;;  %v4150_v4 = vld [vmem:[%s7800_s7 + $0x20] sm:$0xff] }
 0x1d9   :  { %v1354_v14 = vsel %vm4907_vm12, %v1224_v27, %v1353_v37  ;;  %v1357_v11 = vsel %vm4847_vm14, %v1225_v43, %v1356_v7  ;;  %1018 = vst [vmem:[#allocation2 + $0x98] sm:$0x1] %v1017_v17  ;;  %v8025_v26 = vunpack.c.l.bf16 %v5460_v60  ;;  %v5661_v33 = vld [vmem:[#allocation2 + $0x70] sm:$0xe]  ;;  %v1079_v47 = vsel %vm4857_vm0, 0, %v1078_v9 }
 0x1da   :  { %1355 = vst [vmem:[#allocation2 + $0x88] sm:$0xf] %v1354_v14  ;;  %v8026_v19 = vunpack.c.l.bf16 %v5376_v39  ;;  %v8027_v43 = vunpack.c.l.bf16 %v5551_v15  ;;  %v8028_v7 = vunpack.c.l.bf16 %v5392_v53  ;;  %v5681_v27 = vmul.f32 %v5623_v45, %v1393_v2 }
 0x1db   :  { %v5659_v57 = vmul.f32 %v5532_v24, %v8025_v26  ;;  %1358 = vst [vmem:[#allocation2 + $0x8c] sm:$0x1] %v1357_v11  ;;  %v5686_v39 = vmul.f32 %v5532_v24, %v8029_v13  ;;  %v8030_v17 = vrot.slane %v5323_v62, 1  ;;  %v8031_v9 = vrot.slane %v5313_v36, 1 }
 0x1dc   :  { %v5668_v20 = vmul.f32 %v5532_v24, %v8026_v19  ;;  %v5673_v37 = vmul.f32 %v5532_v24, %v8027_v43  ;;  %v5678_v25 = vmul.f32 %v5532_v24, %v8028_v7  ;;  %v1542_v53 = vrot.slane %v5342_v23, 1  ;;  %v4322_v14 = vpop.eup %4321  ;;  %1080 = vst [vmem:[#allocation2 + $0x9c] sm:$0x1] %v1079_v47  ;;  %3089 = vmatpush.bf16.msrb.mxu1 %v4150_v4  ;;  %v4149_v23 = vld [vmem:[%s7800_s7 + $0x18] sm:$0xff] }
 0x1dd   :  { %v1532_v55 = vsel %vm1529_vm2, %v8031_v9, %v8030_v17  ;;  %v934_v26 = vand.u32 2147483647, %v5612_v32  ;;  %v936_v11 = vand.u32 2147483648, %v5612_v32  ;;  %v8032_v19 = vrot.slane %v5008_v18, 1  ;;  %1088 = vst [vmem:[#allocation2 + $0x98] sm:$0xf] %v7987_v8 }
 0x1de   :  { %v8033_v43 = vrot.slane %v4985_v28, 1  ;;  %v1543_v62 = vrot.slane %v5353_v61, 1  ;;  %v926_v13 = vmul.f32 %v4322_v14, %v5612_v32  ;;  %v5709_v47 = vmul.f32 %v5532_v24, %v1393_v2  ;;  %1089 = vst [vmem:[#allocation2 + $0x9c] sm:$0x1] %v7987_v8  ;;  %v5717_v17 = vld [vmem:[#allocation2 + $0x78] sm:$0xf] }
 0x1df   :  { %v8034_v28 = vrot.slane %v5113_v41, 1  ;;  %v8035_v18 = vrot.slane %v5088_v21, 1  ;;  %v5719_v4 = vld [vmem:[#allocation2 + $0x7c] sm:$0x1]  ;;  %v5724_v9 = vmul.f32 %v5532_v24, %v7870_v30  ;;  %v8036_v2 = vrot.slane %v5159_v63, 1 }
 0x1e0   :  { %v1535_v7 = vsel %vm1529_vm2, %v8033_v43, %v8032_v19  ;;  %v8037_v19 = vrot.slane %v5154_v5, 1  ;;  %v8038_v21 = vrot.slane %v5416_v38, 1  ;;  %v8039_v43 = vrot.slane %v5413_v35, 1  ;;  %v5744_v63 = vld [vmem:[#allocation2 + $0x80] sm:$0xf]  ;;  %3090 = vmatpush.bf16.msrb.mxu1 %v4149_v23 }
 0x1e1   :  { %v1538_v61 = vsel %vm1529_vm2, %v8035_v18, %v8034_v28  ;;  %v8040_v28 = vrot.slane %v5535_v42, 1  ;;  %v8041_v18 = vrot.slane %v5494_v10, 1  ;;  %v927_v30 = vsub.f32 1.0, %v926_v13  ;;  %v5746_v5 = vld [vmem:[#allocation2 + $0x84] sm:$0x1] }
 0x1e2   :  { %v1541_v41 = vsel %vm1529_vm2, %v8037_v19, %v8036_v2  ;;  %v1559_v8 = vsel %vm1529_vm2, %v8039_v43, %v8038_v21  ;;  %vm930_vm0 = vweird.f32 %v5612_v32  ;;  %v5749_v38 = vsel %vm1529_vm2, %v1563_v1, %v1564_v6  ;;  %v4148_v1 = vld [vmem:[%s7800_s7 + $0x10] sm:$0xff]  ;;  %v1380_v6 = vld [vmem:[#allocation2 + $0x88] sm:$0xf]  ;;  %v5766_v21 = vld [vmem:[#allocation2 + $0x8c] sm:$0x1] }
 0x1e3   :  { %v5741_v36 = vsel %vm1529_vm2, %v8041_v18, %v8040_v28  ;;  %v5752_v35 = vadd.f32 %v1532_v55, %v4990_v46  ;;  %vm5754_vm3 = vcmp.eq.f32.partialorder %v934_v26, 8.507059e+37  ;;  %v937_v10 = vor.u32 1.1754944e-38, %v936_v11 }
 0x1e4   :  { %v1544_v2 = vsel %vm1529_vm2, %v1542_v53, %v1543_v62  ;;  %v1545_v13 = vrot.slane %v5396_v52, 1  ;;  %v928_v19 = vmul.f32 %v4322_v14, %v927_v30  ;;  %vm931_vm4 = vweird.f32 %v4322_v14  ;;  %3091 = vmatpush.bf16.msrb.mxu1 %v4148_v1 }
 0x1e5   :  { %v1394_v46 = vunpack.c.l.bf16 %v5717_v17  ;;  %v1460_v55 = vunpack.c.l.bf16 %v5719_v4  ;;  %v1395_v26 = vunpack.c.l.bf16 %v5744_v63  ;;  %v1461_v53 = vunpack.c.l.bf16 %v5746_v5  ;;  %vm932_vm5 = vmor %vm930_vm0, %vm931_vm4 }
 0x1e6   :  { %v5770_v52 = vadd.f32 %v1535_v7, %v5071_v51  ;;  %v5773_v30 = vadd.f32 %v1538_v61, %v5142_v12  ;;  %v929_v11 = vadd.f32 %v4322_v14, %v928_v19  ;;  %v1396_v62 = vunpack.c.l.bf16 %v1380_v6  ;;  %v4147_v61 = vld [vmem:[%s7800_s7 + $0x8] sm:$0xff] }
 0x1e7   :  { %v1462_v23 = vunpack.c.l.bf16 %v5766_v21  ;;  %v5777_v17 = vadd.f32 %v1541_v41, %v5303_v56  ;;  %v1546_v43 = vrot.slane %v5410_v50, 1  ;;  %v1548_v28 = vrot.slane %v5646_v22, 1 }
 0x1e8   :  { %v1549_v51 = vrot.slane %v5659_v57, 1  ;;  %v1551_v12 = vrot.slane %v5668_v20, 1  ;;  %v933_v7 = vsel %vm932_vm5, %v4322_v14, %v929_v11  ;;  %v1491_v56 = vmul.f32 %v5532_v24, %v1394_v46  ;;  %3092 = vmatpush.bf16.msrb.mxu1 %v4147_v61 }
 0x1e9   :  { %v1492_v32 = vmul.f32 %v5532_v24, %v1460_v55  ;;  %v1552_v50 = vrot.slane %v5673_v37, 1  ;;  %v938_v22 = vsel %vm5754_vm3, %v937_v10, %v933_v7  ;;  %v1493_v57 = vmul.f32 %v5532_v24, %v1395_v26 }
 0x1ea   :  { %v1494_v20 = vmul.f32 %v5532_v24, %v1461_v53  ;;  %v1554_v14 = vrot.slane %v5678_v25, 1  ;;  %v955_v41 = vmul.f32 %v938_v22, %v5428_v3  ;;  %v1495_v18 = vmul.f32 %v5532_v24, %v1396_v62  ;;  %v4146_v3 = vld [vmem:[%s7800_s7] sm:$0xff] }
 0x1eb   :  { %v1496_v63 = vmul.f32 %v5532_v24, %v1462_v23  ;;  %v1555_v37 = vrot.slane %v5686_v39, 1  ;;  %v1566_v42 = vrot.slane %v5709_v47, 1  ;;  %v1567_v10 = vrot.slane %v5724_v9, 1 }
 0x1ec   :  { %v5810_v19 = vadd.f32 %v1544_v2, %v5333_v58  ;;  %v5813_v1 = vadd.f32 %v1559_v8, %v5447_v34  ;;  %v1105_v25 = vpack.c.bf16 %v955_v41, %v955_v41  ;;  %v1547_v24 = vsel %vm1529_vm2, %v1545_v13, %v1546_v43  ;;  %v1610_v43 = vld [vmem:[#allocation2] sm:$0xe]  ;;  %3093 = vmatpush.bf16.msrb.mxu1 %v4146_v3 }
 0x1ed   :  { %v1569_v6 = vrot.slane %v1491_v56, 1  ;;  %v1570_v39 = vrot.slane %v1492_v32, 1  ;;  %v1550_v47 = vsel %vm1529_vm2, %v1548_v28, %v1549_v51  ;;  %v1553_v9 = vsel %vm1529_vm2, %v1551_v12, %v1552_v50  ;;  %v1615_v56 = vld [vmem:[#allocation2 + $0x28] sm:$0xe]  ;;  %v1359_v50 = vld [vmem:[#allocation2 + $0x90] sm:$0xf] }
 0x1ee   :  { %v1572_v11 = vrot.slane %v1493_v57, 1  ;;  %v1573_v58 = vrot.slane %v1494_v20, 1  ;;  %v1227_v2 = vshrl.u32 %v1105_v25, 16  ;;  %v1556_v34 = vsel %vm1529_vm2, %v1554_v14, %v1555_v37  ;;  %v1362_v57 = vld [vmem:[#allocation2 + $0x94] sm:$0x1] }
 0x1ef   :  { %v1575_v8 = vrot.slane %v1495_v18, 1  ;;  %v1576_v7 = vrot.slane %v1496_v63, 1  ;;  %v1412_v61 = vmul.f32 %v5623_v45, %v1394_v46  ;;  %v1413_v22 = vmul.f32 %v5623_v45, %v1395_v26  ;;  %v1616_v14 = vld [vmem:[#allocation2 + $0x30] sm:$0xe] }
 0x1f0   :  { %v1414_v41 = vmul.f32 %v5623_v45, %v1396_v62  ;;  %v1568_v13 = vsel %vm1529_vm2, %v1566_v42, %v1567_v10  ;;  %v1229_v28 = vrot.slane %v1227_v2, 7  ;;  %v1230_v51 = vshll.u32 %v1105_v25, 16  ;;  %v8044_v62 = vld [vmem:[#allocation43_spill] sm:$0xff]  ;;  %v1623_v25 = vld [vmem:[#allocation2 + $0x78] sm:$0xe] }
 0x1f1   :  { %v1571_v12 = vsel %vm1529_vm2, %v1569_v6, %v1570_v39  ;;  %v5828_v32 = vadd.f32 %v1547_v24, %v5385_v54  ;;  %v1574_v46 = vsel %vm1529_vm2, %v1572_v11, %v1573_v58  ;;  %v5832_v26 = vadd.f32 %v1550_v47, %v5434_v16  ;;  %v1617_v54 = vld [vmem:[#allocation2 + $0x38] sm:$0xe]  ;;  %v1618_v42 = vld [vmem:[#allocation2 + $0x50] sm:$0xe]  ;;  %v1624_v6 = vld [vmem:[#allocation2 + $0x80] sm:$0xe] }
 0x1f2   :  { %v5835_v45 = vadd.f32 %v1553_v9, %v5444_v59  ;;  %v5838_v20 = vadd.f32 %v1556_v34, %v8044_v62  ;;  %v1232_v18 = vor.u32 %v1230_v51, %v1229_v28  ;;  %v1233_v63 = vrot.slane %v1229_v28, 4  ;;  %v1625_v9 = vld [vmem:[#allocation2 + $0x88] sm:$0xe] }
 0x1f3   :  { %v1577_v37 = vsel %vm1529_vm2, %v1575_v8, %v1576_v7  ;;  %v1626_v10 = vunpack.c.l.bf16 %v1610_v43  ;;  %v5843_v3 = vadd.f32 %v5741_v36, %v5628_v44  ;;  %v5847_v16 = vadd.f32 %v5749_v38, %v5641_v31  ;;  %v8051_v28 = vld [vmem:[#allocation35_spill] sm:$0xff] }
 0x1f4   :  { %v5850_v59 = vadd.f32 %v1568_v13, %v5681_v27  ;;  %v5852_v24 = vadd.f32 %v1571_v12, %v1412_v61  ;;  %v1360_v39 = vsel %vm4907_vm12, %v1232_v18, %v1359_v50  ;;  %v1363_v47 = vsel %vm4847_vm14, %v1233_v63, %v1362_v57  ;;  %v8047_v61 = vld [vmem:[#allocation34_spill] sm:$0xff]  ;;  %v8053_v50 = vld [vmem:[#allocation36_spill] sm:$0xff] }
 0x1f5   :  { %v1631_v11 = vunpack.c.l.bf16 %v1615_v56  ;;  %v1632_v44 = vunpack.c.l.bf16 %v1616_v14  ;;  %1361 = vst [vmem:[#allocation2 + $0x90] sm:$0xf] %v1360_v39  ;;  %v5858_v36 = vadd.f32 %v1574_v46, %v1413_v22  ;;  %v5860_v31 = vadd.f32 %v1577_v37, %v1414_v41  ;;  %v8049_v22 = vld [vmem:[#allocation32_spill] sm:$0xff]  ;;  %v8055_v14 = vld [vmem:[#allocation37_spill] sm:$0xff] }
 0x1f6   :  { %v1633_v38 = vunpack.c.l.bf16 %v1617_v54  ;;  %v1634_v27 = vunpack.c.l.bf16 %v1618_v42  ;;  %1364 = vst [vmem:[#allocation2 + $0x94] sm:$0x1] %v1363_v47  ;;  %v1639_v58 = vunpack.c.l.bf16 %v1623_v25  ;;  %v1640_v2 = vunpack.c.l.bf16 %v1624_v6 }
 0x1f7   :  { %v1644_v34 = vmul.f32 %v5562_v0, %v1626_v10  ;;  %v8046_v8 = vunpack.c.l.bf16 %v8045_v40  ;;  %v1641_v7 = vunpack.c.l.bf16 %v1625_v9  ;;  %v8048_v13 = vunpack.c.l.bf16 %v8047_v61  ;;  %v8062_v61 = vld [vmem:[#allocation47_spill] sm:$0xff] }
 0x1f8   :  { %v8050_v56 = vunpack.c.l.bf16 %v8049_v22  ;;  %v8052_v51 = vunpack.c.l.bf16 %v8051_v28  ;;  %v8054_v57 = vunpack.c.l.bf16 %v8053_v50  ;;  %v1654_v62 = vmul.f32 %v5562_v0, %v1631_v11  ;;  %v8060_v11 = vld [vmem:[#allocation50_spill] sm:$0xff] }
 0x1f9   :  { %v1645_v49 = vmul.f32 %v5562_v0, %v8046_v8  ;;  %v1650_v43 = vmul.f32 %v5562_v0, %v8048_v13  ;;  %v8056_v18 = vunpack.c.l.bf16 %v8055_v14  ;;  %v1656_v37 = vmul.f32 %v5562_v0, %v1632_v44  ;;  %v8070_v14 = vld [vmem:[#allocation33_spill] sm:$0xff] }
 0x1fa   :  { %v1651_v41 = vmul.f32 %v5562_v0, %v8050_v56  ;;  %v1652_v12 = vmul.f32 %v5562_v0, %v8052_v51  ;;  %v1653_v46 = vmul.f32 %v5562_v0, %v8054_v57  ;;  %v8057_v54 = vunpack.c.l.bf16 %v5460_v60  ;;  %v8066_v51 = vld [vmem:[#allocation27_spill] sm:$0xff]  ;;  %v8068_v57 = vld [vmem:[#allocation26_spill] sm:$0xff] }
 0x1fb   :  { %v1655_v63 = vmul.f32 %v5562_v0, %v8056_v18  ;;  %v1658_v10 = vmul.f32 %v5562_v0, %v1633_v38  ;;  %v8058_v25 = vunpack.c.l.bf16 %v5551_v15  ;;  %v1660_v39 = vmul.f32 %v5562_v0, %v1634_v27  ;;  %v8072_v18 = vld [vmem:[#allocation30_spill] sm:$0xff] }
 0x1fc   :  { %v1657_v42 = vmul.f32 %v5562_v0, %v8057_v54  ;;  %v8059_v47 = vunpack.c.l.bf16 %v5591_v48  ;;  %v8061_v40 = vunpack.c.l.bf16 %v8060_v11  ;;  %v1708_v8 = vrot.slane %v1644_v34, 2 }
 0x1fd   :  { %v1659_v6 = vmul.f32 %v5562_v0, %v8058_v25  ;;  %v1709_v60 = vrot.slane %v1645_v49, 2  ;;  %v8063_v13 = vunpack.c.l.bf16 %v8062_v61  ;;  %v8064_v15 = vunpack.c.l.bf16 %v5661_v33 }
 0x1fe   :  { %v1661_v9 = vmul.f32 %v5562_v0, %v8059_v47  ;;  %v1666_v44 = vmul.f32 %v5562_v0, %v8061_v40  ;;  %v8065_v27 = vunpack.c.l.bf16 %v5615_v29  ;;  %v1670_v56 = vmul.f32 %v5562_v0, %v1639_v58 }
 0x1ff   :  { %v1667_v38 = vmul.f32 %v5562_v0, %v8063_v13  ;;  %v1668_v22 = vmul.f32 %v5562_v0, %v8064_v15  ;;  %v1671_v28 = vmul.f32 %v5562_v0, %v1460_v55  ;;  %v1672_v34 = vmul.f32 %v5562_v0, %v1640_v2 }
 0x200   :  { %v1669_v48 = vmul.f32 %v5562_v0, %v8065_v27  ;;  %v1673_v49 = vmul.f32 %v5562_v0, %v1461_v53  ;;  %v1674_v33 = vmul.f32 %v5562_v0, %v1641_v7  ;;  %v1675_v29 = vmul.f32 %v5562_v0, %v1462_v23 }
 0x201   :  { %v8067_v50 = vrot.slane %v8066_v51, 2  ;;  %v8069_v58 = vrot.slane %v8068_v57, 2  ;;  %v8071_v55 = vrot.slane %v8070_v14, 2  ;;  %v8073_v2 = vrot.slane %v8072_v18, 2 }
 0x202   :  { %v1717_v54 = vrot.slane %v1650_v43, 2  ;;  %v1710_v53 = vsel %vm159_vm1, %v1708_v8, %v1709_v60  ;;  %v1718_v7 = vrot.slane %v1651_v41, 2  ;;  %v1720_v25 = vrot.slane %v1652_v12, 2  ;;  %v8080_v60 = vld [vmem:[#allocation44_spill] sm:$0xff] }
 0x203   :  { %v1713_v4 = vsel %vm159_vm1, %v8069_v58, %v8067_v50  ;;  %v1716_v5 = vsel %vm159_vm1, %v8073_v2, %v8071_v55  ;;  %v1721_v21 = vrot.slane %v1653_v46, 2  ;;  %v1723_v47 = vrot.slane %v1654_v62, 2 }
 0x204   :  { %v1724_v0 = vrot.slane %v1655_v63, 2  ;;  %v1726_v23 = vrot.slane %v1656_v37, 2  ;;  %v1727_v11 = vrot.slane %v1657_v42, 2  ;;  %v1729_v40 = vrot.slane %v1658_v10, 2  ;;  %v8074_v42 = vld [vmem:[#allocation42_spill] sm:$0xff] }
 0x205   :  { %v1730_v61 = vrot.slane %v1659_v6, 2  ;;  %v1732_v13 = vrot.slane %v1660_v39, 2  ;;  %v1733_v15 = vrot.slane %v1661_v9, 2  ;;  %v1741_v27 = vrot.slane %v1666_v44, 2  ;;  %v8076_v6 = vld [vmem:[#allocation41_spill] sm:$0xff] }
 0x206   :  { %v1742_v51 = vrot.slane %v1667_v38, 2  ;;  %v1744_v50 = vrot.slane %v1668_v22, 2  ;;  %v1745_v57 = vrot.slane %v1669_v48, 2  ;;  %v1747_v58 = vrot.slane %v1670_v56, 2  ;;  %v8078_v44 = vld [vmem:[#allocation45_spill] sm:$0xff] }
 0x207   :  { %v1748_v14 = vrot.slane %v1671_v28, 2  ;;  %v1750_v43 = vrot.slane %v1672_v34, 2  ;;  %v1751_v55 = vrot.slane %v1673_v49, 2  ;;  %v1719_v41 = vsel %vm159_vm1, %v1717_v54, %v1718_v7  ;;  %v5947_v49 = vld [vmem:[#allocation2 + $0x18] sm:$0xf] }
 0x208   :  { %v1722_v12 = vsel %vm159_vm1, %v1720_v25, %v1721_v21  ;;  %v1753_v46 = vrot.slane %v1674_v33, 2  ;;  %v1754_v62 = vrot.slane %v1675_v29, 2  ;;  %v1725_v63 = vsel %vm159_vm1, %v1723_v47, %v1724_v0  ;;  %v5953_v54 = vld [vmem:[#allocation2 + $0x68] sm:$0xf]  ;;  %v5959_v0 = vld [vmem:[#allocation2 + $0x20] sm:$0xf] }
 0x209   :  { %v1728_v37 = vsel %vm159_vm1, %v1726_v23, %v1727_v11  ;;  %v8075_v10 = vrot.slane %v8074_v42, 2  ;;  %v8077_v39 = vrot.slane %v8076_v6, 2  ;;  %v8079_v8 = vrot.slane %v8078_v44, 2  ;;  %v5961_v23 = vld [vmem:[#allocation2 + $0x28] sm:$0xf] }
 0x20a   :  { %v8081_v38 = vrot.slane %v8080_v60, 2  ;;  %v1731_v48 = vsel %vm159_vm1, %v1729_v40, %v1730_v61  ;;  %v1734_v56 = vsel %vm159_vm1, %v1732_v13, %v1733_v15  ;;  %v1743_v28 = vsel %vm159_vm1, %v1741_v27, %v1742_v51  ;;  %v5969_v40 = vld [vmem:[#allocation2 + $0x38] sm:$0xf]  ;;  %v5977_v61 = vld [vmem:[#allocation2 + $0x70] sm:$0xf] }
 0x20b   :  { %v1737_v9 = vsel %vm159_vm1, %v8077_v39, %v8075_v10  ;;  %v1746_v34 = vsel %vm159_vm1, %v1744_v50, %v1745_v57  ;;  %v1749_v33 = vsel %vm159_vm1, %v1747_v58, %v1748_v14  ;;  %v1752_v29 = vsel %vm159_vm1, %v1750_v43, %v1751_v55  ;;  %v5985_v13 = vld [vmem:[#allocation2 + $0x80] sm:$0xf]  ;;  %v5987_v15 = vld [vmem:[#allocation2 + $0x88] sm:$0xf] }
 0x20c   :  { %v1740_v22 = vsel %vm159_vm1, %v8081_v38, %v8079_v8  ;;  %v1772_v18 = vadd.f32 %v1710_v53, %v5752_v35  ;;  %v1773_v2 = vadd.f32 %v1713_v4, %v5770_v52  ;;  %v1755_v7 = vsel %vm159_vm1, %v1753_v46, %v1754_v62  ;;  %v5967_v53 = vld [vmem:[#allocation2 + $0x30] sm:$0xf]  ;;  %v8086_v8 = vld [vmem:[#allocation38_spill] sm:$0xff] }
 0x20d   :  { %v1774_v25 = vadd.f32 %v1716_v5, %v5773_v30  ;;  %v1775_v21 = vadd.f32 %v1719_v41, %v5777_v17  ;;  %v1776_v47 = vadd.f32 %v1722_v12, %v5810_v19  ;;  %v1777_v11 = vadd.f32 %v1725_v63, %v5828_v32  ;;  %v5971_v30 = vld [vmem:[#allocation2 + $0x40] sm:$0xf]  ;;  %v8082_v12 = vld [vmem:[#allocation23_spill] sm:$0xff]  ;;  %v8084_v63 = vld [vmem:[#allocation28_spill] sm:$0xff] }
 0x20e   :  { %v1778_v35 = vadd.f32 %v1728_v37, %v5832_v26  ;;  %v1779_v52 = vadd.f32 %v1731_v48, %v5835_v45  ;;  %v1780_v4 = vadd.f32 %v1734_v56, %v5838_v20  ;;  %v1781_v17 = vadd.f32 %v1737_v9, %v5813_v1  ;;  %v5979_v26 = vld [vmem:[#allocation2 + $0x78] sm:$0xf]  ;;  %v4183_v45 = vld [vmem:[%s7798_s5 + $0x3] ss:$0 sm:$0xff]  ;;  %v5989_v1 = vld [vmem:[#allocation2 + $0x90] sm:$0xf] }
 0x20f   :  { %v1782_v19 = vadd.f32 %v1740_v22, %v5843_v3  ;;  %v1783_v5 = vadd.f32 %v1743_v28, %v5847_v16  ;;  %v1784_v32 = vadd.f32 %v1746_v34, %v5850_v59  ;;  %v1785_v20 = vadd.f32 %v1749_v33, %v5852_v24  ;;  %v8088_v22 = vld [vmem:[#allocation46_spill] sm:$0xff] }
 0x210   :  { %v1806_v3 = vunpack.c.l.bf16 %v5947_v49  ;;  %v1807_v16 = vunpack.c.l.bf16 %v5959_v0  ;;  %v1808_v59 = vunpack.c.l.bf16 %v5961_v23  ;;  %v1786_v27 = vadd.f32 %v1752_v29, %v5858_v36 }
 0x211   :  { %v1809_v51 = vunpack.c.l.bf16 %v5967_v53  ;;  %v7878_v50 = vunpack.c.l.bf16 %v5969_v40  ;;  %v7874_v24 = vunpack.c.l.bf16 %v5971_v30  ;;  %v1787_v57 = vadd.f32 %v1755_v7, %v5860_v31 }
 0x212   :  { %v7871_v58 = vunpack.c.l.bf16 %v5953_v54  ;;  %v7872_v14 = vunpack.c.l.bf16 %v5977_v61  ;;  %v7873_v43 = vunpack.c.l.bf16 %v5979_v26  ;;  %v7875_v55 = vunpack.c.l.bf16 %v5985_v13 }
 0x213   :  { %v7877_v41 = vunpack.c.l.bf16 %v5987_v15  ;;  %v7876_v36 = vunpack.c.l.bf16 %v5989_v1  ;;  %v8083_v46 = vunpack.c.l.bf16 %v8082_v12  ;;  %v8085_v37 = vunpack.c.l.bf16 %v8084_v63 }
 0x214   :  { %v1824_v31 = vmul.f32 %v4183_v45, %v1806_v3  ;;  %v1825_v10 = vmul.f32 %v4183_v45, %v1807_v16  ;;  %v1826_v6 = vmul.f32 %v4183_v45, %v1808_v59  ;;  %v1827_v39 = vmul.f32 %v4183_v45, %v1809_v51 }
 0x215   :  { %v1822_v62 = vmul.f32 %v4183_v45, %v8083_v46  ;;  %v1823_v42 = vmul.f32 %v4183_v45, %v8085_v37  ;;  %v1828_v9 = vmul.f32 %v4183_v45, %v7878_v50  ;;  %v1829_v44 = vmul.f32 %v4183_v45, %v7874_v24  ;;  %v6049_v24 = vld [vmem:[#allocation2 + $0x24] sm:$0x1]  ;;  %v8105_v50 = vld [vmem:[#allocation24_spill] sm:$0xff] }
 0x216   :  { %v8087_v60 = vunpack.c.l.bf16 %v8086_v8  ;;  %v8089_v48 = vunpack.c.l.bf16 %v8088_v22  ;;  %v1832_v28 = vmul.f32 %v4183_v45, %v7871_v58  ;;  %v1833_v34 = vmul.f32 %v4183_v45, %v7872_v14  ;;  %8091 = vst [vmem:[#allocation22_spill] sm:$0xff] %v6049_v24 }
 0x217   :  { %v1834_v33 = vmul.f32 %v4183_v45, %v7873_v43  ;;  %v1835_v29 = vmul.f32 %v4183_v45, %v7875_v55  ;;  %v1836_v7 = vmul.f32 %v4183_v45, %v7877_v41  ;;  %v1837_v46 = vmul.f32 %v4183_v45, %v7876_v36  ;;  %v6047_v43 = vld [vmem:[#allocation2 + $0x1c] sm:$0x1]  ;;  %v6051_v55 = vld [vmem:[#allocation2 + $0x2c] sm:$0x1] }
 0x218   :  { %v1830_v38 = vmul.f32 %v4183_v45, %v8087_v60  ;;  %v1831_v56 = vmul.f32 %v4183_v45, %v8089_v48  ;;  %v6037_v37 = vadd.f32 %v1822_v62, %v1772_v18  ;;  %v6039_v60 = vadd.f32 %v1823_v42, %v1773_v2  ;;  %8090 = vst [vmem:[#allocation43_spill] sm:$0xff] %v6047_v43  ;;  %v6056_v45 = vld [vmem:[%s7798_s5 + $0x4] ss:$0 sm:$0xff]  ;;  %v6068_v62 = vld [vmem:[#allocation2 + $0x3c] sm:$0x1] }
 0x219   :  { %v6041_v48 = vadd.f32 %v1824_v31, %v1774_v25  ;;  %v6043_v58 = vadd.f32 %v1825_v10, %v1775_v21  ;;  %v6045_v14 = vadd.f32 %v1826_v6, %v1776_v47  ;;  %8092 = vst [vmem:[#allocation34_spill] sm:$0xff] %v6051_v55  ;;  %v6058_v18 = vadd.f32 %v1827_v39, %v1777_v11  ;;  %v6066_v47 = vld [vmem:[#allocation2 + $0x34] sm:$0x1]  ;;  %v6070_v42 = vld [vmem:[#allocation2 + $0x44] sm:$0x1] }
 0x21a   :  { %v6060_v2 = vadd.f32 %v1828_v9, %v1778_v35  ;;  %v6062_v25 = vadd.f32 %v1829_v44, %v1779_v52  ;;  %v6064_v21 = vadd.f32 %v1830_v38, %v1780_v4  ;;  %8093 = vst [vmem:[#allocation32_spill] sm:$0xff] %v6066_v47  ;;  %v6072_v31 = vadd.f32 %v1831_v56, %v1781_v17  ;;  %v6080_v35 = vld [vmem:[#allocation2 + $0x6c] sm:$0x1]  ;;  %v6082_v52 = vld [vmem:[#allocation2 + $0x74] sm:$0x1] }
 0x21b   :  { %8094 = vst [vmem:[#allocation35_spill] sm:$0xff] %v6068_v62  ;;  %v6074_v10 = vadd.f32 %v1832_v28, %v1782_v19  ;;  %v6076_v6 = vadd.f32 %v1833_v34, %v1783_v5  ;;  %v6078_v11 = vadd.f32 %v1834_v33, %v1784_v32  ;;  %v6084_v4 = vld [vmem:[#allocation2 + $0x7c] sm:$0x1]  ;;  %v6086_v39 = vadd.f32 %v1835_v29, %v1785_v20  ;;  %v6092_v17 = vld [vmem:[#allocation2 + $0x84] sm:$0x1] }
 0x21c   :  { %8095 = vst [vmem:[#allocation36_spill] sm:$0xff] %v6070_v42  ;;  %v6088_v9 = vadd.f32 %v1836_v7, %v1786_v27  ;;  %v6090_v44 = vadd.f32 %v1837_v46, %v1787_v57  ;;  %v6094_v19 = vld [vmem:[#allocation2 + $0x8c] sm:$0x1]  ;;  %v6096_v5 = vld [vmem:[#allocation2 + $0x94] sm:$0x1]  ;;  %v7881_v32 = vunpack.c.l.bf16 %v6047_v43  ;;  %v7879_v38 = vunpack.c.l.bf16 %v6049_v24  ;;  %v8108_v28 = vld [vmem:[#allocation29_spill] sm:$0xff] }
 0x21d   :  { %8096 = vst [vmem:[#allocation37_spill] sm:$0xff] %v6080_v35  ;;  %v7880_v56 = vunpack.c.l.bf16 %v6051_v55  ;;  %v8104_v36 = vunpack.c.l.bf16 %v8082_v12  ;;  %v8106_v20 = vunpack.c.l.bf16 %v8105_v50  ;;  %v8107_v57 = vunpack.c.l.bf16 %v8084_v63  ;;  %v8116_v7 = vld [vmem:[#allocation39_spill] sm:$0xff] }
 0x21e   :  { %8097 = vst [vmem:[#allocation50_spill] sm:$0xff] %v6082_v52  ;;  %v8109_v33 = vunpack.c.l.bf16 %v8108_v28  ;;  %v1892_v46 = vmul.f32 %v6056_v45, %v1806_v3  ;;  %v1894_v12 = vmul.f32 %v6056_v45, %v1807_v16  ;;  %v1895_v63 = vmul.f32 %v6056_v45, %v7879_v38 }
 0x21f   :  { %8098 = vst [vmem:[#allocation47_spill] sm:$0xff] %v6084_v4  ;;  %v1888_v41 = vmul.f32 %v6056_v45, %v8104_v36  ;;  %v1889_v27 = vmul.f32 %v6056_v45, %v8106_v20  ;;  %v1890_v34 = vmul.f32 %v6056_v45, %v8107_v57  ;;  %v1893_v36 = vmul.f32 %v6056_v45, %v7881_v32 }
 0x220   :  { %8099 = vst [vmem:[#allocation27_spill] sm:$0xff] %v6088_v9  ;;  %v1891_v29 = vmul.f32 %v6056_v45, %v8109_v33  ;;  %v1896_v20 = vmul.f32 %v6056_v45, %v1808_v59  ;;  %v1897_v49 = vmul.f32 %v6056_v45, %v7880_v56  ;;  %v1898_v3 = vmul.f32 %v6056_v45, %v1809_v51 }
 0x221   :  { %8100 = vst [vmem:[#allocation26_spill] sm:$0xff] %v6090_v44  ;;  %v8110_v0 = vunpack.c.l.bf16 %v6066_v47  ;;  %v8111_v57 = vunpack.c.l.bf16 %v5969_v40  ;;  %v8112_v23 = vunpack.c.l.bf16 %v6068_v62  ;;  %v8113_v38 = vunpack.c.l.bf16 %v5971_v30  ;;  %v8119_v47 = vld [vmem:[#allocation48_spill] sm:$0xff] }
 0x222   :  { %8101 = vst [vmem:[#allocation33_spill] sm:$0xff] %v6092_v17  ;;  %v8114_v53 = vunpack.c.l.bf16 %v6070_v42  ;;  %v8115_v32 = vunpack.c.l.bf16 %v8086_v8  ;;  %v8117_v40 = vunpack.c.l.bf16 %v8116_v7  ;;  %v8118_v62 = vunpack.c.l.bf16 %v8088_v22 }
 0x223   :  { %8102 = vst [vmem:[#allocation30_spill] sm:$0xff] %v6094_v19  ;;  %v1899_v16 = vmul.f32 %v6056_v45, %v8110_v0  ;;  %v1900_v33 = vmul.f32 %v6056_v45, %v8111_v57  ;;  %v1901_v59 = vmul.f32 %v6056_v45, %v8112_v23  ;;  %v1902_v56 = vmul.f32 %v6056_v45, %v8113_v38 }
 0x224   :  { %8103 = vst [vmem:[#allocation42_spill] sm:$0xff] %v6096_v5  ;;  %v1903_v51 = vmul.f32 %v6056_v45, %v8114_v53  ;;  %v1904_v0 = vmul.f32 %v6056_v45, %v8115_v32  ;;  %v1905_v57 = vmul.f32 %v6056_v45, %v8117_v40  ;;  %v1906_v23 = vmul.f32 %v6056_v45, %v8118_v62 }
 0x225   :  { %v8120_v30 = vunpack.c.l.bf16 %v8119_v47  ;;  %v8121_v42 = vunpack.c.l.bf16 %v5953_v54  ;;  %v8122_v8 = vunpack.c.l.bf16 %v6080_v35  ;;  %v8123_v7 = vunpack.c.l.bf16 %v5977_v61 }
 0x226   :  { %v1952_v55 = vrot.slane %v1888_v41, 1  ;;  %v1953_v22 = vrot.slane %v1889_v27, 1  ;;  %v1955_v24 = vrot.slane %v1890_v34, 1  ;;  %v1956_v62 = vrot.slane %v1891_v29, 1 }
 0x227   :  { %v1907_v38 = vmul.f32 %v6056_v45, %v8120_v30  ;;  %v1908_v53 = vmul.f32 %v6056_v45, %v8121_v42  ;;  %v1909_v32 = vmul.f32 %v6056_v45, %v8122_v8  ;;  %v1910_v40 = vmul.f32 %v6056_v45, %v8123_v7 }
 0x228   :  { %v1958_v43 = vrot.slane %v1892_v46, 1  ;;  %v1959_v47 = vrot.slane %v1893_v36, 1  ;;  %v8124_v30 = vunpack.c.l.bf16 %v6082_v52  ;;  %v8125_v42 = vunpack.c.l.bf16 %v5979_v26 }
 0x229   :  { %v8126_v8 = vunpack.c.l.bf16 %v6084_v4  ;;  %v8127_v7 = vunpack.c.l.bf16 %v5985_v13  ;;  %v8128_v27 = vunpack.c.l.bf16 %v6092_v17  ;;  %v8129_v29 = vunpack.c.l.bf16 %v5987_v15 }
 0x22a   :  { %v1911_v54 = vmul.f32 %v6056_v45, %v8124_v30  ;;  %v1912_v35 = vmul.f32 %v6056_v45, %v8125_v42  ;;  %v8130_v26 = vunpack.c.l.bf16 %v6094_v19  ;;  %v8131_v30 = vunpack.c.l.bf16 %v5989_v1 }
 0x22b   :  { %v1913_v61 = vmul.f32 %v6056_v45, %v8126_v8  ;;  %v1914_v41 = vmul.f32 %v6056_v45, %v8127_v7  ;;  %v1915_v34 = vmul.f32 %v6056_v45, %v8128_v27  ;;  %v1916_v46 = vmul.f32 %v6056_v45, %v8129_v29 }
 0x22c   :  { %v1917_v36 = vmul.f32 %v6056_v45, %v8130_v26  ;;  %v1918_v42 = vmul.f32 %v6056_v45, %v8131_v30  ;;  %v8132_v13 = vunpack.c.l.bf16 %v6096_v5  ;;  %v1954_v7 = vsel %vm1529_vm2, %v1952_v55, %v1953_v22 }
 0x22d   :  { %v1961_v17 = vrot.slane %v1894_v12, 1  ;;  %v1962_v27 = vrot.slane %v1895_v63, 1  ;;  %v1957_v15 = vsel %vm1529_vm2, %v1955_v24, %v1956_v62  ;;  %v1960_v29 = vsel %vm1529_vm2, %v1958_v43, %v1959_v47 }
 0x22e   :  { %v1919_v8 = vmul.f32 %v6056_v45, %v8132_v13  ;;  %v1964_v4 = vrot.slane %v1896_v20, 1  ;;  %v1965_v19 = vrot.slane %v1897_v49, 1  ;;  %v1967_v52 = vrot.slane %v1898_v3, 1 }
 0x22f   :  { %v1968_v26 = vrot.slane %v1899_v16, 1  ;;  %v1970_v28 = vrot.slane %v1900_v33, 1  ;;  %v1971_v1 = vrot.slane %v1901_v59, 1  ;;  %v1973_v50 = vrot.slane %v1902_v56, 1 }
 0x230   :  { %v1974_v30 = vrot.slane %v1903_v51, 1  ;;  %v1976_v44 = vrot.slane %v1904_v0, 1  ;;  %v1977_v5 = vrot.slane %v1905_v57, 1  ;;  %v1979_v9 = vrot.slane %v1906_v23, 1 }
 0x231   :  { %v1980_v45 = vrot.slane %v1907_v38, 1  ;;  %v1982_v13 = vrot.slane %v1908_v53, 1  ;;  %v1983_v55 = vrot.slane %v1909_v32, 1  ;;  %v1985_v12 = vrot.slane %v1910_v40, 1  ;;  %v2034_v38 = vld [vmem:[#allocation2 + $0x18] sm:$0xe] }
 0x232   :  { %v1986_v63 = vrot.slane %v1911_v54, 1  ;;  %v1988_v22 = vrot.slane %v1912_v35, 1  ;;  %v1989_v24 = vrot.slane %v1913_v61, 1  ;;  %v1991_v62 = vrot.slane %v1914_v41, 1  ;;  %v2035_v32 = vld [vmem:[#allocation2 + $0x20] sm:$0xe] }
 0x233   :  { %v1992_v43 = vrot.slane %v1915_v34, 1  ;;  %v1994_v47 = vrot.slane %v1916_v46, 1  ;;  %v1995_v20 = vrot.slane %v1917_v36, 1  ;;  %v1963_v49 = vsel %vm1529_vm2, %v1961_v17, %v1962_v27  ;;  %v2037_v54 = vld [vmem:[#allocation2 + $0x30] sm:$0xe] }
 0x234   :  { %v1966_v3 = vsel %vm1529_vm2, %v1964_v4, %v1965_v19  ;;  %v1997_v56 = vrot.slane %v1918_v42, 1  ;;  %v1998_v16 = vrot.slane %v1919_v8, 1  ;;  %v1969_v33 = vsel %vm1529_vm2, %v1967_v52, %v1968_v26  ;;  %v2038_v61 = vld [vmem:[#allocation2 + $0x38] sm:$0xe]  ;;  %v2043_v46 = vld [vmem:[#allocation2 + $0x70] sm:$0xe] }
 0x235   :  { %v1972_v59 = vsel %vm1529_vm2, %v1970_v28, %v1971_v1  ;;  %v1975_v51 = vsel %vm1529_vm2, %v1973_v50, %v1974_v30  ;;  %v1978_v0 = vsel %vm1529_vm2, %v1976_v44, %v1977_v5  ;;  %v1981_v35 = vsel %vm1529_vm2, %v1979_v9, %v1980_v45  ;;  %v2042_v44 = vld [vmem:[#allocation2 + $0x68] sm:$0xe]  ;;  %v2044_v36 = vld [vmem:[#allocation2 + $0x78] sm:$0xe] }
 0x236   :  { %v1984_v57 = vsel %vm1529_vm2, %v1982_v13, %v1983_v55  ;;  %v1987_v23 = vsel %vm1529_vm2, %v1985_v12, %v1986_v63  ;;  %v1990_v17 = vsel %vm1529_vm2, %v1988_v22, %v1989_v24  ;;  %v1993_v4 = vsel %vm1529_vm2, %v1991_v62, %v1992_v43  ;;  %v8133_v42 = vld [vmem:[#allocation27_spill] sm:$0xff]  ;;  %v8137_v22 = vld [vmem:[#allocation25_spill] sm:$0xff]  ;;  %v8139_v43 = vld [vmem:[#allocation24_spill] sm:$0xff] }
 0x237   :  { %v1996_v19 = vsel %vm1529_vm2, %v1994_v47, %v1995_v20  ;;  %v6222_v52 = vadd.f32 %v1954_v7, %v6037_v37  ;;  %v6225_v50 = vadd.f32 %v1957_v15, %v6039_v60  ;;  %v1999_v9 = vsel %vm1529_vm2, %v1997_v56, %v1998_v16  ;;  %v6240_v37 = vld [vmem:[%s7798_s5 + $0x5] ss:$0 sm:$0xff]  ;;  %v2046_v27 = vld [vmem:[#allocation2 + $0x88] sm:$0xe]  ;;  %v2047_v15 = vld [vmem:[#allocation2 + $0x90] sm:$0xe] }
 0x238   :  { %v6229_v5 = vadd.f32 %v1960_v29, %v6041_v48  ;;  %v6232_v28 = vadd.f32 %v1963_v49, %v6043_v58  ;;  %v6235_v53 = vadd.f32 %v1966_v3, %v6045_v14  ;;  %v6243_v60 = vadd.f32 %v1969_v33, %v6058_v18  ;;  %v2036_v14 = vld [vmem:[#allocation2 + $0x28] sm:$0xe]  ;;  %v8143_v16 = vld [vmem:[#allocation29_spill] sm:$0xff] }
 0x239   :  { %v6246_v40 = vadd.f32 %v1972_v59, %v6060_v2  ;;  %v6249_v48 = vadd.f32 %v1975_v51, %v6062_v25  ;;  %v6252_v58 = vadd.f32 %v1978_v0, %v6064_v21  ;;  %v6255_v41 = vadd.f32 %v1981_v35, %v6072_v31  ;;  %v2039_v25 = vld [vmem:[#allocation2 + $0x40] sm:$0xe]  ;;  %v8141_v49 = vld [vmem:[#allocation31_spill] sm:$0xff] }
 0x23a   :  { %v6258_v34 = vadd.f32 %v1984_v57, %v6074_v10  ;;  %v6261_v18 = vadd.f32 %v1987_v23, %v6076_v6  ;;  %v6264_v2 = vadd.f32 %v1990_v17, %v6078_v11  ;;  %v6267_v21 = vadd.f32 %v1993_v4, %v6086_v39  ;;  %v8135_v31 = vld [vmem:[#allocation26_spill] sm:$0xff]  ;;  %v8145_v0 = vld [vmem:[#allocation43_spill] sm:$0xff] }
 0x23b   :  { %v6270_v8 = vadd.f32 %v1996_v19, %v8133_v42  ;;  %v6273_v7 = vadd.f32 %v1999_v9, %v8135_v31  ;;  %v2045_v10 = vld [vmem:[#allocation2 + $0x80] sm:$0xe]  ;;  %v2050_v6 = vunpack.c.l.bf16 %v2034_v38  ;;  %v2051_v29 = vunpack.c.l.bf16 %v2035_v32 }
 0x23c   :  { %v2052_v26 = vunpack.c.l.bf16 %v2036_v14  ;;  %v2053_v11 = vunpack.c.l.bf16 %v2037_v54  ;;  %v2054_v1 = vunpack.c.l.bf16 %v2038_v61  ;;  %v2055_v30 = vunpack.c.l.bf16 %v2039_v25  ;;  %v8147_v17 = vld [vmem:[#allocation22_spill] sm:$0xff]  ;;  %v8151_v54 = vld [vmem:[#allocation32_spill] sm:$0xff] }
 0x23d   :  { %8134 = vst [vmem:[#allocation41_spill] sm:$0xff] %v6270_v8  ;;  %v2058_v45 = vunpack.c.l.bf16 %v2042_v44  ;;  %v2059_v13 = vunpack.c.l.bf16 %v2043_v46  ;;  %v2060_v55 = vunpack.c.l.bf16 %v2044_v36  ;;  %v2061_v39 = vunpack.c.l.bf16 %v2045_v10  ;;  %v8149_v44 = vld [vmem:[#allocation34_spill] sm:$0xff]  ;;  %v8153_v36 = vld [vmem:[#allocation35_spill] sm:$0xff] }
 0x23e   :  { %8136 = vst [vmem:[#allocation45_spill] sm:$0xff] %v6273_v7  ;;  %v2062_v12 = vunpack.c.l.bf16 %v2046_v27  ;;  %v2063_v63 = vunpack.c.l.bf16 %v2047_v15  ;;  %v8138_v24 = vunpack.c.l.bf16 %v8137_v22  ;;  %v8140_v47 = vunpack.c.l.bf16 %v8139_v43  ;;  %v8155_v27 = vld [vmem:[#allocation36_spill] sm:$0xff]  ;;  %v8159_v22 = vld [vmem:[#allocation39_spill] sm:$0xff] }
 0x23f   :  { %v8142_v3 = vunpack.c.l.bf16 %v8141_v49  ;;  %v8144_v33 = vunpack.c.l.bf16 %v8143_v16  ;;  %v2070_v51 = vmul.f32 %v6240_v37, %v2050_v6  ;;  %v8146_v35 = vunpack.c.l.bf16 %v8145_v0  ;;  %v8165_v0 = vld [vmem:[#allocation37_spill] sm:$0xff] }
 0x240   :  { %v2066_v62 = vmul.f32 %v6240_v37, %v8138_v24  ;;  %v2067_v20 = vmul.f32 %v6240_v37, %v8140_v47  ;;  %v2072_v23 = vmul.f32 %v6240_v37, %v2051_v29  ;;  %v8148_v38 = vunpack.c.l.bf16 %v8147_v17  ;;  %v8157_v29 = vld [vmem:[#allocation40_spill] sm:$0xff]  ;;  %v8161_v47 = vld [vmem:[#allocation49_spill] sm:$0xff] }
 0x241   :  { %v2068_v56 = vmul.f32 %v6240_v37, %v8142_v3  ;;  %v2069_v59 = vmul.f32 %v6240_v37, %v8144_v33  ;;  %v2071_v57 = vmul.f32 %v6240_v37, %v8146_v35  ;;  %v2074_v19 = vmul.f32 %v6240_v37, %v2052_v26  ;;  %v8163_v3 = vld [vmem:[#allocation48_spill] sm:$0xff] }
 0x242   :  { %v2073_v4 = vmul.f32 %v6240_v37, %v8148_v38  ;;  %v8150_v9 = vunpack.c.l.bf16 %v8149_v44  ;;  %v2076_v14 = vmul.f32 %v6240_v37, %v2053_v11  ;;  %v8152_v61 = vunpack.c.l.bf16 %v8151_v54 }
 0x243   :  { %v2078_v46 = vmul.f32 %v6240_v37, %v2054_v1  ;;  %v8154_v42 = vunpack.c.l.bf16 %v8153_v36  ;;  %v2080_v10 = vmul.f32 %v6240_v37, %v2055_v30  ;;  %v8156_v15 = vunpack.c.l.bf16 %v8155_v27  ;;  %v8167_v27 = vld [vmem:[#allocation50_spill] sm:$0xff] }
 0x244   :  { %v2075_v32 = vmul.f32 %v6240_v37, %v8150_v9  ;;  %v2077_v25 = vmul.f32 %v6240_v37, %v8152_v61  ;;  %v8158_v26 = vunpack.c.l.bf16 %v8157_v29  ;;  %v8160_v24 = vunpack.c.l.bf16 %v8159_v22  ;;  %v8169_v22 = vld [vmem:[#allocation47_spill] sm:$0xff] }
 0x245   :  { %v2079_v31 = vmul.f32 %v6240_v37, %v8154_v42  ;;  %v2081_v6 = vmul.f32 %v6240_v37, %v8156_v15  ;;  %v8162_v1 = vunpack.c.l.bf16 %v8161_v47  ;;  %v8164_v16 = vunpack.c.l.bf16 %v8163_v3  ;;  %v8175_v3 = vld [vmem:[#allocation42_spill] sm:$0xff] }
 0x246   :  { %v2082_v11 = vmul.f32 %v6240_v37, %v8158_v26  ;;  %v2083_v43 = vmul.f32 %v6240_v37, %v8160_v24  ;;  %v2086_v33 = vmul.f32 %v6240_v37, %v2058_v45  ;;  %v8166_v35 = vunpack.c.l.bf16 %v8165_v0 }
 0x247   :  { %v2084_v49 = vmul.f32 %v6240_v37, %v8162_v1  ;;  %v2085_v30 = vmul.f32 %v6240_v37, %v8164_v16  ;;  %v2088_v38 = vmul.f32 %v6240_v37, %v2059_v13  ;;  %v2130_v44 = vrot.slane %v2066_v62, 2  ;;  %v8171_v1 = vld [vmem:[#allocation33_spill] sm:$0xff] }
 0x248   :  { %v2087_v17 = vmul.f32 %v6240_v37, %v8166_v35  ;;  %v2131_v9 = vrot.slane %v2067_v20, 2  ;;  %v2133_v54 = vrot.slane %v2068_v56, 2  ;;  %v2134_v61 = vrot.slane %v2069_v59, 2  ;;  %v8173_v56 = vld [vmem:[#allocation30_spill] sm:$0xff] }
 0x249   :  { %v2136_v36 = vrot.slane %v2070_v51, 2  ;;  %v2137_v42 = vrot.slane %v2071_v57, 2  ;;  %v8168_v15 = vunpack.c.l.bf16 %v8167_v27  ;;  %v2090_v26 = vmul.f32 %v6240_v37, %v2060_v55 }
 0x24a   :  { %v8170_v45 = vunpack.c.l.bf16 %v8169_v22  ;;  %v2092_v47 = vmul.f32 %v6240_v37, %v2061_v39  ;;  %v8172_v13 = vunpack.c.l.bf16 %v8171_v1  ;;  %v2094_v20 = vmul.f32 %v6240_v37, %v2062_v12 }
 0x24b   :  { %v2089_v29 = vmul.f32 %v6240_v37, %v8168_v15  ;;  %v8174_v59 = vunpack.c.l.bf16 %v8173_v56  ;;  %v2096_v57 = vmul.f32 %v6240_v37, %v2063_v63  ;;  %v8176_v55 = vunpack.c.l.bf16 %v8175_v3 }
 0x24c   :  { %v2091_v24 = vmul.f32 %v6240_v37, %v8170_v45  ;;  %v2093_v62 = vmul.f32 %v6240_v37, %v8172_v13  ;;  %v2132_v0 = vsel %vm159_vm1, %v2130_v44, %v2131_v9  ;;  %v2139_v35 = vrot.slane %v2072_v23, 2 }
 0x24d   :  { %v2095_v51 = vmul.f32 %v6240_v37, %v8174_v59  ;;  %v2097_v16 = vmul.f32 %v6240_v37, %v8176_v55  ;;  %v2140_v39 = vrot.slane %v2073_v4, 2  ;;  %v2135_v27 = vsel %vm159_vm1, %v2133_v54, %v2134_v61 }
 0x24e   :  { %v2138_v15 = vsel %vm159_vm1, %v2136_v36, %v2137_v42  ;;  %v2142_v22 = vrot.slane %v2074_v19, 2  ;;  %v2143_v12 = vrot.slane %v2075_v32, 2  ;;  %v2145_v45 = vrot.slane %v2076_v14, 2 }
 0x24f   :  { %v2146_v1 = vrot.slane %v2077_v25, 2  ;;  %v2148_v13 = vrot.slane %v2078_v46, 2  ;;  %v2149_v56 = vrot.slane %v2079_v31, 2  ;;  %v2151_v59 = vrot.slane %v2080_v10, 2 }
 0x250   :  { %v2152_v63 = vrot.slane %v2081_v6, 2  ;;  %v2154_v7 = vrot.slane %v2082_v11, 2  ;;  %v2155_v3 = vrot.slane %v2083_v43, 2  ;;  %v2157_v8 = vrot.slane %v2084_v49, 2 }
 0x251   :  { %v2158_v37 = vrot.slane %v2085_v30, 2  ;;  %v2160_v55 = vrot.slane %v2086_v33, 2  ;;  %v2161_v44 = vrot.slane %v2087_v17, 2  ;;  %v2163_v23 = vrot.slane %v2088_v38, 2 }
 0x252   :  { %v2164_v4 = vrot.slane %v2089_v29, 2  ;;  %v2166_v9 = vrot.slane %v2090_v26, 2  ;;  %v2167_v54 = vrot.slane %v2091_v24, 2  ;;  %v2169_v61 = vrot.slane %v2092_v47, 2  ;;  %v6368_v24 = vld [vmem:[#allocation2 + $0x10] sm:$0xf] }
 0x253   :  { %v2170_v36 = vrot.slane %v2093_v62, 2  ;;  %v2172_v19 = vrot.slane %v2094_v20, 2  ;;  %v2173_v32 = vrot.slane %v2095_v51, 2  ;;  %v2141_v14 = vsel %vm159_vm1, %v2139_v35, %v2140_v39  ;;  %v6384_v51 = vld [vmem:[#allocation2 + $0x28] sm:$0xf] }
 0x254   :  { %v2144_v25 = vsel %vm159_vm1, %v2142_v22, %v2143_v12  ;;  %v2175_v46 = vrot.slane %v2096_v57, 2  ;;  %v2176_v31 = vrot.slane %v2097_v16, 2  ;;  %v2147_v10 = vsel %vm159_vm1, %v2145_v45, %v2146_v1  ;;  %v6404_v35 = vld [vmem:[#allocation2 + $0x48] sm:$0xf]  ;;  %v6435_v1 = vld [vmem:[#allocation2 + $0x80] sm:$0xf] }
 0x255   :  { %v2150_v6 = vsel %vm159_vm1, %v2148_v13, %v2149_v56  ;;  %v2153_v11 = vsel %vm159_vm1, %v2151_v59, %v2152_v63  ;;  %v2156_v43 = vsel %vm159_vm1, %v2154_v7, %v2155_v3  ;;  %v2159_v49 = vsel %vm159_vm1, %v2157_v8, %v2158_v37  ;;  %v6370_v7 = vld [vmem:[#allocation2 + $0x18] sm:$0xf]  ;;  %v4186_v13 = vld [vmem:[%s7798_s5 + $0x6] ss:$0 sm:$0xff]  ;;  %v6441_v56 = vld [vmem:[#allocation2 + $0x88] sm:$0xf] }
 0x256   :  { %v2162_v30 = vsel %vm159_vm1, %v2160_v55, %v2161_v44  ;;  %v2165_v33 = vsel %vm159_vm1, %v2163_v23, %v2164_v4  ;;  %v2168_v17 = vsel %vm159_vm1, %v2166_v9, %v2167_v54  ;;  %v2171_v38 = vsel %vm159_vm1, %v2169_v61, %v2170_v36  ;;  %v6445_v59 = vld [vmem:[#allocation2 + $0x98] sm:$0xf] }
 0x257   :  { %v2174_v42 = vsel %vm159_vm1, %v2172_v19, %v2173_v32  ;;  %v6363_v29 = vadd.f32 %v2132_v0, %v6222_v52  ;;  %v6366_v26 = vadd.f32 %v2135_v27, %v6225_v50  ;;  %v2177_v8 = vsel %vm159_vm1, %v2175_v46, %v2176_v31  ;;  %v6382_v52 = vld [vmem:[#allocation2 + $0x20] sm:$0xf]  ;;  %v6386_v50 = vld [vmem:[#allocation2 + $0x30] sm:$0xf]  ;;  %v6420_v27 = vld [vmem:[#allocation2 + $0x68] sm:$0xf] }
 0x258   :  { %v6374_v47 = vadd.f32 %v2138_v15, %v6229_v5  ;;  %v6377_v62 = vadd.f32 %v2141_v14, %v6232_v28  ;;  %v6380_v20 = vadd.f32 %v2144_v25, %v6235_v53  ;;  %v6389_v57 = vadd.f32 %v2147_v10, %v6243_v60  ;;  %v6400_v53 = vld [vmem:[#allocation2 + $0x38] sm:$0xf]  ;;  %v6402_v0 = vld [vmem:[#allocation2 + $0x40] sm:$0xf]  ;;  %v6422_v15 = vld [vmem:[#allocation2 + $0x70] sm:$0xf] }
 0x259   :  { %v6392_v16 = vadd.f32 %v2150_v6, %v6246_v40  ;;  %v6395_v5 = vadd.f32 %v2153_v11, %v6249_v48  ;;  %v6398_v28 = vadd.f32 %v2156_v43, %v6252_v58  ;;  %v6407_v39 = vadd.f32 %v2159_v49, %v6255_v41  ;;  %v6418_v58 = vld [vmem:[#allocation2 + $0x60] sm:$0xf] }
 0x25a   :  { %v6410_v60 = vadd.f32 %v2162_v30, %v6258_v34  ;;  %v6413_v40 = vadd.f32 %v2165_v33, %v6261_v18  ;;  %v6416_v48 = vadd.f32 %v2168_v17, %v6264_v2  ;;  %v6425_v22 = vadd.f32 %v2171_v38, %v6267_v21  ;;  %v8177_v41 = vld [vmem:[#allocation41_spill] sm:$0xff]  ;;  %v6443_v21 = vld [vmem:[#allocation2 + $0x90] sm:$0xf] }
 0x25b   :  { %v6428_v12 = vadd.f32 %v2174_v42, %v8177_v41  ;;  %v8178_v34 = vld [vmem:[#allocation45_spill] sm:$0xff]  ;;  %v2227_v2 = vunpack.c.l.bf16 %v6368_v24  ;;  %v2228_v63 = vunpack.c.l.bf16 %v6370_v7  ;;  %v2229_v3 = vunpack.c.l.bf16 %v6382_v52 }
 0x25c   :  { %v6431_v45 = vadd.f32 %v2177_v8, %v8178_v34  ;;  %v6433_v18 = vld [vmem:[#allocation2 + $0x78] sm:$0xf]  ;;  %v7906_v37 = vunpack.c.l.bf16 %v6384_v51  ;;  %v7905_v55 = vunpack.c.l.bf16 %v6386_v50  ;;  %v7904_v44 = vunpack.c.l.bf16 %v6400_v53 }
 0x25d   :  { %v7903_v23 = vunpack.c.l.bf16 %v6402_v0  ;;  %v7896_v4 = vunpack.c.l.bf16 %v6404_v35  ;;  %v7894_v9 = vunpack.c.l.bf16 %v6418_v58  ;;  %v7895_v54 = vunpack.c.l.bf16 %v6420_v27 }
 0x25e   :  { %v7897_v61 = vunpack.c.l.bf16 %v6422_v15  ;;  %v7898_v36 = vunpack.c.l.bf16 %v6433_v18  ;;  %v7899_v19 = vunpack.c.l.bf16 %v6435_v1  ;;  %v7900_v32 = vunpack.c.l.bf16 %v6441_v56 }
 0x25f   :  { %v7901_v14 = vunpack.c.l.bf16 %v6443_v21  ;;  %v7902_v25 = vunpack.c.l.bf16 %v6445_v59  ;;  %v2245_v46 = vmul.f32 %v4186_v13, %v2227_v2  ;;  %v2246_v31 = vmul.f32 %v4186_v13, %v2228_v63 }
 0x260   :  { %v2247_v10 = vmul.f32 %v4186_v13, %v2229_v3  ;;  %v2248_v6 = vmul.f32 %v4186_v13, %v7906_v37  ;;  %v2249_v11 = vmul.f32 %v4186_v13, %v7905_v55  ;;  %v2250_v43 = vmul.f32 %v4186_v13, %v7904_v44 }
 0x261   :  { %v2251_v49 = vmul.f32 %v4186_v13, %v7903_v23  ;;  %v2252_v30 = vmul.f32 %v4186_v13, %v7896_v4  ;;  %v2253_v33 = vmul.f32 %v4186_v13, %v7894_v9  ;;  %v2254_v17 = vmul.f32 %v4186_v13, %v7895_v54  ;;  %v6497_v4 = vld [vmem:[#allocation2 + $0x14] sm:$0x1] }
 0x262   :  { %v2255_v38 = vmul.f32 %v4186_v13, %v7897_v61  ;;  %v2256_v42 = vmul.f32 %v4186_v13, %v7898_v36  ;;  %v2257_v8 = vmul.f32 %v4186_v13, %v7899_v19  ;;  %v2258_v41 = vmul.f32 %v4186_v13, %v7900_v32  ;;  %8179 = vst [vmem:[#allocation44_spill] sm:$0xff] %v6497_v4  ;;  %v6499_v61 = vld [vmem:[#allocation2 + $0x1c] sm:$0x1] }
 0x263   :  { %v2259_v34 = vmul.f32 %v4186_v13, %v7901_v14  ;;  %v2260_v9 = vmul.f32 %v4186_v13, %v7902_v25  ;;  %v6495_v54 = vadd.f32 %v2245_v46, %v6363_v29  ;;  %8180 = vst [vmem:[#allocation23_spill] sm:$0xff] %v6499_v61  ;;  %v6502_v36 = vadd.f32 %v2246_v31, %v6366_v26  ;;  %v6513_v13 = vld [vmem:[#allocation2 + $0x24] sm:$0x1]  ;;  %v6515_v29 = vld [vmem:[#allocation2 + $0x2c] sm:$0x1] }
 0x264   :  { %v6505_v19 = vadd.f32 %v2247_v10, %v6374_v47  ;;  %v6508_v32 = vadd.f32 %v2248_v6, %v6377_v62  ;;  %v6511_v14 = vadd.f32 %v2249_v11, %v6380_v20  ;;  %8181 = vst [vmem:[#allocation28_spill] sm:$0xff] %v6513_v13  ;;  %v6517_v46 = vld [vmem:[#allocation2 + $0x34] sm:$0x1]  ;;  %v6520_v25 = vadd.f32 %v2250_v43, %v6389_v57  ;;  %v6531_v20 = vld [vmem:[#allocation2 + $0x3c] sm:$0x1] }
 0x265   :  { %8182 = vst [vmem:[#allocation38_spill] sm:$0xff] %v6515_v29  ;;  %v6523_v26 = vadd.f32 %v2251_v49, %v6392_v16  ;;  %v6526_v47 = vadd.f32 %v2252_v30, %v6395_v5  ;;  %v6529_v62 = vadd.f32 %v2253_v33, %v6398_v28  ;;  %v6533_v31 = vld [vmem:[#allocation2 + $0x44] sm:$0x1]  ;;  %v6535_v10 = vld [vmem:[#allocation2 + $0x4c] sm:$0x1]  ;;  %v6538_v6 = vadd.f32 %v2254_v17, %v6407_v39 }
 0x266   :  { %8183 = vst [vmem:[#allocation46_spill] sm:$0xff] %v6517_v46  ;;  %v6541_v57 = vadd.f32 %v2255_v38, %v6410_v60  ;;  %v6544_v16 = vadd.f32 %v2256_v42, %v6413_v40  ;;  %v6547_v5 = vadd.f32 %v2257_v8, %v6416_v48  ;;  %v6549_v28 = vld [vmem:[#allocation2 + $0x64] sm:$0x1]  ;;  %v6551_v11 = vld [vmem:[#allocation2 + $0x6c] sm:$0x1]  ;;  %v6556_v49 = vadd.f32 %v2258_v41, %v6425_v22 }
 0x267   :  { %8184 = vst [vmem:[#allocation27_spill] sm:$0xff] %v6531_v20  ;;  %v6553_v43 = vld [vmem:[#allocation2 + $0x74] sm:$0x1]  ;;  %v6559_v39 = vadd.f32 %v2259_v34, %v6428_v12  ;;  %v6562_v60 = vadd.f32 %v2260_v9, %v6431_v45  ;;  %v6564_v40 = vld [vmem:[#allocation2 + $0x7c] sm:$0x1]  ;;  %v7907_v48 = vunpack.c.l.bf16 %v6497_v4  ;;  %v7908_v12 = vunpack.c.l.bf16 %v6499_v61 }
 0x268   :  { %8185 = vst [vmem:[#allocation26_spill] sm:$0xff] %v6533_v31  ;;  %v6566_v30 = vld [vmem:[#allocation2 + $0x84] sm:$0x1]  ;;  %v4187_v33 = vld [vmem:[%s7798_s5 + $0x7] ss:$0 sm:$0xff]  ;;  %v8197_v9 = vunpack.c.l.bf16 %v6513_v13  ;;  %v8198_v8 = vunpack.c.l.bf16 %v6384_v51  ;;  %v8199_v24 = vunpack.c.l.bf16 %v6515_v29  ;;  %v8201_v7 = vunpack.c.l.bf16 %v6517_v46 }
 0x269   :  { %8186 = vst [vmem:[#allocation25_spill] sm:$0xff] %v6535_v10  ;;  %v6572_v17 = vld [vmem:[#allocation2 + $0x8c] sm:$0x1]  ;;  %v6574_v22 = vld [vmem:[#allocation2 + $0x94] sm:$0x1]  ;;  %v2311_v41 = vmul.f32 %v4187_v33, %v2227_v2  ;;  %v2312_v23 = vmul.f32 %v4187_v33, %v7907_v48  ;;  %v2313_v44 = vmul.f32 %v4187_v33, %v2228_v63  ;;  %v2314_v37 = vmul.f32 %v4187_v33, %v7908_v12 }
 0x26a   :  { %8187 = vst [vmem:[#allocation24_spill] sm:$0xff] %v6549_v28  ;;  %v6576_v38 = vld [vmem:[#allocation2 + $0x9c] sm:$0x1]  ;;  %v2315_v45 = vmul.f32 %v4187_v33, %v2229_v3  ;;  %v2316_v42 = vmul.f32 %v4187_v33, %v8197_v9  ;;  %v2317_v55 = vmul.f32 %v4187_v33, %v8198_v8  ;;  %v2318_v2 = vmul.f32 %v4187_v33, %v8199_v24 }
 0x26b   :  { %8188 = vst [vmem:[#allocation31_spill] sm:$0xff] %v6551_v11  ;;  %v8200_v48 = vunpack.c.l.bf16 %v6386_v50  ;;  %v2320_v63 = vmul.f32 %v4187_v33, %v8201_v7  ;;  %v8202_v12 = vunpack.c.l.bf16 %v6400_v53  ;;  %v8203_v52 = vunpack.c.l.bf16 %v6531_v20 }
 0x26c   :  { %8189 = vst [vmem:[#allocation29_spill] sm:$0xff] %v6553_v43  ;;  %v8204_v9 = vunpack.c.l.bf16 %v6402_v0  ;;  %v8205_v51 = vunpack.c.l.bf16 %v6533_v31  ;;  %v8206_v24 = vunpack.c.l.bf16 %v6404_v35  ;;  %v8207_v50 = vunpack.c.l.bf16 %v6535_v10 }
 0x26d   :  { %8190 = vst [vmem:[#allocation43_spill] sm:$0xff] %v6559_v39  ;;  %v2319_v34 = vmul.f32 %v4187_v33, %v8200_v48  ;;  %v2322_v3 = vmul.f32 %v4187_v33, %v8203_v52  ;;  %v8208_v7 = vunpack.c.l.bf16 %v6418_v58  ;;  %v8209_v53 = vunpack.c.l.bf16 %v6549_v28 }
 0x26e   :  { %8191 = vst [vmem:[#allocation22_spill] sm:$0xff] %v6562_v60  ;;  %v2321_v60 = vmul.f32 %v4187_v33, %v8202_v12  ;;  %v2323_v13 = vmul.f32 %v4187_v33, %v8204_v9  ;;  %v2324_v8 = vmul.f32 %v4187_v33, %v8205_v51  ;;  %v2325_v29 = vmul.f32 %v4187_v33, %v8206_v24 }
 0x26f   :  { %8192 = vst [vmem:[#allocation34_spill] sm:$0xff] %v6564_v40  ;;  %v2326_v48 = vmul.f32 %v4187_v33, %v8207_v50  ;;  %v2327_v46 = vmul.f32 %v4187_v33, %v8208_v7  ;;  %v2328_v12 = vmul.f32 %v4187_v33, %v8209_v53  ;;  %v8210_v52 = vunpack.c.l.bf16 %v6420_v27 }
 0x270   :  { %8193 = vst [vmem:[#allocation32_spill] sm:$0xff] %v6566_v30  ;;  %v8211_v0 = vunpack.c.l.bf16 %v6551_v11  ;;  %v8212_v51 = vunpack.c.l.bf16 %v6422_v15  ;;  %v8213_v35 = vunpack.c.l.bf16 %v6553_v43  ;;  %v8214_v50 = vunpack.c.l.bf16 %v6433_v18 }
 0x271   :  { %8194 = vst [vmem:[#allocation35_spill] sm:$0xff] %v6572_v17  ;;  %v2329_v20 = vmul.f32 %v4187_v33, %v8210_v52  ;;  %v2375_v58 = vrot.slane %v2311_v41, 1  ;;  %v2376_v7 = vrot.slane %v2312_v23, 1  ;;  %v2378_v61 = vrot.slane %v2313_v44, 1 }
 0x272   :  { %8195 = vst [vmem:[#allocation36_spill] sm:$0xff] %v6574_v22  ;;  %v2330_v9 = vmul.f32 %v4187_v33, %v8211_v0  ;;  %v2331_v31 = vmul.f32 %v4187_v33, %v8212_v51  ;;  %v2332_v24 = vmul.f32 %v4187_v33, %v8213_v35  ;;  %v2333_v10 = vmul.f32 %v4187_v33, %v8214_v50 }
 0x273   :  { %8196 = vst [vmem:[#allocation40_spill] sm:$0xff] %v6576_v38  ;;  %v2379_v28 = vrot.slane %v2314_v37, 1  ;;  %v2381_v53 = vrot.slane %v2315_v45, 1  ;;  %v2382_v4 = vrot.slane %v2316_v42, 1  ;;  %v8215_v27 = vunpack.c.l.bf16 %v6564_v40 }
 0x274   :  { %v8216_v0 = vunpack.c.l.bf16 %v6435_v1  ;;  %v8217_v15 = vunpack.c.l.bf16 %v6566_v30  ;;  %v8218_v35 = vunpack.c.l.bf16 %v6441_v56  ;;  %v8219_v18 = vunpack.c.l.bf16 %v6572_v17 }
 0x275   :  { %v2334_v52 = vmul.f32 %v4187_v33, %v8215_v27  ;;  %v8220_v44 = vunpack.c.l.bf16 %v6443_v21  ;;  %v8221_v23 = vunpack.c.l.bf16 %v6574_v22  ;;  %v8222_v42 = vunpack.c.l.bf16 %v6445_v59 }
 0x276   :  { %v2335_v11 = vmul.f32 %v4187_v33, %v8216_v0  ;;  %v2336_v51 = vmul.f32 %v4187_v33, %v8217_v15  ;;  %v2337_v43 = vmul.f32 %v4187_v33, %v8218_v35  ;;  %v2338_v41 = vmul.f32 %v4187_v33, %v8219_v18 }
 0x277   :  { %v2339_v37 = vmul.f32 %v4187_v33, %v8220_v44  ;;  %v2340_v45 = vmul.f32 %v4187_v33, %v8221_v23  ;;  %v2341_v50 = vmul.f32 %v4187_v33, %v8222_v42  ;;  %v8223_v1 = vunpack.c.l.bf16 %v6576_v38 }
 0x278   :  { %v2377_v0 = vsel %vm1529_vm2, %v2375_v58, %v2376_v7  ;;  %v2384_v15 = vrot.slane %v2317_v55, 1  ;;  %v2385_v56 = vrot.slane %v2318_v2, 1  ;;  %v2380_v35 = vsel %vm1529_vm2, %v2378_v61, %v2379_v28 }
 0x279   :  { %v2342_v27 = vmul.f32 %v4187_v33, %v8223_v1  ;;  %v2383_v18 = vsel %vm1529_vm2, %v2381_v53, %v2382_v4  ;;  %v2387_v17 = vrot.slane %v2319_v34, 1  ;;  %v2388_v21 = vrot.slane %v2320_v63, 1 }
 0x27a   :  { %v2390_v44 = vrot.slane %v2321_v60, 1  ;;  %v2391_v30 = vrot.slane %v2322_v3, 1  ;;  %v2393_v22 = vrot.slane %v2323_v13, 1  ;;  %v2394_v23 = vrot.slane %v2324_v8, 1 }
 0x27b   :  { %v2396_v40 = vrot.slane %v2325_v29, 1  ;;  %v2397_v59 = vrot.slane %v2326_v48, 1  ;;  %v2399_v42 = vrot.slane %v2327_v46, 1  ;;  %v2400_v39 = vrot.slane %v2328_v12, 1 }
 0x27c   :  { %v2402_v38 = vrot.slane %v2329_v20, 1  ;;  %v2403_v33 = vrot.slane %v2330_v9, 1  ;;  %v2405_v1 = vrot.slane %v2331_v31, 1  ;;  %v2406_v58 = vrot.slane %v2332_v24, 1  ;;  %v2457_v9 = vld [vmem:[#allocation2 + $0x20] sm:$0xe] }
 0x27d   :  { %v2408_v55 = vrot.slane %v2333_v10, 1  ;;  %v2409_v2 = vrot.slane %v2334_v52, 1  ;;  %v2411_v7 = vrot.slane %v2335_v11, 1  ;;  %v2412_v61 = vrot.slane %v2336_v51, 1  ;;  %v2459_v51 = vld [vmem:[#allocation2 + $0x30] sm:$0xe] }
 0x27e   :  { %v2414_v28 = vrot.slane %v2337_v43, 1  ;;  %v2415_v4 = vrot.slane %v2338_v41, 1  ;;  %v2417_v34 = vrot.slane %v2339_v37, 1  ;;  %v2418_v63 = vrot.slane %v2340_v45, 1  ;;  %v2460_v41 = vld [vmem:[#allocation2 + $0x38] sm:$0xe] }
 0x27f   :  { %v2386_v60 = vsel %vm1529_vm2, %v2384_v15, %v2385_v56  ;;  %v2389_v13 = vsel %vm1529_vm2, %v2387_v17, %v2388_v21  ;;  %v2420_v29 = vrot.slane %v2341_v50, 1  ;;  %v2421_v3 = vrot.slane %v2342_v27, 1  ;;  %v2462_v50 = vld [vmem:[#allocation2 + $0x48] sm:$0xe]  ;;  %v2463_v27 = vld [vmem:[#allocation2 + $0x60] sm:$0xe] }
 0x280   :  { %v2392_v46 = vsel %vm1529_vm2, %v2390_v44, %v2391_v30  ;;  %v2395_v20 = vsel %vm1529_vm2, %v2393_v22, %v2394_v23  ;;  %v2398_v31 = vsel %vm1529_vm2, %v2396_v40, %v2397_v59  ;;  %v2401_v10 = vsel %vm1529_vm2, %v2399_v42, %v2400_v39  ;;  %v2455_v40 = vld [vmem:[#allocation2 + $0x10] sm:$0xe]  ;;  %v2456_v39 = vld [vmem:[#allocation2 + $0x18] sm:$0xe]  ;;  %v2468_v21 = vld [vmem:[#allocation2 + $0x88] sm:$0xe] }
 0x281   :  { %v2404_v11 = vsel %vm1529_vm2, %v2402_v38, %v2403_v33  ;;  %v2407_v43 = vsel %vm1529_vm2, %v2405_v1, %v2406_v58  ;;  %v2410_v8 = vsel %vm1529_vm2, %v2408_v55, %v2409_v2  ;;  %v2413_v48 = vsel %vm1529_vm2, %v2411_v7, %v2412_v61  ;;  %v2465_v15 = vld [vmem:[#allocation2 + $0x70] sm:$0xe]  ;;  %v2466_v56 = vld [vmem:[#allocation2 + $0x78] sm:$0xe] }
 0x282   :  { %v2416_v17 = vsel %vm1529_vm2, %v2414_v28, %v2415_v4  ;;  %v2419_v12 = vsel %vm1529_vm2, %v2417_v34, %v2418_v63  ;;  %v6673_v30 = vadd.f32 %v2377_v0, %v6495_v54  ;;  %v6676_v22 = vadd.f32 %v2380_v35, %v6502_v36  ;;  %v2458_v54 = vld [vmem:[#allocation2 + $0x28] sm:$0xe]  ;;  %v2469_v23 = vld [vmem:[#allocation2 + $0x90] sm:$0xe] }
 0x283   :  { %v6679_v38 = vsel %vm1529_vm2, %v2420_v29, %v2421_v3  ;;  %v6682_v24 = vadd.f32 %v2383_v18, %v6505_v19  ;;  %v6685_v53 = vadd.f32 %v2386_v60, %v6508_v32  ;;  %v6688_v52 = vadd.f32 %v2389_v13, %v6511_v14  ;;  %v2461_v32 = vld [vmem:[#allocation2 + $0x40] sm:$0xe]  ;;  %v8227_v35 = vld [vmem:[#allocation43_spill] sm:$0xff]  ;;  %v8229_v13 = vld [vmem:[#allocation44_spill] sm:$0xff] }
 0x284   :  { %8224 = vst [vmem:[#allocation39_spill] sm:$0xff] %v6679_v38  ;;  %v6691_v36 = vadd.f32 %v2392_v46, %v6520_v25  ;;  %v6694_v37 = vadd.f32 %v2395_v20, %v6523_v26  ;;  %v6697_v45 = vadd.f32 %v2398_v31, %v6526_v47  ;;  %v6700_v19 = vadd.f32 %v2401_v10, %v6529_v62  ;;  %v2464_v47 = vld [vmem:[#allocation2 + $0x68] sm:$0xe] }
 0x285   :  { %v6703_v14 = vadd.f32 %v2404_v11, %v6538_v6  ;;  %v6706_v0 = vadd.f32 %v2407_v43, %v6541_v57  ;;  %v6709_v25 = vadd.f32 %v2410_v8, %v6544_v16  ;;  %v6712_v26 = vadd.f32 %v2413_v48, %v6547_v5  ;;  %v2467_v6 = vld [vmem:[#allocation2 + $0x80] sm:$0xe]  ;;  %v4188_v16 = vld [vmem:[%s7798_s5 + $0x8] ss:$0 sm:$0xff]  ;;  %v2470_v5 = vld [vmem:[#allocation2 + $0x98] sm:$0xe] }
 0x286   :  { %v6715_v62 = vadd.f32 %v2416_v17, %v6556_v49  ;;  %v6718_v18 = vadd.f32 %v2419_v12, %v8227_v35  ;;  %v2471_v44 = vunpack.c.l.bf16 %v2455_v40  ;;  %v2472_v57 = vunpack.c.l.bf16 %v2456_v39  ;;  %v8231_v20 = vld [vmem:[#allocation23_spill] sm:$0xff]  ;;  %v8233_v43 = vld [vmem:[#allocation28_spill] sm:$0xff]  ;;  %v8235_v12 = vld [vmem:[#allocation38_spill] sm:$0xff]  ;;  %s3879_s5 = sshll.u32 %s7810_s17, 4  ;;  %s3880_s5 = int_to_ptr.hbm [resolvable:$true] %s3879_s5 }
 0x287   :  { %8225 = vst [vmem:[#allocation49_spill] sm:$0xff] %v6712_v26  ;;  %v2473_v59 = vunpack.c.l.bf16 %v2457_v9  ;;  %v2474_v42 = vunpack.c.l.bf16 %v2458_v54  ;;  %v2475_v33 = vunpack.c.l.bf16 %v2459_v51  ;;  %v2476_v1 = vunpack.c.l.bf16 %v2460_v41  ;;  %v8237_v54 = vld [vmem:[#allocation46_spill] sm:$0xff] }
 0x288   :  { %8226 = vst [vmem:[#allocation48_spill] sm:$0xff] %v6715_v62  ;;  %v2477_v58 = vunpack.c.l.bf16 %v2461_v32  ;;  %v2478_v49 = vunpack.c.l.bf16 %v2462_v50  ;;  %v2479_v55 = vunpack.c.l.bf16 %v2463_v27  ;;  %v2480_v2 = vunpack.c.l.bf16 %v2464_v47  ;;  %v8239_v50 = vld [vmem:[#allocation27_spill] sm:$0xff] }
 0x289   :  { %8228 = vst [vmem:[#allocation37_spill] sm:$0xff] %v6718_v18  ;;  %v2481_v7 = vunpack.c.l.bf16 %v2465_v15  ;;  %v2482_v61 = vunpack.c.l.bf16 %v2466_v56  ;;  %v2483_v28 = vunpack.c.l.bf16 %v2467_v6  ;;  %v2484_v4 = vunpack.c.l.bf16 %v2468_v21  ;;  %v8241_v56 = vld [vmem:[#allocation26_spill] sm:$0xff] }
 0x28a   :  { %v2485_v34 = vunpack.c.l.bf16 %v2469_v23  ;;  %v2486_v63 = vunpack.c.l.bf16 %v2470_v5  ;;  %v2489_v60 = vmul.f32 %v4188_v16, %v2471_v44  ;;  %v8230_v29 = vunpack.c.l.bf16 %v8229_v13  ;;  %v8243_v44 = vld [vmem:[#allocation25_spill] sm:$0xff] }
 0x28b   :  { %v2491_v46 = vmul.f32 %v4188_v16, %v2472_v57  ;;  %v8232_v31 = vunpack.c.l.bf16 %v8231_v20  ;;  %v2493_v11 = vmul.f32 %v4188_v16, %v2473_v59  ;;  %v8234_v8 = vunpack.c.l.bf16 %v8233_v43  ;;  %v8245_v59 = vld [vmem:[#allocation24_spill] sm:$0xff]  ;;  %v8249_v43 = vld [vmem:[#allocation29_spill] sm:$0xff] }
 0x28c   :  { %v2490_v3 = vmul.f32 %v4188_v16, %v8230_v29  ;;  %v2495_v17 = vmul.f32 %v4188_v16, %v2474_v42  ;;  %v8236_v40 = vunpack.c.l.bf16 %v8235_v12  ;;  %v2497_v9 = vmul.f32 %v4188_v16, %v2475_v33  ;;  %v8247_v29 = vld [vmem:[#allocation31_spill] sm:$0xff] }
 0x28d   :  { %v2492_v10 = vmul.f32 %v4188_v16, %v8232_v31  ;;  %v2494_v48 = vmul.f32 %v4188_v16, %v8234_v8  ;;  %v8238_v51 = vunpack.c.l.bf16 %v8237_v54  ;;  %v2499_v32 = vmul.f32 %v4188_v16, %v2476_v1 }
 0x28e   :  { %v2496_v39 = vmul.f32 %v4188_v16, %v8236_v40  ;;  %v8240_v27 = vunpack.c.l.bf16 %v8239_v50  ;;  %v2501_v15 = vmul.f32 %v4188_v16, %v2477_v58  ;;  %v8242_v35 = vunpack.c.l.bf16 %v8241_v56  ;;  %v8251_v40 = vld [vmem:[#allocation34_spill] sm:$0xff]  ;;  %v8253_v50 = vld [vmem:[#allocation32_spill] sm:$0xff] }
 0x28f   :  { %v2498_v41 = vmul.f32 %v4188_v16, %v8238_v51  ;;  %v2503_v21 = vmul.f32 %v4188_v16, %v2478_v49  ;;  %v8244_v57 = vunpack.c.l.bf16 %v8243_v44  ;;  %v2505_v5 = vmul.f32 %v4188_v16, %v2479_v55 }
 0x290   :  { %v2500_v47 = vmul.f32 %v4188_v16, %v8240_v27  ;;  %v2502_v6 = vmul.f32 %v4188_v16, %v8242_v35  ;;  %v8246_v42 = vunpack.c.l.bf16 %v8245_v59  ;;  %v2507_v33 = vmul.f32 %v4188_v16, %v2480_v2  ;;  %v8255_v2 = vld [vmem:[#allocation35_spill] sm:$0xff] }
 0x291   :  { %v2504_v23 = vmul.f32 %v4188_v16, %v8244_v57  ;;  %v8248_v20 = vunpack.c.l.bf16 %v8247_v29  ;;  %v2509_v1 = vmul.f32 %v4188_v16, %v2481_v7  ;;  %v8250_v8 = vunpack.c.l.bf16 %v8249_v43  ;;  %v8257_v57 = vld [vmem:[#allocation36_spill] sm:$0xff] }
 0x292   :  { %v2506_v13 = vmul.f32 %v4188_v16, %v8246_v42  ;;  %v6745_v58 = vmul.f32 %v4188_v16, %v2482_v61  ;;  %v8252_v54 = vunpack.c.l.bf16 %v8251_v40  ;;  %v6749_v51 = vmul.f32 %v4188_v16, %v2483_v28  ;;  %v8259_v28 = vld [vmem:[#allocation40_spill] sm:$0xff] }
 0x293   :  { %v2508_v31 = vmul.f32 %v4188_v16, %v8248_v20  ;;  %v2510_v12 = vmul.f32 %v4188_v16, %v8250_v8  ;;  %v8254_v55 = vunpack.c.l.bf16 %v8253_v50  ;;  %v6755_v56 = vmul.f32 %v4188_v16, %v2484_v4 }
 0x294   :  { %v2512_v49 = vmul.f32 %v4188_v16, %v8252_v54  ;;  %v8256_v35 = vunpack.c.l.bf16 %v8255_v2  ;;  %v6761_v7 = vmul.f32 %v4188_v16, %v2485_v34  ;;  %v8258_v61 = vunpack.c.l.bf16 %v8257_v57 }
 0x295   :  { %v6753_v27 = vmul.f32 %v4188_v16, %v8254_v55  ;;  %v6767_v42 = vmul.f32 %v4188_v16, %v2486_v63  ;;  %v8260_v29 = vunpack.c.l.bf16 %v8259_v28  ;;  %v2553_v43 = vrot.slane %v2489_v60, 2 }
 0x296   :  { %v6759_v44 = vmul.f32 %v4188_v16, %v8256_v35  ;;  %v6765_v59 = vmul.f32 %v4188_v16, %v8258_v61  ;;  %v2554_v8 = vrot.slane %v2490_v3, 2  ;;  %v2556_v4 = vrot.slane %v2491_v46, 2 }
 0x297   :  { %v6771_v20 = vmul.f32 %v4188_v16, %v8260_v29  ;;  %v2557_v40 = vrot.slane %v2492_v10, 2  ;;  %v2559_v54 = vrot.slane %v2493_v11, 2  ;;  %v2560_v50 = vrot.slane %v2494_v48, 2 }
 0x298   :  { %v2562_v55 = vrot.slane %v2495_v17, 2  ;;  %v2563_v2 = vrot.slane %v2496_v39, 2  ;;  %v2565_v34 = vrot.slane %v2497_v9, 2  ;;  %v2566_v35 = vrot.slane %v2498_v41, 2 }
 0x299   :  { %v2568_v38 = vrot.slane %v2499_v32, 2  ;;  %v2569_v57 = vrot.slane %v2500_v47, 2  ;;  %v2571_v61 = vrot.slane %v2501_v15, 2  ;;  %v2572_v18 = vrot.slane %v2502_v6, 2  ;;  %v6784_v47 = vld [vmem:[%s7799_s6] ss:$0 sm:$0xff] }
 0x29a   :  { %v2574_v63 = vrot.slane %v2503_v21, 2  ;;  %v2575_v62 = vrot.slane %v2504_v23, 2  ;;  %v2577_v26 = vrot.slane %v2505_v5, 2  ;;  %v2578_v28 = vrot.slane %v2506_v13, 2  ;;  %s4496_s6 = smov 1  }
 0x29b   :  { %v2555_v16 = vsel %vm159_vm1, %v2553_v43, %v2554_v8  ;;  %v2558_v60 = vsel %vm159_vm1, %v2556_v4, %v2557_v40  ;;  %v2580_v3 = vrot.slane %v2507_v33, 2  ;;  %v2581_v46 = vrot.slane %v2508_v31, 2 }
 0x29c   :  { %v2561_v10 = vsel %vm159_vm1, %v2559_v54, %v2560_v50  ;;  %v2564_v11 = vsel %vm159_vm1, %v2562_v55, %v2563_v2  ;;  %v2583_v48 = vrot.slane %v2509_v1, 2  ;;  %v2584_v17 = vrot.slane %v2510_v12, 2  ;;  %v8261_v55 = vld [vmem:[#allocation49_spill] sm:$0xff] }
 0x29d   :  { %v2567_v39 = vsel %vm159_vm1, %v2565_v34, %v2566_v35  ;;  %v2570_v9 = vsel %vm159_vm1, %v2568_v38, %v2569_v57  ;;  %v2617_v41 = vadd.f32 %v2555_v16, %v6673_v30  ;;  %v2618_v32 = vadd.f32 %v2558_v60, %v6676_v22  ;;  %v8262_v35 = vld [vmem:[#allocation48_spill] sm:$0xff] }
 0x29e   :  { %v2573_v15 = vsel %vm159_vm1, %v2571_v61, %v2572_v18  ;;  %v2576_v6 = vsel %vm159_vm1, %v2574_v63, %v2575_v62  ;;  %v2579_v21 = vsel %vm159_vm1, %v2577_v26, %v2578_v28  ;;  %v2619_v23 = vadd.f32 %v2561_v10, %v6682_v24  ;;  %v8263_v63 = vld [vmem:[#allocation37_spill] sm:$0xff] }
 0x29f   :  { %v2582_v5 = vsel %vm159_vm1, %v2580_v3, %v2581_v46  ;;  %v2586_v38 = vrot.slane %v6745_v58, 2  ;;  %v2587_v30 = vrot.slane %v2512_v49, 2  ;;  %v2620_v22 = vadd.f32 %v2564_v11, %v6685_v53 }
 0x2a0   :  { %v2585_v13 = vsel %vm159_vm1, %v2583_v48, %v2584_v17  ;;  %v2589_v33 = vrot.slane %v6749_v51, 2  ;;  %v2590_v31 = vrot.slane %v6753_v27, 2  ;;  %v2621_v18 = vadd.f32 %v2567_v39, %v6688_v52 }
 0x2a1   :  { %v2592_v62 = vrot.slane %v6755_v56, 2  ;;  %v2622_v26 = vadd.f32 %v2570_v9, %v6691_v36  ;;  %v6800_v24 = vadd.f32 %v6784_v47, %v2617_v41  ;;  %v6803_v1 = vadd.f32 %v6784_v47, %v2618_v32  ;;  %v8265_v41 = vld [vmem:[#allocation39_spill] sm:$0xff] }
 0x2a2   :  { %v2593_v53 = vrot.slane %v6759_v44, 2  ;;  %v2595_v12 = vrot.slane %v6761_v7, 2  ;;  %v2623_v58 = vadd.f32 %v2573_v15, %v6694_v37  ;;  %v6809_v49 = vadd.f32 %v6784_v47, %v2619_v23 }
 0x2a3   :  { %v2588_v52 = vsel %vm159_vm1, %v2586_v38, %v2587_v30  ;;  %v2596_v51 = vrot.slane %v6765_v59, 2  ;;  %v2624_v36 = vadd.f32 %v2576_v6, %v6697_v45  ;;  %v6815_v27 = vadd.f32 %v6784_v47, %v2620_v22 }
 0x2a4   :  { %v2591_v56 = vsel %vm159_vm1, %v2589_v33, %v2590_v31  ;;  %v2598_v44 = vrot.slane %v6767_v42, 2  ;;  %v2625_v7 = vadd.f32 %v2579_v21, %v6700_v19  ;;  %v6821_v37 = vadd.f32 %v6784_v47, %v2621_v18 }
 0x2a5   :  { %v2626_v29 = vadd.f32 %v2582_v5, %v6703_v14  ;;  %v6825_v43 = vadd.f32 %v6784_v47, %v2622_v26  ;;  %v3987_v59 = vmul.f32 -1.442695, %v6800_v24  ;;  %v3988_v45 = vmul.f32 -1.442695, %v6803_v1 }
 0x2a6   :  { %v2594_v8 = vsel %vm159_vm1, %v2592_v62, %v2593_v53  ;;  %v2627_v4 = vadd.f32 %v2585_v13, %v6706_v0  ;;  %v6832_v42 = vadd.f32 %v6784_v47, %v2623_v58  ;;  %v3989_v19 = vmul.f32 -1.442695, %v6809_v49 }
 0x2a7   :  { %v2597_v40 = vsel %vm159_vm1, %v2595_v12, %v2596_v51  ;;  %v2628_v14 = vadd.f32 %v2588_v52, %v6709_v25  ;;  %v6838_v54 = vadd.f32 %v6784_v47, %v2624_v36  ;;  %v3990_v50 = vmul.f32 -1.442695, %v6815_v27 }
 0x2a8   :  { %v2629_v2 = vadd.f32 %v2591_v56, %v8261_v55  ;;  %v6843_v34 = vadd.f32 %v6784_v47, %v2625_v7  ;;  %4323 = vpow2.f32 %v3987_v59  ;;  %v3991_v0 = vmul.f32 -1.442695, %v6821_v37 }
 0x2a9   :  { %v2630_v57 = vadd.f32 %v2594_v8, %v8262_v35  ;;  %v6848_v61 = vadd.f32 %v6784_v47, %v2626_v29  ;;  %4325 = vpow2.f32 %v3988_v45  ;;  %v3992_v25 = vmul.f32 -1.442695, %v6825_v43 }
 0x2aa   :  { %v2631_v28 = vadd.f32 %v2597_v40, %v8263_v63  ;;  %v6853_v16 = vadd.f32 %v6784_v47, %v2627_v4  ;;  %4327 = vpow2.f32 %v3989_v19  ;;  %v3993_v60 = vmul.f32 -1.442695, %v6832_v42 }
 0x2ab   :  { %v2599_v3 = vrot.slane %v6771_v20, 2  ;;  %v6858_v46 = vadd.f32 %v6784_v47, %v2628_v14  ;;  %4329 = vpow2.f32 %v3990_v50  ;;  %v3994_v10 = vmul.f32 -1.442695, %v6838_v54  ;;  %v8264_v20 = vld [vmem:[#allocation22_spill] sm:$0xff] }
 0x2ac   :  { %v6862_v11 = vadd.f32 %v6784_v47, %v2629_v2  ;;  %4331 = vpow2.f32 %v3991_v0  ;;  %v3995_v48 = vmul.f32 -1.442695, %v6843_v34  ;;  %v6866_v17 = vadd.f32 %v6784_v47, %v2630_v57 }
 0x2ad   :  { %4333 = vpow2.f32 %v3992_v25  ;;  %v3996_v39 = vmul.f32 -1.442695, %v6848_v61  ;;  %v2454_v32 = vadd.f32 %v8265_v41, %v8264_v20  ;;  %v6872_v15 = vadd.f32 %v6784_v47, %v2631_v28 }
 0x2ae   :  { %v4324_v9 = vpop.eup %4323  ;;  %4335 = vpow2.f32 %v3993_v60  ;;  %v3997_v6 = vmul.f32 -1.442695, %v6853_v16  ;;  %v2600_v23 = vsel %vm159_vm1, %v2598_v44, %v2599_v3  ;;  %v3998_v5 = vmul.f32 -1.442695, %v6858_v46 }
 0x2af   :  { %v4326_v21 = vpop.eup %4325  ;;  %4337 = vpow2.f32 %v3994_v10  ;;  %v3999_v30 = vmul.f32 -1.442695, %v6862_v11  ;;  %v4000_v13 = vmul.f32 -1.442695, %v6866_v17  ;;  %v2632_v31 = vadd.f32 %v2600_v23, %v2454_v32 }
 0x2b0   :  { %v4328_v38 = vpop.eup %4327  ;;  %4339 = vpow2.f32 %v3995_v48  ;;  %v4001_v18 = vmul.f32 -1.442695, %v6872_v15  ;;  %v6880_v26 = vadd.f32 1.0, %v4324_v9  ;;  %v6882_v12 = vadd.f32 1.0, %v4326_v21 }
 0x2b1   :  { %v4330_v22 = vpop.eup %4329  ;;  %4341 = vpow2.f32 %v3996_v39  ;;  %v6884_v52 = vadd.f32 1.0, %v4328_v38  ;;  %v6887_v36 = vadd.f32 %v6784_v47, %v2632_v31 }
 0x2b2   :  { %v4332_v33 = vpop.eup %4331  ;;  %4343 = vpow2.f32 %v3997_v6  ;;  %v6889_v56 = vadd.f32 1.0, %v4330_v22  ;;  %v2728_v4 = vand.u32 2147483648, %v6880_v26  ;;  %v2743_v40 = vand.u32 2147483648, %v6882_v12 }
 0x2b3   :  { %v4334_v62 = vpop.eup %4333  ;;  %4345 = vpow2.f32 %v3998_v5  ;;  %v6891_v7 = vadd.f32 1.0, %v4332_v33  ;;  %v4002_v19 = vmul.f32 -1.442695, %v6887_v36  ;;  %v2726_v55 = vand.u32 2147483647, %v6880_v26 }
 0x2b4   :  { %v4336_v53 = vpop.eup %4335  ;;  %4347 = vpow2.f32 %v3999_v30  ;;  %v6894_v59 = vadd.f32 1.0, %v4334_v62  ;;  %v2741_v2 = vand.u32 2147483647, %v6882_v12  ;;  %v6912_v57 = vor.u32 1.1754944e-38, %v2728_v4 }
 0x2b5   :  { %v4338_v58 = vpop.eup %4337  ;;  %4349 = vpow2.f32 %v4000_v13  ;;  %v6897_v8 = vadd.f32 1.0, %v4336_v53  ;;  %v2758_v25 = vand.u32 2147483648, %v6884_v52  ;;  %v6920_v60 = vor.u32 1.1754944e-38, %v2743_v40 }
 0x2b6   :  { %v4340_v51 = vpop.eup %4339  ;;  %4351 = vpow2.f32 %v4001_v18  ;;  %v6910_v35 = vadd.f32 1.0, %v4338_v58  ;;  %v2773_v3 = vand.u32 2147483648, %v6889_v56  ;;  %v2756_v20 = vand.u32 2147483647, %v6884_v52 }
 0x2b7   :  { %v4342_v44 = vpop.eup %4341  ;;  %4353 = vrcp.f32 %v6880_v26  ;;  %v6925_v48 = vadd.f32 1.0, %v4340_v51  ;;  %vm2722_vm1 = vweird.f32 %v6880_v26  ;;  %v2771_v23 = vand.u32 2147483647, %v6889_v56 }
 0x2b8   :  { %v4344_v29 = vpop.eup %4343  ;;  %4355 = vrcp.f32 %v6882_v12  ;;  %v6927_v39 = vadd.f32 1.0, %v4342_v44  ;;  %vm2737_vm14 = vweird.f32 %v6882_v12  ;;  %v6945_v22 = vor.u32 1.1754944e-38, %v2758_v25 }
 0x2b9   :  { %v4346_v45 = vpop.eup %4345  ;;  %4357 = vrcp.f32 %v6884_v52  ;;  %v6934_v32 = vadd.f32 1.0, %v4344_v29  ;;  %vm2752_vm12 = vweird.f32 %v6884_v52  ;;  %v6954_v62 = vor.u32 1.1754944e-38, %v2773_v3 }
 0x2ba   :  { %v4348_v47 = vpop.eup %4347  ;;  %4359 = vrcp.f32 %v6889_v56  ;;  %v6942_v38 = vadd.f32 1.0, %v4346_v45  ;;  %vm2767_vm6 = vweird.f32 %v6889_v56  ;;  %v2786_v29 = vand.u32 2147483647, %v6891_v7 }
 0x2bb   :  { %v4350_v14 = vpop.eup %4349  ;;  %4361 = vrcp.f32 %v6891_v7  ;;  %v6951_v31 = vadd.f32 1.0, %v4348_v47  ;;  %vm2782_vm8 = vweird.f32 %v6891_v7  ;;  %v2788_v40 = vand.u32 2147483648, %v6891_v7 }
 0x2bc   :  { %v4352_v50 = vpop.eup %4351  ;;  %4363 = vrcp.f32 %v6894_v59  ;;  %v6960_v51 = vadd.f32 1.0, %v4350_v14  ;;  %vm6977_vm13 = vcmp.eq.f32.partialorder %v2726_v55, 8.507059e+37  ;;  %vm6986_vm2 = vcmp.eq.f32.partialorder %v2741_v2, 8.507059e+37 }
 0x2bd   :  { %v6908_v0 = vpop.eup %4353  ;;  %4365 = vrcp.f32 %v6897_v8  ;;  %v6971_v25 = vadd.f32 1.0, %v4352_v50  ;;  %vm6990_vm0 = vcmp.eq.f32.partialorder %v2756_v20, 8.507059e+37  ;;  %vm6998_vm4 = vcmp.eq.f32.partialorder %v2771_v23, 8.507059e+37 }
 0x2be   :  { %v6916_v63 = vpop.eup %4355  ;;  %4367 = vpow2.f32 %v4002_v19  ;;  %v2718_v28 = vmul.f32 %v6908_v0, %v6880_v26  ;;  %vm2723_vm10 = vweird.f32 %v6908_v0  ;;  %v2789_v2 = vor.u32 1.1754944e-38, %v2788_v40 }
 0x2bf   :  { %v6923_v10 = vpop.eup %4357  ;;  %v2733_v9 = vmul.f32 %v6916_v63, %v6882_v12  ;;  %vm2738_vm15 = vweird.f32 %v6916_v63  ;;  %vm7007_vm5 = vmor %vm2722_vm1, %vm2723_vm10  ;;  %vm7014_vm7 = vcmp.eq.f32.partialorder %v2786_v29, 8.507059e+37  ;;  %4369 = vrcp.f32 %v6910_v35 }
 0x2c0   :  { %v6932_v41 = vpop.eup %4359  ;;  %v2719_v6 = vsub.f32 1.0, %v2718_v28  ;;  %v2748_v21 = vmul.f32 %v6923_v10, %v6884_v52  ;;  %vm2753_vm3 = vweird.f32 %v6923_v10  ;;  %vm7023_vm1 = vmor %vm2737_vm14, %vm2738_vm15  ;;  %4371 = vrcp.f32 %v6925_v48 }
 0x2c1   :  { %v6940_v5 = vpop.eup %4361  ;;  %v2734_v30 = vsub.f32 1.0, %v2733_v9  ;;  %v2763_v13 = vmul.f32 %v6932_v41, %v6889_v56  ;;  %vm2768_vm11 = vweird.f32 %v6932_v41  ;;  %vm7035_vm9 = vmor %vm2752_vm12, %vm2753_vm3  ;;  %vm2812_vm3 = vweird.f32 %v6897_v8 }
 0x2c2   :  { %v6949_v33 = vpop.eup %4363  ;;  %v2749_v18 = vsub.f32 1.0, %v2748_v21  ;;  %v2778_v53 = vmul.f32 %v6940_v5, %v6891_v7  ;;  %v2720_v47 = vmul.f32 %v6908_v0, %v2719_v6  ;;  %vm2783_vm10 = vweird.f32 %v6940_v5  ;;  %vm7051_vm12 = vmor %vm2767_vm6, %vm2768_vm11 }
 0x2c3   :  { %v6958_v58 = vpop.eup %4365  ;;  %v2764_v44 = vsub.f32 1.0, %v2763_v13  ;;  %v2793_v45 = vmul.f32 %v6949_v33, %v6894_v59  ;;  %v2735_v28 = vmul.f32 %v6916_v63, %v2734_v30  ;;  %v2801_v13 = vand.u32 2147483647, %v6894_v59  ;;  %vm7068_vm11 = vmor %vm2782_vm8, %vm2783_vm10 }
 0x2c4   :  { %v4368_v4 = vpop.eup %4367  ;;  %v2779_v19 = vsub.f32 1.0, %v2778_v53  ;;  %v2808_v14 = vmul.f32 %v6958_v58, %v6897_v8  ;;  %v2750_v3 = vmul.f32 %v6923_v10, %v2749_v18  ;;  %vm2798_vm14 = vweird.f32 %v6949_v33 }
 0x2c5   :  { %v2794_v9 = vsub.f32 1.0, %v2793_v45  ;;  %v2765_v21 = vmul.f32 %v6932_v41, %v2764_v44  ;;  %v6983_v50 = vadd.f32 1.0, %v4368_v4  ;;  %v2721_v44 = vadd.f32 %v6908_v0, %v2720_v47 }
 0x2c6   :  { %v2809_v53 = vsub.f32 1.0, %v2808_v14  ;;  %v2780_v55 = vmul.f32 %v6940_v5, %v2779_v19  ;;  %v2803_v14 = vand.u32 2147483648, %v6894_v59  ;;  %v2736_v19 = vadd.f32 %v6916_v63, %v2735_v28 }
 0x2c7   :  { %v2795_v45 = vmul.f32 %v6949_v33, %v2794_v9  ;;  %v2751_v47 = vadd.f32 %v6923_v10, %v2750_v3  ;;  %v2766_v28 = vadd.f32 %v6932_v41, %v2765_v21  ;;  %v2816_v3 = vand.u32 2147483647, %v6897_v8 }
 0x2c8   :  { %v2810_v40 = vmul.f32 %v6958_v58, %v2809_v53  ;;  %v2781_v12 = vadd.f32 %v6940_v5, %v2780_v55  ;;  %vm7042_vm15 = vcmp.eq.f32.partialorder %v2801_v13, 8.507059e+37  ;;  %v2725_v53 = vsel %vm7007_vm5, %v6908_v0, %v2721_v44 }
 0x2c9   :  { %v2796_v9 = vadd.f32 %v6949_v33, %v2795_v45  ;;  %v2818_v55 = vand.u32 2147483648, %v6897_v8  ;;  %v2740_v13 = vsel %vm7023_vm1, %v6916_v63, %v2736_v19  ;;  %v2755_v0 = vsel %vm7035_vm9, %v6923_v10, %v2751_v47 }
 0x2ca   :  { %v2811_v45 = vadd.f32 %v6958_v58, %v2810_v40  ;;  %vm2813_vm6 = vweird.f32 %v6958_v58  ;;  %v2770_v63 = vsel %vm7051_vm12, %v6932_v41, %v2766_v28  ;;  %vm8288_vm5 = vweird.f32 %v6894_v59 }
 0x2cb   :  { %vm7079_vm1 = vmor %vm8288_vm5, %vm2798_vm14  ;;  %v2804_v44 = vor.u32 1.1754944e-38, %v2803_v14  ;;  %vm7083_vm9 = vcmp.eq.f32.partialorder %v2816_v3, 8.507059e+37  ;;  %4373 = vrcp.f32 %v6927_v39  ;;  %v7091_v20 = vsel %vm6977_vm13, %v6912_v57, %v2725_v53  ;;  %v7100_v14 = vpop.eup %4369 }
 0x2cc   :  { %v2785_v59 = vsel %vm7068_vm11, %v6940_v5, %v2781_v12  ;;  %v2800_v41 = vsel %vm7079_vm1, %v6949_v33, %v2796_v9  ;;  %4375 = vrcp.f32 %v6934_v32  ;;  %v7105_v19 = vsel %vm6986_vm2, %v6920_v60, %v2740_v13  ;;  %vm7114_vm8 = vmor %vm2812_vm3, %vm2813_vm6  ;;  %v7130_v18 = vpop.eup %4371 }
 0x2cd   :  { %v7110_v57 = vsel %vm6990_vm0, %v6945_v22, %v2755_v0  ;;  %v2819_v33 = vor.u32 1.1754944e-38, %v2818_v55  ;;  %v2833_v6 = vand.u32 2147483648, %v6910_v35  ;;  %v7122_v30 = vsel %vm6998_vm4, %v6954_v62, %v2770_v63 }
 0x2ce   :  { %v2815_v60 = vsel %vm7114_vm8, %v6958_v58, %v2811_v45  ;;  %v2823_v22 = vmul.f32 %v7100_v14, %v6910_v35  ;;  %v2848_v8 = vand.u32 2147483648, %v6925_v48  ;;  %v7134_v47 = vsel %vm7014_vm7, %v2789_v2, %v2785_v59 }
 0x2cf   :  { %v7138_v4 = vsel %vm7042_vm15, %v2804_v44, %v2800_v41  ;;  %v2831_v62 = vand.u32 2147483647, %v6910_v35  ;;  %4377 = vrcp.f32 %v6942_v38  ;;  %v2838_v40 = vmul.f32 %v7130_v18, %v6925_v48 }
 0x2d0   :  { %v2824_v58 = vsub.f32 1.0, %v2823_v22  ;;  %v2863_v26 = vand.u32 2147483648, %v6927_v39  ;;  %v2878_v28 = vand.u32 2147483648, %v6934_v32  ;;  %v7150_v2 = vsel %vm7083_vm9, %v2819_v33, %v2815_v60 }
 0x2d1   :  { %v7146_v3 = vpop.eup %4373  ;;  %vm2827_vm7 = vweird.f32 %v6910_v35  ;;  %v7153_v23 = vor.u32 1.1754944e-38, %v2833_v6  ;;  %v2846_v29 = vand.u32 2147483647, %v6925_v48  ;;  %4379 = vrcp.f32 %v6951_v31 }
 0x2d2   :  { %v7157_v12 = vpop.eup %4375  ;;  %v2839_v9 = vsub.f32 1.0, %v2838_v40  ;;  %vm2842_vm13 = vweird.f32 %v6925_v48  ;;  %v7160_v21 = vor.u32 1.1754944e-38, %v2848_v8  ;;  %v2853_v53 = vmul.f32 %v7146_v3, %v6927_v39 }
 0x2d3   :  { %v2861_v52 = vand.u32 2147483647, %v6927_v39  ;;  %v2825_v55 = vmul.f32 %v7100_v14, %v2824_v58  ;;  %vm2828_vm2 = vweird.f32 %v7100_v14  ;;  %vm2857_vm0 = vweird.f32 %v6927_v39 }
 0x2d4   :  { %v2868_v13 = vmul.f32 %v7157_v12, %v6934_v32  ;;  %v2876_v0 = vand.u32 2147483647, %v6934_v32  ;;  %v2854_v56 = vsub.f32 1.0, %v2853_v53  ;;  %v2864_v45 = vor.u32 1.1754944e-38, %v2863_v26  ;;  %vm7219_vm9 = vmor %vm2827_vm7, %vm2828_vm2 }
 0x2d5   :  { %vm2872_vm4 = vweird.f32 %v6934_v32  ;;  %v7172_v63 = vor.u32 1.1754944e-38, %v2878_v28  ;;  %v2891_v10 = vand.u32 2147483647, %v6942_v38  ;;  %v7175_v44 = vpop.eup %4377  ;;  %v2840_v7 = vmul.f32 %v7130_v18, %v2839_v9 }
 0x2d6   :  { %v2869_v59 = vsub.f32 1.0, %v2868_v13  ;;  %v2893_v41 = vand.u32 2147483648, %v6942_v38  ;;  %4381 = vrcp.f32 %v6960_v51  ;;  %vm2843_vm10 = vweird.f32 %v7130_v18 }
 0x2d7   :  { %v2855_v5 = vmul.f32 %v7146_v3, %v2854_v56  ;;  %v2883_v33 = vmul.f32 %v7175_v44, %v6942_v38  ;;  %v7185_v6 = vpop.eup %4379  ;;  %v7188_v60 = vadd.f32 %v7100_v14, %v2825_v55  ;;  %vm7190_vm15 = vcmp.eq.f32.partialorder %v2846_v29, 8.507059e+37  ;;  %vm7236_vm8 = vmor %vm2842_vm13, %vm2843_vm10 }
 0x2d8   :  { %vm7194_vm12 = vcmp.eq.f32.partialorder %v2861_v52, 8.507059e+37  ;;  %v2870_v58 = vmul.f32 %v7157_v12, %v2869_v59  ;;  %v2906_v40 = vand.u32 2147483647, %v6951_v31  ;;  %vm2858_vm11 = vweird.f32 %v7146_v3 }
 0x2d9   :  { %vm2873_vm6 = vweird.f32 %v7157_v12  ;;  %vm7203_vm5 = vcmp.eq.f32.partialorder %v2876_v0, 8.507059e+37  ;;  %v2884_v28 = vsub.f32 1.0, %v2883_v33  ;;  %v2898_v29 = vmul.f32 %v7185_v6, %v6951_v31  ;;  %vm7251_vm14 = vmor %vm2857_vm0, %vm2858_vm11 }
 0x2da   :  { %v2841_v9 = vadd.f32 %v7130_v18, %v2840_v7  ;;  %v2856_v53 = vadd.f32 %v7146_v3, %v2855_v5  ;;  %vm7211_vm1 = vcmp.eq.f32.partialorder %v2891_v10, 8.507059e+37  ;;  %v2894_v55 = vor.u32 1.1754944e-38, %v2893_v41  ;;  %vm7270_vm13 = vmor %vm2872_vm4, %vm2873_vm6 }
 0x2db   :  { %v2871_v0 = vadd.f32 %v7157_v12, %v2870_v58  ;;  %v2885_v56 = vmul.f32 %v7175_v44, %v2884_v28  ;;  %v2899_v7 = vsub.f32 1.0, %v2898_v29  ;;  %v2908_v59 = vand.u32 2147483648, %v6951_v31 }
 0x2dc   :  { %v7226_v10 = vpop.eup %4381  ;;  %vm2888_vm7 = vweird.f32 %v7175_v44  ;;  %vm7241_vm2 = vcmp.eq.f32.partialorder %v2906_v40, 8.507059e+37  ;;  %vm2917_vm3 = vweird.f32 %v6960_v51  ;;  %4383 = vrcp.f32 %v6971_v25 }
 0x2dd   :  { %v2886_v58 = vadd.f32 %v7175_v44, %v2885_v56  ;;  %v2900_v28 = vmul.f32 %v7185_v6, %v2899_v7  ;;  %v2913_v40 = vmul.f32 %v7226_v10, %v6960_v51  ;;  %v2921_v29 = vand.u32 2147483647, %v6960_v51 }
 0x2de   :  { %v2845_v41 = vsel %vm7236_vm8, %v7130_v18, %v2841_v9  ;;  %v2860_v39 = vsel %vm7251_vm14, %v7146_v3, %v2856_v53  ;;  %vm2903_vm0 = vweird.f32 %v7185_v6  ;;  %v2923_v7 = vand.u32 2147483648, %v6960_v51 }
 0x2df   :  { %v2875_v18 = vsel %vm7270_vm13, %v7157_v12, %v2871_v0  ;;  %vm8313_vm10 = vweird.f32 %v6942_v38  ;;  %v2901_v32 = vadd.f32 %v7185_v6, %v2900_v28  ;;  %v2909_v9 = vor.u32 1.1754944e-38, %v2908_v59 }
 0x2e0   :  { %vm7283_vm14 = vmor %vm8313_vm10, %vm2888_vm7  ;;  %v2914_v53 = vsub.f32 1.0, %v2913_v40  ;;  %v2936_v48 = vand.u32 2147483647, %v6971_v25  ;;  %v2938_v12 = vand.u32 2147483648, %v6971_v25  ;;  %4385 = vrcp.f32 %v6983_v50 }
 0x2e1   :  { %v2890_v5 = vsel %vm7283_vm14, %v7175_v44, %v2886_v58  ;;  %v2850_v38 = vsel %vm7190_vm15, %v7160_v21, %v2845_v41  ;;  %v2865_v0 = vsel %vm7194_vm12, %v2864_v45, %v2860_v39  ;;  %vm8316_vm4 = vweird.f32 %v6951_v31 }
 0x2e2   :  { %vm7301_vm11 = vmor %vm8316_vm4, %vm2903_vm0  ;;  %v2915_v44 = vmul.f32 %v7226_v10, %v2914_v53  ;;  %vm7306_vm6 = vcmp.eq.f32.partialorder %v2921_v29, 8.507059e+37  ;;  %v4384_v28 = vpop.eup %4383  ;;  %v2880_v21 = vsel %vm7203_vm5, %v7172_v63, %v2875_v18  ;;  %vm2918_vm15 = vweird.f32 %v7226_v10 }
 0x2e3   :  { %v2905_v45 = vsel %vm7301_vm11, %v7185_v6, %v2901_v32  ;;  %v2924_v31 = vor.u32 1.1754944e-38, %v2923_v7  ;;  %vm7319_vm12 = vcmp.eq.f32.partialorder %v2831_v62, 8.507059e+37  ;;  %v2895_v8 = vsel %vm7211_vm1, %v2894_v55, %v2890_v5  ;;  %vm7341_vm1 = vmor %vm2917_vm3, %vm2918_vm15 }
 0x2e4   :  { %v2916_v41 = vadd.f32 %v7226_v10, %v2915_v44  ;;  %v2928_v63 = vmul.f32 %v4384_v28, %v6971_v25  ;;  %vm2932_vm5 = vweird.f32 %v6971_v25  ;;  %vm7328_vm8 = vcmp.eq.f32.partialorder %v2936_v48, 8.507059e+37 }
 0x2e5   :  { %v2939_v26 = vor.u32 1.1754944e-38, %v2938_v12  ;;  %v2951_v35 = vand.u32 2147483647, %v6983_v50  ;;  %v7335_v62 = vmul.f32 %v7105_v19, %v6803_v1  ;;  %v2910_v52 = vsel %vm7241_vm2, %v2909_v9, %v2905_v45 }
 0x2e6   :  { %v2929_v40 = vsub.f32 1.0, %v2928_v63  ;;  %v2953_v29 = vand.u32 2147483648, %v6983_v50  ;;  %v7348_v39 = vmul.f32 %v7091_v20, %v6800_v24  ;;  %v4386_v56 = vpop.eup %4385  ;;  %v2920_v1 = vsel %vm7341_vm1, %v7226_v10, %v2916_v41 }
 0x2e7   :  { %vm2933_vm7 = vweird.f32 %v4384_v28  ;;  %v7355_v51 = vmul.f32 %v7110_v57, %v6809_v49  ;;  %v7358_v19 = vmul.f32 %v2865_v0, %v6848_v61  ;;  %v2943_v7 = vmul.f32 %v4386_v56, %v6983_v50 }
 0x2e8   :  { %v2930_v33 = vmul.f32 %v4384_v28, %v2929_v40  ;;  %v7362_v18 = vmul.f32 %v2850_v38, %v6843_v34  ;;  %v7365_v24 = vmul.f32 %v2880_v21, %v6853_v16  ;;  %v7369_v20 = vmul.f32 %v7122_v30, %v6815_v27  ;;  %vm2934_vm3 = vmor %vm2932_vm5, %vm2933_vm7 }
 0x2e9   :  { %v7373_v49 = vmul.f32 %v7134_v47, %v6821_v37  ;;  %v7376_v61 = vmul.f32 %v2895_v8, %v6858_v46  ;;  %v2973_v57 = vadd.f32 %v7335_v62, %v7348_v39  ;;  %v2944_v34 = vsub.f32 1.0, %v2943_v7 }
 0x2ea   :  { %v2931_v10 = vadd.f32 %v4384_v28, %v2930_v33  ;;  %v2986_v16 = vadd.f32 %v7358_v19, %v7362_v18  ;;  %v2925_v3 = vsel %vm7306_vm6, %v2924_v31, %v2920_v1  ;;  %vm2948_vm2 = vweird.f32 %v4386_v56 }
 0x2eb   :  { %v2974_v27 = vadd.f32 %v2973_v57, %v7355_v51  ;;  %v4493_v37 = vmov 64.0   ;;  %v2945_v30 = vmul.f32 %v4386_v56, %v2944_v34  ;;  %v7389_v47 = vmul.f32 %v2910_v52, %v6862_v11 }
 0x2ec   :  { %4387 = vrcp.f32 %v4493_v37  ;;  %v2935_v46 = vsel %vm2934_vm3, %v4384_v28, %v2931_v10  ;;  %v2987_v32 = vadd.f32 %v2986_v16, %v7365_v24  ;;  %v8327_v9 = vsel %vm7219_vm9, %v7100_v14, %v7188_v60 }
 0x2ed   :  { %v2835_v25 = vsel %vm7319_vm12, %v7153_v23, %v8327_v9  ;;  %v2940_v53 = vsel %vm7328_vm8, %v2939_v26, %v2935_v46  ;;  %v7404_v5 = vmul.f32 %v7138_v4, %v6825_v43  ;;  %v2975_v11 = vadd.f32 %v2974_v27, %v7369_v20  ;;  %v4190_v27 = vld [vmem:[%s7801_s8] ss:$0 sm:$0xff] }
 0x2ee   :  { %v2946_v48 = vadd.f32 %v4386_v56, %v2945_v30  ;;  %vm2947_vm13 = vweird.f32 %v6983_v50  ;;  %v7409_v13 = vmul.f32 %v2925_v3, %v6866_v17  ;;  %v2988_v14 = vadd.f32 %v2987_v32, %v7376_v61  ;;  %v3120_v30 = vld [vmem:[%s7802_s9] sm:$0xf] }
 0x2ef   :  { %vm2949_vm9 = vmor %vm2947_vm13, %vm2948_vm2  ;;  %v2954_v23 = vor.u32 1.1754944e-38, %v2953_v29  ;;  %v7415_v60 = vmul.f32 %v7150_v2, %v6832_v42  ;;  %v2976_v43 = vadd.f32 %v2975_v11, %v7373_v49  ;;  %vm2952_vm0 = vcmp.eq.f32.partialorder %v2951_v35, 8.507059e+37 }
 0x2f0   :  { %v2950_v4 = vsel %vm2949_vm9, %v4386_v56, %v2946_v48  ;;  %v7419_v12 = vmul.f32 %v2940_v53, %v6872_v15  ;;  %v2989_v50 = vadd.f32 %v2988_v14, %v7389_v47  ;;  %v7423_v0 = vmul.f32 %v2835_v25, %v6838_v54 }
 0x2f1   :  { %v2955_v38 = vsel %vm2952_vm0, %v2954_v23, %v2950_v4  ;;  %v2977_v59 = vadd.f32 %v2976_v43, %v7404_v5  ;;  %vm3034_vm14 = vcmask 1041409   ;;  %vm8328_vm4 = vcmask 1043456  }
 0x2f2   :  { %v4388_v17 = vpop.eup %4387  ;;  %v7427_v44 = vmul.f32 %v2955_v38, %v6887_v36  ;;  %v2990_v42 = vadd.f32 %v2989_v50, %v7409_v13  ;;  %v3131_v32 = vsel %vm8328_vm4, %v3120_v30, 0  ;;  %vm3125_vm5 = vcmask 64512  }
 0x2f3   :  { %v3000_v2 = vmul.f32 64.0, %v4388_v17  ;;  %v2978_v58 = vadd.f32 %v2977_v59, %v7415_v60  ;;  %vm3004_vm10 = vweird.f32 %v4388_v17  ;;  %3140 = vmatpush.bf16.msra.mxu2 %v3131_v32  ;;  %vm8331_vm2 = vcmask 261120  }
 0x2f4   :  { %v2991_v15 = vadd.f32 %v2990_v42, %v7419_v12  ;;  %vm8334_vm13 = vmmov %vm8331_vm2 }
 0x2f5   :  { %v3001_v28 = vsub.f32 1.0, %v3000_v2  ;;  %v2979_v21 = vadd.f32 %v2978_v58, %v7423_v0  ;;  %vm8337_vm9 = vmmov %vm8331_vm2 }
 0x2f6   :  { %v2992_v45 = vadd.f32 %v2991_v15, %v7427_v44  ;;  %v4191_v15 = vld [vmem:[%s7803_s10] ss:$0 sm:$0xff]  ;;  %vm8340_vm0 = vmmov %vm8331_vm2 }
 0x2f7   :  { %v2980_v31 = vrot.slane %v2979_v21, 4  ;;  %v3002_v22 = vmul.f32 %v4388_v17, %v3001_v28  ;;  %vm8346_vm4 = vmmov %vm8340_vm0 }
 0x2f8   :  { %v2993_v54 = vrot.slane %v2992_v45, 4 }
 0x2f9   :  { %v2981_v8 = vadd.f32 %v2980_v31, %v2979_v21  ;;  %v3003_v6 = vadd.f32 %v4388_v17, %v3002_v22  ;;  %v4159_v22 = vld [vmem:[%s7804_s11 + $0x28] sm:$0xff] }
 0x2fa   :  { %v2994_v41 = vadd.f32 %v2993_v54, %v2992_v45  ;;  %v4161_v45 = vld [vmem:[%s7804_s11 + $0x38] sm:$0xff]  ;;  %v4160_v54 = vld [vmem:[%s7804_s11 + $0x30] sm:$0xff] }
 0x2fb   :  { %v2982_v63 = vrot.slane %v2981_v8, 2  ;;  %v7434_v40 = vsel %vm3004_vm10, %v4388_v17, %v3003_v6  ;;  %3263 = vmatpush.bf16.msra.mxu3 %v4161_v45  ;;  %v4157_v6 = vld [vmem:[%s7804_s11 + $0x18] sm:$0xff]  ;;  %vm8343_vm10 = vmmov %vm8340_vm0 }
 0x2fc   :  { %v2995_v36 = vrot.slane %v2994_v41, 2 }
 0x2fd   :  { %v2983_v26 = vadd.f32 %v2982_v63, %v2981_v8  ;;  %v4158_v63 = vld [vmem:[%s7804_s11 + $0x20] sm:$0xff] }
 0x2fe   :  { %v2996_v35 = vadd.f32 %v2995_v36, %v2994_v41 }
 0x2ff   :  { %v2984_v52 = vrot.slane %v2983_v26, 1  ;;  %3264 = vmatpush.bf16.msra.mxu3 %v4160_v54  ;;  %v8332_v54 = vld [vmem:[#allocation8_spill] sm:$0xff] }
 0x300   :  { %v2997_v55 = vrot.slane %v2996_v35, 1 }
 0x301   :  { %v2985_v29 = vadd.f32 %v2984_v52, %v2983_v26  ;;  %v4156_v26 = vld [vmem:[%s7804_s11 + $0x10] sm:$0xff] }
 0x302   :  { %v2998_v56 = vadd.f32 %v2997_v55, %v2996_v35 }
 0x303   :  { %v3006_v1 = vmul.f32 %v7434_v40, %v2985_v29  ;;  %3265 = vmatpush.bf16.msra.mxu3 %v4159_v22  ;;  %v4155_v29 = vld [vmem:[%s7804_s11 + $0x8] sm:$0xff] }
 0x304   :  { %v3007_v33 = vmul.f32 %v7434_v40, %v2998_v56 }
 0x305   :  { %v3008_v7 = vpack.c.bf16 %v3006_v1, %v3006_v1 }
 0x306   :  { %v3009_v57 = vpack.c.bf16 %v3007_v33, %v3007_v33 }
 0x307   :  { %v3032_v10 = vunpack.c.l.b16 %v3008_v7  ;;  %3266 = vmatpush.bf16.msra.mxu3 %v4158_v63 }
 0x308   :  { %v3033_v34 = vunpack.c.l.b16 %v3009_v57  ;;  %v4154_v57 = vld [vmem:[%s7804_s11] sm:$0xff] }
 0x30a   :  { %v3035_v16 = vsel %vm3034_vm14, %v3033_v34, %v3032_v10 }
 0x30b   :  { %v3036_v3 = vpack.c.b16 %v3035_v16, %v3035_v16  ;;  %3267 = vmatpush.bf16.msra.mxu3 %v4157_v6 }
 0x30d   :  { %3094 = vmatmul.bf16.vlgmr.msrb.gmra.mxu1 %v3036_v3 }
 0x30f   :  { %3268 = vmatpush.bf16.msra.mxu3 %v4156_v26 }
 0x313   :  { %3269 = vmatpush.bf16.msra.mxu3 %v4155_v29  ;;  %v8336_v29 = vld [vmem:[#allocation11_spill] sm:$0xff] }
 0x317   :  { %3270 = vmatpush.bf16.msra.mxu3 %v4154_v57 }
 0x38a   :  { %v3095_v37 = vpop.f32.mrf.mxu1 }
 0x38b   :  { %v3096_v46 = vadd.f32 %v4190_v27, %v3095_v37 }
 0x38d   :  { %v4035_v9 = vmul.f32 -1.442695, %v3096_v46 }
 0x38f   :  { %4389 = vpow2.f32 %v4035_v9 }
 0x392   :  { %v3097_v25 = vpop.f32.mrf.mxu1 }
 0x395   :  { %v4390_v53 = vpop.eup %4389 }
 0x396   :  { %v3102_v11 = vadd.f32 1.0, %v4390_v53 }
 0x398   :  { %4391 = vrcp.f32 %v3102_v11  ;;  %v3114_v43 = vand.u32 2147483648, %v3102_v11  ;;  %v3112_v50 = vand.u32 2147483647, %v3102_v11  ;;  %vm3108_vm6 = vweird.f32 %v3102_v11 }
 0x39a   :  { %v3115_v38 = vor.u32 1.1754944e-38, %v3114_v43  ;;  %vm3113_vm12 = vcmp.eq.f32.partialorder %v3112_v50, 8.507059e+37 }
 0x39e   :  { %v4392_v48 = vpop.eup %4391 }
 0x39f   :  { %v3104_v14 = vmul.f32 %v4392_v48, %v3102_v11  ;;  %vm3109_vm11 = vweird.f32 %v4392_v48 }
 0x3a0   :  { %vm3110_vm15 = vmor %vm3108_vm6, %vm3109_vm11 }
 0x3a1   :  { %v3105_v23 = vsub.f32 1.0, %v3104_v14  ;;  %vm8349_vm11 = vmmov %vm8340_vm0 }
 0x3a2   :  { %vm8352_vm6 = vmmov %vm8340_vm0 }
 0x3a3   :  { %v3106_v4 = vmul.f32 %v4392_v48, %v3105_v23 }
 0x3a5   :  { %v3107_v17 = vadd.f32 %v4392_v48, %v3106_v4 }
 0x3a7   :  { %v3111_v59 = vsel %vm3110_vm15, %v4392_v48, %v3107_v17 }
 0x3a8   :  { %v3116_v42 = vsel %vm3113_vm12, %v3115_v38, %v3111_v59 }
 0x3a9   :  { %v3118_v2 = vmul.f32 %v3116_v42, %v3096_v46 }
 0x3ab   :  { %v3119_v58 = vpack.c.bf16 %v3118_v2, %v3118_v2  ;;  %v8329_v2 = vld [vmem:[#allocation6_spill] sm:$0xff] }
 0x3ad   :  { %4036 = vmatmul.msk.bf16.vlgmr.msra.gmra.mxu2 %vm3125_vm5, %v3119_v58 }
 0x430   :  { %v3142_v28 = vpop.f32.mrf.mxu2 }
 0x431   :  { %v3143_v21 = vadd.f32 %v4191_v15, %v3142_v28  ;;  %v8330_v15 = vld [vmem:[#allocation7_spill] sm:$0xff] }
 0x433   :  { %v4037_v31 = vmul.f32 -1.442695, %v3143_v21 }
 0x435   :  { %4393 = vpow2.f32 %v4037_v31 }
 0x438   :  { %v3144_v8 = vpop.f32.mrf.mxu2 }
 0x439   :  { %v8333_v8 = vld [vmem:[#allocation9_spill] sm:$0xff] }
 0x43b   :  { %v4394_v41 = vpop.eup %4393 }
 0x43c   :  { %v3149_v36 = vadd.f32 1.0, %v4394_v41 }
 0x43e   :  { %4395 = vrcp.f32 %v3149_v36  ;;  %v3161_v56 = vand.u32 2147483648, %v3149_v36  ;;  %v3159_v33 = vand.u32 2147483647, %v3149_v36  ;;  %vm3155_vm1 = vweird.f32 %v3149_v36 }
 0x440   :  { %v3162_v10 = vor.u32 1.1754944e-38, %v3161_v56  ;;  %vm3160_vm3 = vcmp.eq.f32.partialorder %v3159_v33, 8.507059e+37 }
 0x444   :  { %v4396_v35 = vpop.eup %4395 }
 0x445   :  { %v3151_v52 = vmul.f32 %v4396_v35, %v3149_v36  ;;  %vm3156_vm8 = vweird.f32 %v4396_v35 }
 0x446   :  { %vm3157_vm7 = vmor %vm3155_vm1, %vm3156_vm8 }
 0x447   :  { %v3152_v55 = vsub.f32 1.0, %v3151_v52  ;;  %v8335_v52 = vld [vmem:[#allocation10_spill] sm:$0xff] }
 0x449   :  { %v3153_v1 = vmul.f32 %v4396_v35, %v3152_v55 }
 0x44b   :  { %v3154_v7 = vadd.f32 %v4396_v35, %v3153_v1 }
 0x44d   :  { %v3158_v34 = vsel %vm3157_vm7, %v4396_v35, %v3154_v7 }
 0x44e   :  { %v3163_v16 = vsel %vm3160_vm3, %v3162_v10, %v3158_v34  ;;  %v8338_v34 = vld [vmem:[#allocation12_spill] sm:$0xff] }
 0x44f   :  { %v3167_v3 = vperm.slane %v3163_v16, 0 }
 0x451   :  { %v3171_v27 = vmul.f32 %v3167_v3, %v7348_v39  ;;  %v3172_v37 = vmul.f32 %v3167_v3, %v7335_v62  ;;  %v3173_v30 = vmul.f32 %v3167_v3, %v7355_v51  ;;  %v3174_v32 = vmul.f32 %v3167_v3, %v7369_v20 }
 0x452   :  { %v3175_v25 = vmul.f32 %v3167_v3, %v7373_v49  ;;  %v3176_v53 = vmul.f32 %v3167_v3, %v7404_v5  ;;  %v3177_v48 = vmul.f32 %v3167_v3, %v7415_v60  ;;  %v3178_v39 = vmul.f32 %v3167_v3, %v7423_v0  ;;  %v4163_v60 = vld [vmem:[%s7806_s13 + $0x8] sm:$0xff]  ;;  %v8339_v3 = vld [vmem:[#allocation13_spill] sm:$0xff] }
 0x453   :  { %v3187_v46 = vpack.c.bf16 %v3172_v37, %v3171_v27  ;;  %v3188_v9 = vpack.c.bf16 %v3174_v32, %v3173_v30  ;;  %v3166_v62 = vrot.slane %v3163_v16, 1  ;;  %3386 = vmatpush.bf16.msrb.mxu2 %v4163_v60 }
 0x454   :  { %v3189_v11 = vpack.c.bf16 %v3176_v53, %v3175_v25  ;;  %v3190_v14 = vpack.c.bf16 %v3178_v39, %v3177_v48  ;;  %v8341_v25 = vld [vmem:[#allocation14_spill] sm:$0xff] }
 0x455   :  { %3271 = vmatmul.bf16.vlgmr.msra.gmra.mxu3 %v3187_v46  ;;  %v3168_v23 = vperm.slane %v3166_v62, 0 }
 0x457   :  { %v3179_v51 = vmul.f32 %v3168_v23, %v7362_v18  ;;  %v3180_v20 = vmul.f32 %v3168_v23, %v7358_v19  ;;  %v3181_v49 = vmul.f32 %v3168_v23, %v7365_v24  ;;  %v3182_v5 = vmul.f32 %v3168_v23, %v7376_v61  ;;  %v4162_v19 = vld [vmem:[%s7806_s13] sm:$0xff] }
 0x458   :  { %v3183_v0 = vmul.f32 %v3168_v23, %v7389_v47  ;;  %v3184_v50 = vmul.f32 %v3168_v23, %v7409_v13  ;;  %3387 = vmatpush.bf16.msrb.mxu2 %v4162_v19  ;;  %v3185_v24 = vmul.f32 %v3168_v23, %v7419_v12  ;;  %v3186_v61 = vmul.f32 %v3168_v23, %v7427_v44  ;;  %v4192_v47 = vld [vmem:[%s7805_s12] ss:$0 sm:$0xff]  ;;  %v8347_v19 = vld [vmem:[#allocation18_spill] sm:$0xff] }
 0x459   :  { %v3191_v43 = vpack.c.bf16 %v3180_v20, %v3179_v51  ;;  %v3192_v4 = vpack.c.bf16 %v3182_v5, %v3181_v49  ;;  %v8344_v20 = vld [vmem:[#allocation16_spill] sm:$0xff]  ;;  %v8345_v49 = vld [vmem:[#allocation17_spill] sm:$0xff] }
 0x45a   :  { %v3193_v18 = vpack.c.bf16 %v3184_v50, %v3183_v0  ;;  %v3194_v17 = vpack.c.bf16 %v3186_v61, %v3185_v24  ;;  %v8348_v61 = vld [vmem:[#allocation19_spill] sm:$0xff] }
 0x465   :  { %3276 = vmatmul.bf16.gmra.mxu3 %v3188_v9 }
 0x475   :  { %3281 = vmatmul.bf16.gmra.mxu3 %v3189_v11  ;;  %v8342_v11 = vld [vmem:[#allocation15_spill] sm:$0xff] }
 0x485   :  { %3286 = vmatmul.bf16.gmra.mxu3 %v3190_v14 }
 0x495   :  { %3291 = vmatmul.bf16.gmra.mxu3 %v3191_v43 }
 0x4a5   :  { %3296 = vmatmul.bf16.gmra.mxu3 %v3192_v4 }
 0x4b5   :  { %3301 = vmatmul.bf16.gmra.mxu3 %v3193_v18 }
 0x4c5   :  { %3306 = vmatmul.bf16.gmra.mxu3 %v3194_v17 }
 0x4d8   :  { %v3272_v38 = vpop.f32.mrf.mxu3 }
 0x4d9   :  { %v3273_v59 = vadd.f32 %v4192_v47, %v3272_v38 }
 0x4db   :  { %v3312_v58 = vadd.f32 %v3273_v59, %v8329_v2 }
 0x4e0   :  { %v3274_v13 = vpop.f32.mrf.mxu3 }
 0x4e1   :  { %v3275_v42 = vadd.f32 %v4192_v47, %v3274_v13 }
 0x4e3   :  { %v3313_v28 = vadd.f32 %v3275_v42, %v8330_v15 }
 0x4e5   :  { %v3328_v21 = vpack.c.bf16 %v3313_v28, %v3312_v58  ;;  %v8350_v58 = vld [vmem:[#allocation20_spill] sm:$0xff]  ;;  %v8351_v28 = vld [vmem:[#allocation21_spill] sm:$0xff] }
 0x4e7   :  { %4078 = vmatmul.msk.bf16.vlgmr.msrb.gmra.mxu2 %vm8331_vm2, %v3328_v21 }
 0x4e8   :  { %v3277_v12 = vpop.f32.mrf.mxu3 }
 0x4e9   :  { %v3278_v45 = vadd.f32 %v4192_v47, %v3277_v12 }
 0x4eb   :  { %v3314_v22 = vadd.f32 %v3278_v45, %v8332_v54  ;;  %v7525_v45 = vld [vmem:[%s7807_s14] ss:$0 sm:$0xff] }
 0x4f0   :  { %v3279_v44 = vpop.f32.mrf.mxu3 }
 0x4f1   :  { %v3280_v31 = vadd.f32 %v4192_v47, %v3279_v44 }
 0x4f3   :  { %v3315_v41 = vadd.f32 %v3280_v31, %v8333_v8 }
 0x4f5   :  { %v3329_v63 = vpack.c.bf16 %v3315_v41, %v3314_v22 }
 0x4f7   :  { %4079 = vmatmul.msk.bf16.gmra.mxu2 %vm8334_vm13, %v3329_v63 }
 0x4f8   :  { %v3282_v36 = vpop.f32.mrf.mxu3 }
 0x4f9   :  { %v3283_v6 = vadd.f32 %v4192_v47, %v3282_v36 }
 0x4fb   :  { %v3316_v55 = vadd.f32 %v3283_v6, %v8335_v52 }
 0x500   :  { %v3284_v26 = vpop.f32.mrf.mxu3 }
 0x501   :  { %v3285_v35 = vadd.f32 %v4192_v47, %v3284_v26 }
 0x503   :  { %v3317_v56 = vadd.f32 %v3285_v35, %v8336_v29 }
 0x505   :  { %v3330_v1 = vpack.c.bf16 %v3317_v56, %v3316_v55 }
 0x507   :  { %4080 = vmatmul.msk.bf16.gmra.mxu2 %vm8337_vm9, %v3330_v1 }
 0x508   :  { %v3287_v33 = vpop.f32.mrf.mxu3 }
 0x509   :  { %v3288_v7 = vadd.f32 %v4192_v47, %v3287_v33 }
 0x50b   :  { %v3318_v16 = vadd.f32 %v3288_v7, %v8338_v34 }
 0x510   :  { %v3289_v57 = vpop.f32.mrf.mxu3 }
 0x511   :  { %v3290_v10 = vadd.f32 %v4192_v47, %v3289_v57 }
 0x513   :  { %v3319_v27 = vadd.f32 %v3290_v10, %v8339_v3 }
 0x515   :  { %v3331_v37 = vpack.c.bf16 %v3319_v27, %v3318_v16 }
 0x517   :  { %4081 = vmatmul.msk.bf16.gmra.mxu2 %vm8340_vm0, %v3331_v37 }
 0x518   :  { %v3292_v46 = vpop.f32.mrf.mxu3 }
 0x519   :  { %v3293_v30 = vadd.f32 %v4192_v47, %v3292_v46 }
 0x51b   :  { %v3320_v53 = vadd.f32 %v3293_v30, %v8341_v25 }
 0x520   :  { %v3294_v32 = vpop.f32.mrf.mxu3 }
 0x521   :  { %v3295_v9 = vadd.f32 %v4192_v47, %v3294_v32 }
 0x523   :  { %v3321_v48 = vadd.f32 %v3295_v9, %v8342_v11 }
 0x525   :  { %v3332_v39 = vpack.c.bf16 %v3321_v48, %v3320_v53 }
 0x527   :  { %4082 = vmatmul.msk.bf16.gmra.mxu2 %vm8343_vm10, %v3332_v39 }
 0x528   :  { %v3297_v14 = vpop.f32.mrf.mxu3 }
 0x529   :  { %v3298_v62 = vadd.f32 %v4192_v47, %v3297_v14 }
 0x52b   :  { %v3322_v43 = vadd.f32 %v3298_v62, %v8344_v20 }
 0x530   :  { %v3299_v23 = vpop.f32.mrf.mxu3 }
 0x531   :  { %v3300_v51 = vadd.f32 %v4192_v47, %v3299_v23 }
 0x533   :  { %v3323_v5 = vadd.f32 %v3300_v51, %v8345_v49 }
 0x535   :  { %v3333_v4 = vpack.c.bf16 %v3323_v5, %v3322_v43 }
 0x537   :  { %4083 = vmatmul.msk.bf16.gmra.mxu2 %vm8346_vm4, %v3333_v4 }
 0x538   :  { %v3302_v60 = vpop.f32.mrf.mxu3 }
 0x539   :  { %v3303_v0 = vadd.f32 %v4192_v47, %v3302_v60 }
 0x53b   :  { %v3324_v24 = vadd.f32 %v3303_v0, %v8347_v19 }
 0x540   :  { %v3304_v50 = vpop.f32.mrf.mxu3 }
 0x541   :  { %v3305_v18 = vadd.f32 %v4192_v47, %v3304_v50 }
 0x543   :  { %v3325_v17 = vadd.f32 %v3305_v18, %v8348_v61 }
 0x545   :  { %v3334_v38 = vpack.c.bf16 %v3325_v17, %v3324_v24 }
 0x547   :  { %4084 = vmatmul.msk.bf16.gmra.mxu2 %vm8349_vm11, %v3334_v38 }
 0x548   :  { %v3307_v59 = vpop.f32.mrf.mxu3 }
 0x549   :  { %v3308_v13 = vadd.f32 %v4192_v47, %v3307_v59 }
 0x54b   :  { %v3326_v15 = vadd.f32 %v3308_v13, %v8350_v58 }
 0x550   :  { %v3309_v42 = vpop.f32.mrf.mxu3 }
 0x551   :  { %v3310_v2 = vadd.f32 %v4192_v47, %v3309_v42 }
 0x553   :  { %v3327_v21 = vadd.f32 %v3310_v2, %v8351_v28 }
 0x555   :  { %v3335_v12 = vpack.c.bf16 %v3327_v21, %v3326_v15 }
 0x557   :  { %4085 = vmatmul.msk.bf16.gmra.mxu2 %vm8352_vm6, %v3335_v12 }
 0x56a   :  { %v3389_v44 = vpop.f32.mrf.mxu2 }
 0x56b   :  { %v3390_v31 = vadd.f32 %v7525_v45, %v3389_v44 }
 0x56d   :  { %v4086_v54 = vmul.f32 -1.442695, %v3390_v31 }
 0x56f   :  { %4397 = vpow2.f32 %v4086_v54 }
 0x572   :  { %v3391_v22 = vpop.f32.mrf.mxu2 }
 0x573   :  { %v3392_v47 = vadd.f32 %v7525_v45, %v3391_v22 }
 0x575   :  { %v4398_v8 = vpop.eup %4397  ;;  %v4087_v41 = vmul.f32 -1.442695, %v3392_v47 }
 0x576   :  { %v3477_v63 = vadd.f32 1.0, %v4398_v8 }
 0x577   :  { %4399 = vpow2.f32 %v4087_v41 }
 0x578   :  { %4401 = vrcp.f32 %v3477_v63  ;;  %v3504_v37 = vand.u32 2147483648, %v3477_v63  ;;  %vm3498_vm12 = vweird.f32 %v3477_v63  ;;  %v3502_v46 = vand.u32 2147483647, %v3477_v63 }
 0x57a   :  { %v3394_v36 = vpop.f32.mrf.mxu2  ;;  %v3505_v14 = vor.u32 1.1754944e-38, %v3504_v37  ;;  %vm3503_vm1 = vcmp.eq.f32.partialorder %v3502_v46, 8.507059e+37 }
 0x57b   :  { %v7530_v6 = vadd.f32 %v7525_v45, %v3394_v36 }
 0x57d   :  { %v4400_v26 = vpop.eup %4399  ;;  %v4088_v35 = vmul.f32 -1.442695, %v7530_v6 }
 0x57e   :  { %v4402_v52 = vpop.eup %4401  ;;  %v3478_v55 = vadd.f32 1.0, %v4400_v26 }
 0x57f   :  { %v3494_v29 = vmul.f32 %v4402_v52, %v3477_v63  ;;  %4403 = vpow2.f32 %v4088_v35  ;;  %vm3499_vm15 = vweird.f32 %v4402_v52  ;;  %v4171_v35 = vld [vmem:[%s7808_s15 + $0x38] sm:$0xff] }
 0x580   :  { %4405 = vrcp.f32 %v3478_v55  ;;  %vm7537_vm5 = vmor %vm3498_vm12, %vm3499_vm15  ;;  %v3517_v9 = vand.u32 2147483647, %v3478_v55  ;;  %v3519_v25 = vand.u32 2147483648, %v3478_v55  ;;  %vm3513_vm7 = vweird.f32 %v3478_v55  ;;  %3854 = vmatpush.bf16.msrb.mxu0 %v4171_v35 }
 0x581   :  { %v3495_v56 = vsub.f32 1.0, %v3494_v29 }
 0x582   :  { %v3396_v1 = vpop.f32.mrf.mxu2  ;;  %v3520_v49 = vor.u32 1.1754944e-38, %v3519_v25  ;;  %vm3518_vm2 = vcmp.eq.f32.partialorder %v3517_v9, 8.507059e+37 }
 0x583   :  { %v3496_v33 = vmul.f32 %v4402_v52, %v3495_v56  ;;  %v7534_v7 = vadd.f32 %v7525_v45, %v3396_v1 }
 0x585   :  { %v4404_v57 = vpop.eup %4403  ;;  %v4089_v10 = vmul.f32 -1.442695, %v7534_v7  ;;  %v3497_v3 = vadd.f32 %v4402_v52, %v3496_v33 }
 0x586   :  { %v4406_v34 = vpop.eup %4405  ;;  %v3479_v16 = vadd.f32 1.0, %v4404_v57 }
 0x587   :  { %v3509_v27 = vmul.f32 %v4406_v34, %v3478_v55  ;;  %4407 = vpow2.f32 %v4089_v10  ;;  %v3501_v11 = vsel %vm7537_vm5, %v4402_v52, %v3497_v3  ;;  %vm3514_vm8 = vweird.f32 %v4406_v34 }
 0x588   :  { %4409 = vrcp.f32 %v3479_v16  ;;  %v3506_v43 = vsel %vm3503_vm1, %v3505_v14, %v3501_v11  ;;  %vm3515_vm3 = vmor %vm3513_vm7, %vm3514_vm8  ;;  %v3532_v24 = vand.u32 2147483647, %v3479_v16  ;;  %v3534_v61 = vand.u32 2147483648, %v3479_v16 }
 0x589   :  { %v3510_v30 = vsub.f32 1.0, %v3509_v27  ;;  %v3733_v50 = vmul.f32 %v3506_v43, %v3390_v31  ;;  %vm3528_vm9 = vweird.f32 %v3479_v16 }
 0x58a   :  { %v3399_v53 = vpop.f32.mrf.mxu2  ;;  %v3535_v28 = vor.u32 1.1754944e-38, %v3534_v61  ;;  %vm3533_vm10 = vcmp.eq.f32.partialorder %v3532_v24, 8.507059e+37 }
 0x58b   :  { %v3511_v48 = vmul.f32 %v4406_v34, %v3510_v30  ;;  %v7544_v39 = vadd.f32 %v7525_v45, %v3399_v53 }
 0x58d   :  { %v4408_v62 = vpop.eup %4407  ;;  %v3512_v23 = vadd.f32 %v4406_v34, %v3511_v48  ;;  %v4090_v51 = vmul.f32 -1.442695, %v7544_v39 }
 0x58e   :  { %v4410_v20 = vpop.eup %4409  ;;  %v3480_v5 = vadd.f32 1.0, %v4408_v62 }
 0x58f   :  { %v3516_v4 = vsel %vm3515_vm3, %v4406_v34, %v3512_v23  ;;  %v3524_v60 = vmul.f32 %v4410_v20, %v3479_v16  ;;  %4411 = vpow2.f32 %v4090_v51  ;;  %vm3529_vm13 = vweird.f32 %v4410_v20 }
 0x590   :  { %v3521_v0 = vsel %vm3518_vm2, %v3520_v49, %v3516_v4  ;;  %4413 = vrcp.f32 %v3480_v5  ;;  %vm3530_vm0 = vmor %vm3528_vm9, %vm3529_vm13  ;;  %v3549_v8 = vand.u32 2147483648, %v3480_v5  ;;  %vm3543_vm11 = vweird.f32 %v3480_v5 }
 0x591   :  { %v3734_v18 = vmul.f32 %v3521_v0, %v3392_v47  ;;  %v3525_v19 = vsub.f32 1.0, %v3524_v60  ;;  %v3547_v47 = vand.u32 2147483647, %v3480_v5 }
 0x592   :  { %v3401_v17 = vpop.f32.mrf.mxu2  ;;  %v3550_v56 = vor.u32 1.1754944e-38, %v3549_v8 }
 0x593   :  { %v3749_v38 = vadd.f32 %v3734_v18, %v3733_v50  ;;  %v3526_v59 = vmul.f32 %v4410_v20, %v3525_v19  ;;  %v7548_v13 = vadd.f32 %v7525_v45, %v3401_v17  ;;  %vm3548_vm15 = vcmp.eq.f32.partialorder %v3547_v47, 8.507059e+37 }
 0x595   :  { %v4412_v42 = vpop.eup %4411  ;;  %v3527_v2 = vadd.f32 %v4410_v20, %v3526_v59  ;;  %v4091_v58 = vmul.f32 -1.442695, %v7548_v13 }
 0x596   :  { %v4414_v15 = vpop.eup %4413  ;;  %v3481_v21 = vadd.f32 1.0, %v4412_v42 }
 0x597   :  { %v3531_v12 = vsel %vm3530_vm0, %v4410_v20, %v3527_v2  ;;  %v3539_v44 = vmul.f32 %v4414_v15, %v3480_v5  ;;  %4415 = vpow2.f32 %v4091_v58  ;;  %vm3544_vm4 = vweird.f32 %v4414_v15 }
 0x598   :  { %v3536_v31 = vsel %vm3533_vm10, %v3535_v28, %v3531_v12  ;;  %4417 = vrcp.f32 %v3481_v21  ;;  %vm3545_vm6 = vmor %vm3543_vm11, %vm3544_vm4  ;;  %v3562_v3 = vand.u32 2147483647, %v3481_v21  ;;  %v3564_v27 = vand.u32 2147483648, %v3481_v21 }
 0x599   :  { %v3735_v54 = vmul.f32 %v3536_v31, %v7530_v6  ;;  %v3540_v22 = vsub.f32 1.0, %v3539_v44  ;;  %vm3558_vm5 = vweird.f32 %v3481_v21 }
 0x59a   :  { %v3404_v41 = vpop.f32.mrf.mxu2  ;;  %v3565_v48 = vor.u32 1.1754944e-38, %v3564_v27  ;;  %vm3563_vm1 = vcmp.eq.f32.partialorder %v3562_v3, 8.507059e+37 }
 0x59b   :  { %v3750_v63 = vadd.f32 %v3749_v38, %v3735_v54  ;;  %v3541_v36 = vmul.f32 %v4414_v15, %v3540_v22  ;;  %v7553_v26 = vadd.f32 %v7525_v45, %v3404_v41 }
 0x59d   :  { %v4416_v52 = vpop.eup %4415  ;;  %v3542_v55 = vadd.f32 %v4414_v15, %v3541_v36  ;;  %v4092_v29 = vmul.f32 -1.442695, %v7553_v26 }
 0x59e   :  { %v4418_v6 = vpop.eup %4417  ;;  %v3482_v1 = vadd.f32 1.0, %v4416_v52 }
 0x59f   :  { %v3546_v33 = vsel %vm3545_vm6, %v4414_v15, %v3542_v55  ;;  %v3554_v57 = vmul.f32 %v4418_v6, %v3481_v21  ;;  %4419 = vpow2.f32 %v4092_v29  ;;  %vm3559_vm12 = vweird.f32 %v4418_v6 }
 0x5a0   :  { %v3551_v10 = vsel %vm3548_vm15, %v3550_v56, %v3546_v33  ;;  %4421 = vrcp.f32 %v3482_v1  ;;  %vm3560_vm8 = vmor %vm3558_vm5, %vm3559_vm12  ;;  %v3579_v43 = vand.u32 2147483648, %v3482_v1  ;;  %v3577_v4 = vand.u32 2147483647, %v3482_v1 }
 0x5a1   :  { %v3736_v34 = vmul.f32 %v3551_v10, %v7534_v7  ;;  %v3555_v16 = vsub.f32 1.0, %v3554_v57  ;;  %vm3573_vm3 = vweird.f32 %v3482_v1 }
 0x5a2   :  { %v3406_v37 = vpop.f32.mrf.mxu2  ;;  %v3580_v18 = vor.u32 1.1754944e-38, %v3579_v43  ;;  %vm3578_vm13 = vcmp.eq.f32.partialorder %v3577_v4, 8.507059e+37 }
 0x5a3   :  { %v3751_v46 = vadd.f32 %v3750_v63, %v3736_v34  ;;  %v3556_v30 = vmul.f32 %v4418_v6, %v3555_v16  ;;  %v7561_v32 = vadd.f32 %v7525_v45, %v3406_v37 }
 0x5a5   :  { %v4420_v9 = vpop.eup %4419  ;;  %v3557_v25 = vadd.f32 %v4418_v6, %v3556_v30  ;;  %v4093_v53 = vmul.f32 -1.442695, %v7561_v32 }
 0x5a6   :  { %v4422_v11 = vpop.eup %4421  ;;  %v3483_v14 = vadd.f32 1.0, %v4420_v9 }
 0x5a7   :  { %v3561_v7 = vsel %vm3560_vm8, %v4418_v6, %v3557_v25  ;;  %v3569_v62 = vmul.f32 %v4422_v11, %v3482_v1  ;;  %4423 = vpow2.f32 %v4093_v53  ;;  %vm3574_vm7 = vweird.f32 %v4422_v11 }
 0x5a8   :  { %v3566_v23 = vsel %vm3563_vm1, %v3565_v48, %v3561_v7  ;;  %4425 = vrcp.f32 %v3483_v14  ;;  %vm3575_vm2 = vmor %vm3573_vm3, %vm3574_vm7  ;;  %v3594_v2 = vand.u32 2147483648, %v3483_v14  ;;  %v3592_v28 = vand.u32 2147483647, %v3483_v14  ;;  %v4168_v48 = vld [vmem:[%s7808_s15 + $0x20] sm:$0xff] }
 0x5a9   :  { %v3737_v51 = vmul.f32 %v3566_v23, %v7544_v39  ;;  %v3570_v20 = vsub.f32 1.0, %v3569_v62  ;;  %v4170_v39 = vld [vmem:[%s7808_s15 + $0x30] sm:$0xff]  ;;  %vm3588_vm0 = vweird.f32 %v3483_v14 }
 0x5aa   :  { %v3409_v17 = vpop.f32.mrf.mxu2  ;;  %3855 = vmatpush.bf16.msrb.mxu0 %v4170_v39  ;;  %v3595_v44 = vor.u32 1.1754944e-38, %v3594_v2  ;;  %vm3593_vm4 = vcmp.eq.f32.partialorder %v3592_v28, 8.507059e+37 }
 0x5ab   :  { %v3752_v49 = vadd.f32 %v3751_v46, %v3737_v51  ;;  %v3571_v5 = vmul.f32 %v4422_v11, %v3570_v20  ;;  %v7571_v52 = vadd.f32 %v7525_v45, %v3409_v17 }
 0x5ad   :  { %v4424_v60 = vpop.eup %4423  ;;  %v3572_v0 = vadd.f32 %v4422_v11, %v3571_v5  ;;  %v4094_v33 = vmul.f32 -1.442695, %v7571_v52 }
 0x5ae   :  { %v4426_v50 = vpop.eup %4425  ;;  %v3484_v19 = vadd.f32 1.0, %v4424_v60 }
 0x5af   :  { %v3576_v24 = vsel %vm3575_vm2, %v4422_v11, %v3572_v0  ;;  %v3584_v61 = vmul.f32 %v4426_v50, %v3483_v14  ;;  %vm3589_vm9 = vweird.f32 %v4426_v50 }
 0x5b0   :  { %v3581_v38 = vsel %vm3578_vm13, %v3580_v18, %v3576_v24  ;;  %4427 = vrcp.f32 %v3484_v19  ;;  %vm3590_vm10 = vmor %vm3588_vm0, %vm3589_vm9  ;;  %v3609_v41 = vand.u32 2147483648, %v3484_v19  ;;  %v3607_v35 = vand.u32 2147483647, %v3484_v19 }
 0x5b1   :  { %v3738_v59 = vmul.f32 %v3581_v38, %v7548_v13  ;;  %v3585_v42 = vsub.f32 1.0, %v3584_v61  ;;  %vm3603_vm6 = vweird.f32 %v3484_v19  ;;  %4429 = vpow2.f32 %v4094_v33  ;;  %v4167_v38 = vld [vmem:[%s7808_s15 + $0x18] sm:$0xff] }
 0x5b2   :  { %v3411_v22 = vpop.f32.mrf.mxu2  ;;  %v3610_v29 = vor.u32 1.1754944e-38, %v3609_v41  ;;  %vm3608_vm12 = vcmp.eq.f32.partialorder %v3607_v35, 8.507059e+37 }
 0x5b3   :  { %v3753_v58 = vadd.f32 %v3752_v49, %v3738_v59  ;;  %v3586_v15 = vmul.f32 %v4426_v50, %v3585_v42  ;;  %v7579_v10 = vadd.f32 %v7525_v45, %v3411_v22 }
 0x5b5   :  { %v3587_v21 = vadd.f32 %v4426_v50, %v3586_v15  ;;  %v4095_v3 = vmul.f32 -1.442695, %v7579_v10 }
 0x5b6   :  { %v4428_v12 = vpop.eup %4427 }
 0x5b7   :  { %v3591_v31 = vsel %vm3590_vm10, %v4426_v50, %v3587_v21  ;;  %v3599_v54 = vmul.f32 %v4428_v12, %v3484_v19  ;;  %vm3604_vm11 = vweird.f32 %v4428_v12  ;;  %4431 = vpow2.f32 %v4095_v3  ;;  %v4430_v30 = vpop.eup %4429 }
 0x5b8   :  { %v3596_v47 = vsel %vm3593_vm4, %v3595_v44, %v3591_v31  ;;  %vm3605_vm15 = vmor %vm3603_vm6, %vm3604_vm11  ;;  %v3485_v9 = vadd.f32 1.0, %v4430_v30 }
 0x5b9   :  { %v3739_v8 = vmul.f32 %v3596_v47, %v7553_v26  ;;  %v3600_v13 = vsub.f32 1.0, %v3599_v54  ;;  %v4169_v26 = vld [vmem:[%s7808_s15 + $0x28] sm:$0xff] }
 0x5ba   :  { %v3414_v56 = vpop.f32.mrf.mxu2  ;;  %3856 = vmatpush.bf16.msrb.mxu0 %v4169_v26  ;;  %v3622_v31 = vand.u32 2147483647, %v3485_v9  ;;  %v3624_v54 = vand.u32 2147483648, %v3485_v9  ;;  %vm3618_vm8 = vweird.f32 %v3485_v9 }
 0x5bb   :  { %v3754_v63 = vadd.f32 %v3753_v58, %v3739_v8  ;;  %v3601_v36 = vmul.f32 %v4428_v12, %v3600_v13  ;;  %v7584_v16 = vadd.f32 %v7525_v45, %v3414_v56 }
 0x5bc   :  { %vm7649_vm7 = vcmp.eq.f32.partialorder %v3622_v31, 8.507059e+37 }
 0x5bd   :  { %v3602_v55 = vadd.f32 %v4428_v12, %v3601_v36  ;;  %v4096_v37 = vmul.f32 -1.442695, %v7584_v16  ;;  %v4432_v25 = vpop.eup %4431 }
 0x5be   :  { %v7598_v7 = vadd.f32 1.0, %v4432_v25  ;;  %3857 = vmatpush.bf16.msrb.mxu0 %v4168_v48 }
 0x5bf   :  { %v3606_v6 = vsel %vm3605_vm15, %v4428_v12, %v3602_v55  ;;  %4433 = vpow2.f32 %v4096_v37 }
 0x5c0   :  { %v3611_v1 = vsel %vm3608_vm12, %v3610_v29, %v3606_v6  ;;  %v3625_v29 = vor.u32 1.1754944e-38, %v3624_v54  ;;  %vm3633_vm3 = vweird.f32 %v7598_v7  ;;  %v4166_v54 = vld [vmem:[%s7808_s15 + $0x10] sm:$0xff] }
 0x5c1   :  { %v3740_v57 = vmul.f32 %v3611_v1, %v7561_v32 }
 0x5c2   :  { %v3416_v27 = vpop.f32.mrf.mxu2  ;;  %3858 = vmatpush.bf16.msrb.mxu0 %v4167_v38 }
 0x5c3   :  { %v7581_v34 = vadd.f32 %v3754_v63, %v3740_v57  ;;  %v7589_v46 = vadd.f32 %v7525_v45, %v3416_v27  ;;  %v3637_v57 = vand.u32 2147483647, %v7598_v7 }
 0x5c5   :  { %v4097_v32 = vmul.f32 -1.442695, %v7589_v46  ;;  %v4434_v14 = vpop.eup %4433  ;;  %vm3638_vm4 = vcmp.eq.f32.partialorder %v3637_v57, 8.507059e+37 }
 0x5c6   :  { %v7601_v51 = vadd.f32 1.0, %v4434_v14  ;;  %3859 = vmatpush.bf16.msrb.mxu0 %v4166_v54 }
 0x5c7   :  { %4435 = vpow2.f32 %v4097_v32 }
 0x5c8   :  { %4437 = vrcp.f32 %v3485_v9  ;;  %v3652_v25 = vand.u32 2147483647, %v7601_v51  ;;  %v3654_v48 = vand.u32 2147483648, %v7601_v51  ;;  %vm3648_vm0 = vweird.f32 %v7601_v51 }
 0x5ca   :  { %v3419_v53 = vpop.f32.mrf.mxu2  ;;  %vm7701_vm6 = vcmp.eq.f32.partialorder %v3652_v25, 8.507059e+37  ;;  %v3655_v38 = vor.u32 1.1754944e-38, %v3654_v48 }
 0x5cb   :  { %v7593_v11 = vadd.f32 %v7525_v45, %v3419_v53 }
 0x5cd   :  { %v4098_v62 = vmul.f32 -1.442695, %v7593_v11  ;;  %v4436_v23 = vpop.eup %4435 }
 0x5ce   :  { %v4438_v20 = vpop.eup %4437  ;;  %v7604_v43 = vadd.f32 1.0, %v4436_v23 }
 0x5cf   :  { %4439 = vpow2.f32 %v4098_v62  ;;  %v3614_v60 = vmul.f32 %v4438_v20, %v3485_v9  ;;  %vm3619_vm5 = vweird.f32 %v4438_v20  ;;  %v3639_v9 = vand.u32 2147483648, %v7598_v7 }
 0x5d0   :  { %4441 = vrcp.f32 %v7598_v7  ;;  %vm7645_vm1 = vmor %vm3618_vm8, %vm3619_vm5  ;;  %v3756_v62 = vrot.slane %v7581_v34, 4  ;;  %vm3663_vm15 = vweird.f32 %v7604_v43 }
 0x5d1   :  { %4443 = vrcp.f32 %v7601_v51  ;;  %v3615_v19 = vsub.f32 1.0, %v3614_v60 }
 0x5d2   :  { %v3421_v49 = vpop.f32.mrf.mxu2  ;;  %4445 = vrcp.f32 %v7604_v43 }
 0x5d3   :  { %v7607_v5 = vadd.f32 %v7525_v45, %v3421_v49  ;;  %v3616_v2 = vmul.f32 %v4438_v20, %v3615_v19  ;;  %v3669_v49 = vand.u32 2147483648, %v7604_v43  ;;  %v3640_v19 = vor.u32 1.1754944e-38, %v3639_v9 }
 0x5d5   :  { %v4440_v4 = vpop.eup %4439  ;;  %v4099_v0 = vmul.f32 -1.442695, %v7607_v5  ;;  %v3617_v22 = vadd.f32 %v4438_v20, %v3616_v2 }
 0x5d6   :  { %v7612_v50 = vadd.f32 1.0, %v4440_v4  ;;  %v7614_v18 = vpop.eup %4441 }
 0x5d7   :  { %4447 = vpow2.f32 %v4099_v0  ;;  %v7616_v24 = vpop.eup %4443  ;;  %v3629_v61 = vmul.f32 %v7614_v18, %v7598_v7  ;;  %v3621_v56 = vsel %vm7645_vm1, %v4438_v20, %v3617_v22  ;;  %vm3634_vm2 = vweird.f32 %v7614_v18 }
 0x5d8   :  { %4449 = vrcp.f32 %v7612_v50  ;;  %v7627_v59 = vpop.eup %4445  ;;  %v3644_v58 = vmul.f32 %v7616_v24, %v7601_v51  ;;  %v3626_v32 = vsel %vm7649_vm7, %v3625_v29, %v3621_v56  ;;  %vm3649_vm13 = vweird.f32 %v7616_v24  ;;  %vm7681_vm9 = vmor %vm3633_vm3, %vm3634_vm2 }
 0x5d9   :  { %v3630_v28 = vsub.f32 1.0, %v3629_v61  ;;  %v3659_v12 = vmul.f32 %v7627_v59, %v7604_v43  ;;  %v3667_v20 = vand.u32 2147483647, %v7604_v43  ;;  %vm3664_vm10 = vweird.f32 %v7627_v59  ;;  %vm7697_vm11 = vmor %vm3648_vm0, %vm3649_vm13 }
 0x5da   :  { %v3424_v17 = vpop.f32.mrf.mxu2  ;;  %v3645_v47 = vsub.f32 1.0, %v3644_v58  ;;  %v3741_v0 = vmul.f32 %v3626_v32, %v7571_v52  ;;  %vm7710_vm12 = vmor %vm3663_vm15, %vm3664_vm10  ;;  %vm3678_vm1 = vweird.f32 %v7612_v50 }
 0x5db   :  { %v7622_v39 = vadd.f32 %v7525_v45, %v3424_v17  ;;  %v3631_v8 = vmul.f32 %v7614_v18, %v3630_v28  ;;  %v3660_v41 = vsub.f32 1.0, %v3659_v12  ;;  %vm7714_vm5 = vcmp.eq.f32.partialorder %v3667_v20, 8.507059e+37 }
 0x5dc   :  { %v3646_v1 = vmul.f32 %v7616_v24, %v3645_v47  ;;  %v3670_v28 = vor.u32 1.1754944e-38, %v3669_v49  ;;  %v3682_v47 = vand.u32 2147483647, %v7612_v50 }
 0x5dd   :  { %v4448_v42 = vpop.eup %4447  ;;  %v4100_v15 = vmul.f32 -1.442695, %v7622_v39  ;;  %v3632_v26 = vadd.f32 %v7614_v18, %v3631_v8  ;;  %v3661_v27 = vmul.f32 %v7627_v59, %v3660_v41  ;;  %v3684_v8 = vand.u32 2147483648, %v7612_v50  ;;  %v4165_v41 = vld [vmem:[%s7808_s15 + $0x8] sm:$0xff] }
 0x5de   :  { %v7632_v21 = vadd.f32 1.0, %v4448_v42  ;;  %v7636_v44 = vpop.eup %4449  ;;  %v3647_v53 = vadd.f32 %v7616_v24, %v3646_v1  ;;  %3860 = vmatpush.bf16.msrb.mxu0 %v4165_v41  ;;  %v4194_v41 = vld [vmem:[%s7809_s16] ss:$0 sm:$0xff] }
 0x5df   :  { %4451 = vpow2.f32 %v4100_v15  ;;  %v3674_v63 = vmul.f32 %v7636_v44, %v7612_v50  ;;  %v3636_v4 = vsel %vm7681_vm9, %v7614_v18, %v3632_v26  ;;  %v3662_v60 = vadd.f32 %v7627_v59, %v3661_v27 }
 0x5e0   :  { %4453 = vrcp.f32 %v7632_v21  ;;  %v3651_v17 = vsel %vm7697_vm11, %v7616_v24, %v3647_v53  ;;  %v3641_v2 = vsel %vm3638_vm4, %v3640_v19, %v3636_v4  ;;  %vm3679_vm8 = vweird.f32 %v7636_v44 }
 0x5e1   :  { %v3675_v37 = vsub.f32 1.0, %v3674_v63  ;;  %v3666_v24 = vsel %vm7710_vm12, %v7627_v59, %v3662_v60  ;;  %v3656_v22 = vsel %vm7701_vm6, %v3655_v38, %v3651_v17  ;;  %v3742_v63 = vmul.f32 %v3641_v2, %v7579_v10  ;;  %vm7745_vm3 = vmor %vm3678_vm1, %vm3679_vm8 }
 0x5e2   :  { %v3426_v13 = vpop.f32.mrf.mxu2  ;;  %v3671_v35 = vsel %vm7714_vm5, %v3670_v28, %v3666_v24  ;;  %vm3693_vm2 = vweird.f32 %v7632_v21  ;;  %v3699_v50 = vand.u32 2147483648, %v7632_v21  ;;  %v3743_v56 = vmul.f32 %v3656_v22, %v7584_v16  ;;  %v4164_v16 = vld [vmem:[%s7808_s15] sm:$0xff] }
 0x5e3   :  { %v7643_v36 = vadd.f32 %v7525_v45, %v3426_v13  ;;  %v3676_v7 = vmul.f32 %v7636_v44, %v3675_v37  ;;  %vm3683_vm9 = vcmp.eq.f32.partialorder %v3682_v47, 8.507059e+37  ;;  %v3685_v1 = vor.u32 1.1754944e-38, %v3684_v8  ;;  %3861 = vmatpush.bf16.msrb.mxu0 %v4164_v16 }
 0x5e4   :  { %v3762_v37 = vadd.f32 %v3742_v63, %v3741_v0  ;;  %v3700_v9 = vor.u32 1.1754944e-38, %v3699_v50  ;;  %vm3870_vm1 = vcmask 73728  }
 0x5e5   :  { %v4452_v6 = vpop.eup %4451  ;;  %v4101_v45 = vmul.f32 -1.442695, %v7643_v36  ;;  %v3677_v43 = vadd.f32 %v7636_v44, %v3676_v7 }
 0x5e6   :  { %v7658_v33 = vpop.eup %4453  ;;  %v7663_v3 = vadd.f32 1.0, %v4452_v6  ;;  %v3697_v6 = vand.u32 2147483647, %v7632_v21  ;;  %v3763_v53 = vadd.f32 %v3762_v37, %v3743_v56 }
 0x5e7   :  { %v3689_v30 = vmul.f32 %v7658_v33, %v7632_v21  ;;  %4455 = vpow2.f32 %v4101_v45  ;;  %vm3694_vm7 = vweird.f32 %v7658_v33  ;;  %v3681_v29 = vsel %vm7745_vm3, %v7636_v44, %v3677_v43 }
 0x5e8   :  { %4457 = vrcp.f32 %v7663_v3  ;;  %vm7758_vm0 = vmor %vm3693_vm2, %vm3694_vm7  ;;  %v3714_v26 = vand.u32 2147483648, %v7663_v3  ;;  %vm3708_vm10 = vweird.f32 %v7663_v3  ;;  %v3712_v21 = vand.u32 2147483647, %v7663_v3 }
 0x5e9   :  { %v3690_v14 = vsub.f32 1.0, %v3689_v30  ;;  %v3744_v30 = vmul.f32 %v3671_v35, %v7589_v46  ;;  %v3686_v32 = vsel %vm3683_vm9, %v3685_v1, %v3681_v29  ;;  %vm3698_vm11 = vcmp.eq.f32.partialorder %v3697_v6, 8.507059e+37 }
 0x5ea   :  { %v3745_v23 = vmul.f32 %v3686_v32, %v7593_v11  ;;  %vm3713_vm6 = vcmp.eq.f32.partialorder %v3712_v21, 8.507059e+37 }
 0x5eb   :  { %v3691_v52 = vmul.f32 %v7658_v33, %v3690_v14  ;;  %v3715_v14 = vor.u32 1.1754944e-38, %v3714_v26  ;;  %v3764_v46 = vadd.f32 %v3763_v53, %v3744_v30 }
 0x5ed   :  { %v4456_v18 = vpop.eup %4455  ;;  %v3692_v59 = vadd.f32 %v7658_v33, %v3691_v52 }
 0x5ee   :  { %v4458_v42 = vpop.eup %4457  ;;  %v7718_v12 = vadd.f32 1.0, %v4456_v18 }
 0x5ef   :  { %v3704_v31 = vmul.f32 %v4458_v42, %v7663_v3  ;;  %vm3709_vm13 = vweird.f32 %v4458_v42  ;;  %v3696_v44 = vsel %vm7758_vm0, %v7658_v33, %v3692_v59  ;;  %v3757_v3 = vadd.f32 %v3756_v62, %v7581_v34 }
 0x5f0   :  { %4459 = vrcp.f32 %v7718_v12  ;;  %vm3710_vm4 = vmor %vm3708_vm10, %vm3709_vm13  ;;  %v3701_v48 = vsel %vm3698_vm11, %v3700_v9, %v3696_v44  ;;  %v3729_v4 = vand.u32 2147483648, %v7718_v12  ;;  %v3727_v0 = vand.u32 2147483647, %v7718_v12 }
 0x5f1   :  { %v3705_v13 = vsub.f32 1.0, %v3704_v31  ;;  %v3746_v60 = vmul.f32 %v3701_v48, %v7607_v5  ;;  %v3758_v19 = vrot.slane %v3757_v3, 2  ;;  %v3765_v34 = vadd.f32 %v3764_v46, %v3745_v23 }
 0x5f2   :  { %vm3723_vm12 = vweird.f32 %v7718_v12  ;;  %v3730_v11 = vor.u32 1.1754944e-38, %v3729_v4  ;;  %vm3728_vm8 = vcmp.eq.f32.partialorder %v3727_v0, 8.507059e+37 }
 0x5f3   :  { %v3706_v10 = vmul.f32 %v4458_v42, %v3705_v13  ;;  %v3766_v61 = vadd.f32 %v3765_v34, %v3746_v60  ;;  %v3759_v38 = vadd.f32 %v3758_v19, %v3757_v3 }
 0x5f5   :  { %v3707_v57 = vadd.f32 %v4458_v42, %v3706_v10  ;;  %v3760_v2 = vrot.slane %v3759_v38, 1 }
 0x5f6   :  { %v4460_v27 = vpop.eup %4459 }
 0x5f7   :  { %v3711_v33 = vsel %vm3710_vm4, %v4458_v42, %v3707_v57  ;;  %v3719_v25 = vmul.f32 %v4460_v27, %v7718_v12  ;;  %vm3724_vm15 = vweird.f32 %v4460_v27  ;;  %v3761_v28 = vadd.f32 %v3760_v2, %v3759_v38 }
 0x5f8   :  { %v3716_v49 = vsel %vm3713_vm6, %v3715_v14, %v3711_v33  ;;  %vm3725_vm5 = vmor %vm3723_vm12, %vm3724_vm15 }
 0x5f9   :  { %v3720_v20 = vsub.f32 1.0, %v3719_v25  ;;  %v3747_v62 = vmul.f32 %v3716_v49, %v7622_v39  ;;  %v3775_v12 = vmul.f32 %v3761_v28, %v7434_v40 }
 0x5fb   :  { %v3721_v7 = vmul.f32 %v4460_v27, %v3720_v20  ;;  %v3767_v52 = vadd.f32 %v3766_v61, %v3747_v62  ;;  %v3777_v22 = vpack.c.bf16 %v3775_v12, %v3775_v12 }
 0x5fd   :  { %v3722_v51 = vadd.f32 %v4460_v27, %v3721_v7  ;;  %v3801_v8 = vunpack.c.l.b16 %v3777_v22 }
 0x5ff   :  { %v3726_v18 = vsel %vm3725_vm5, %v4460_v27, %v3722_v51 }
 0x600   :  { %v3731_v17 = vsel %vm3728_vm8, %v3730_v11, %v3726_v18 }
 0x601   :  { %v3748_v5 = vmul.f32 %v3731_v17, %v7643_v36 }
 0x603   :  { %v3768_v42 = vadd.f32 %v3767_v52, %v3748_v5 }
 0x605   :  { %v3769_v58 = vrot.slane %v3768_v42, 4 }
 0x607   :  { %v3770_v15 = vadd.f32 %v3769_v58, %v3768_v42 }
 0x609   :  { %v3771_v24 = vrot.slane %v3770_v15, 2 }
 0x60b   :  { %v3772_v39 = vadd.f32 %v3771_v24, %v3770_v15 }
 0x60d   :  { %v3773_v43 = vrot.slane %v3772_v39, 1 }
 0x60f   :  { %v3774_v31 = vadd.f32 %v3773_v43, %v3772_v39 }
 0x611   :  { %v3776_v54 = vmul.f32 %v3774_v31, %v7434_v40 }
 0x613   :  { %v3778_v47 = vpack.c.bf16 %v3776_v54, %v3776_v54 }
 0x615   :  { %v3802_v59 = vunpack.c.l.b16 %v3778_v47 }
 0x617   :  { %v3803_v13 = vsel %vm3034_vm14, %v3802_v59, %v3801_v8 }
 0x618   :  { %v3804_v36 = vpack.c.b16 %v3803_v13, %v3803_v13 }
 0x61a   :  { %3862 = vmatmul.bf16.vlgmr.msrb.gmra.mxu0 %v3804_v36 }
 0x697   :  { %v3863_v63 = vpop.f32.mrf.mxu0 }
 0x698   :  { %v3864_v40 = vadd.f32 %v4194_v41, %v3863_v63 }
 0x69a   :  { %v3868_v35 = vrot.slane %v3864_v40, 1  ;;  %3871 = vst.msk [vmem:[#allocation3] sm:$0x1] %vm3870_vm1, %v3864_v40 }
 0x69c   :  { %3872 = vst.msk [vmem:[#allocation3 + $0x1] sm:$0x1] %vm3870_vm1, %v3868_v35 }
 0x69d   :  { %3885 = dma.vmem_to_hbm [thread:$0]  %s3878_s27, 32, %s3880_s5, [#allocation4], %s4495_s29, %s4495_s29, %s4496_s6  }
 0x69f   :  { %v3865_v55 = vpop.f32.mrf.mxu0 }
 0x6a0   :  { %4489 = dma.done.wait [#allocation4], 32  }
 0x6a1   :  { %4490 = vsyncadd [#allocation4], 4294967264 }
 0x6a2   :  { %3890 = vsyncpa [#allocation4], 1 }

</bundles_post_ra>
